<compile_context>
chip_gen: v7x
topology: tpu7x:2x2x1
jax: 0.10.0
libtpu: 0.0.40
codegen_flags: <defaults>
</compile_context>

<pallas_src>
import numpy as np
import jax
import jax.numpy as jnp
from jax import lax
from jax.experimental import pallas as pl
from jax.experimental.pallas import tpu as pltpu

# ---------------- model dimensions ------------------------------------------
B = 2              # batch
CIN = 4            # input channels
CINP = 8           # input channels zero-padded to a sublane multiple of 8
H = W = 16         # input spatial
C1 = 8             # encoder conv1 channels
C2 = 16            # encoder conv2 channels
LATENT = 32        # latent dim
KH = KW = 4
K2 = KH * KW       # 16 kernel taps
S1H = S1W = 8      # spatial after conv1 / before convT1
S2H = S2W = 4      # spatial after conv2 / before convT2
S1HW = S1H * S1W   # 64
NSP = S2H * S2W    # 16
FLAT = C2 * NSP    # 256
HW = H * W         # 256


# ---------------- batch-free 0/1 selection matrices (built once, numpy) ------
def _conv_sel(hi, wi, ho, wo, kh, kw, stride, pad):
    """Conv2d gather: S[p, k*ho*wo + m] = 1 iff output pixel m under tap k
    reads input pixel p (zero padding outside)."""
    s = np.zeros((hi * wi, kh * kw * ho * wo), np.float32)
    for i in range(kh):
        for j in range(kw):
            k = i * kw + j
            for oy in range(ho):
                for ox in range(wo):
                    y = oy * stride + i - pad
                    x = ox * stride + j - pad
                    if 0 <= y < hi and 0 <= x < wi:
                        s[y * wi + x, k * ho * wo + oy * wo + ox] = 1.0
    return s


def _convT_sel(hi, wi, ho, wo, kh, kw, stride, pad):
    """ConvTranspose2d scatter: S[p, k*ho*wo + m] = 1 iff input pixel p under
    tap k adds into output pixel m."""
    s = np.zeros((hi * wi, kh * kw * ho * wo), np.float32)
    for i in range(kh):
        for j in range(kw):
            k = i * kw + j
            for y in range(hi):
                for x in range(wi):
                    oy = y * stride + i - pad
                    ox = x * stride + j - pad
                    if 0 <= oy < ho and 0 <= ox < wo:
                        s[y * wi + x, k * ho * wo + oy * wo + ox] = 1.0
    return s


# ---------------- the fused Pallas kernel (one grid step = one sample) -------
def _vae_kernel(x_ref, eps_ref,
                w1_ref, b1_ref, s1_ref,
                w2_ref, b2_ref, s2_ref,
                wfc_ref, bfc_ref, wd_ref, bd_ref,
                wt2_ref, bt2_ref, st2_ref,
                wt1_ref, bt1_ref, st1_ref,
                recon_ref, mv_ref,
                z1_ref, z2_ref, zfc_ref, zhd_ref, zt2_ref, zt1_ref):
    bf16, f32 = jnp.bfloat16, jnp.float32

    def conv_like(x_bf, s_ref, w_ref, b_ref, z_ref, cin, hw_out, relu):
        # (1) gather: one wide-K matmul, contraction over input spatial dim.
        g = jnp.dot(x_bf, s_ref[...], preferred_element_type=f32)       # (cin, K2*hw_out)
        # (2) regroup (cin, K2*hw_out) -> (K2*cin, hw_out) via aligned scratch
        #     copies (row blocks are multiples of 8, so stores are unmasked on
        #     sublanes).  Entries are exact copies of bf16 inputs.
        for k in range(K2):
            z_ref[k * cin:(k + 1) * cin, :] = g[:, k * hw_out:(k + 1) * hw_out]
        # (3) channel mix: second wide-K matmul, contraction over (tap, chan).
        y = jnp.dot(w_ref[...], z_ref[...].astype(bf16),
                    preferred_element_type=f32) + b_ref[...]
        return jnp.maximum(y, 0.0) if relu else y

    # ---------------- encoder ----------------
    x0 = x_ref[0]                                                        # (CINP, 256) bf16
    h1 = conv_like(x0, s1_ref, w1_ref, b1_ref, z1_ref, CINP, S1HW, True)        # (C1, 64)
    h2 = conv_like(h1.astype(bf16), s2_ref, w2_ref, b2_ref, z2_ref, C1, NSP, True)  # (C2, 16)

    # torch flatten: (C2, NSP) -> (1, FLAT), column order c*NSP + sp
    for c in range(C2):
        zfc_ref[:, c * NSP:(c + 1) * NSP] = h2[c:c + 1, :]
    mv = jnp.dot(zfc_ref[...].astype(bf16), wfc_ref[...],
                 preferred_element_type=f32) + bfc_ref[...]              # (1, 2*LATENT)
    mv_ref[0] = mv                                                       # merged mu|logvar

    # ---------------- reparameterization (f32 VPU/EUP) ----------------
    mu = mv[:, :LATENT]
    logvar = mv[:, LATENT:]
    z = mu + eps_ref[0] * jnp.exp(0.5 * logvar)                          # (1, LATENT)

    # ---------------- decoder ----------------
    hdflat = jnp.dot(z.astype(bf16), wd_ref[...],
                     preferred_element_type=f32) + bd_ref[...]           # (1, FLAT)
    for c in range(C2):                                                  # unflatten -> (C2, NSP)
        zhd_ref[c:c + 1, :] = hdflat[:, c * NSP:(c + 1) * NSP]
    hd = zhd_ref[...]

    t2 = conv_like(hd.astype(bf16), st2_ref, wt2_ref, bt2_ref, zt2_ref, C2, S1HW, True)  # (C1, 64)
    t1 = conv_like(t2.astype(bf16), st1_ref, wt1_ref, bt1_ref, zt1_ref, C1, HW, False)   # (CIN, 256)
    recon_ref[0] = jax.nn.sigmoid(t1)                                    # lane-dense f32 store


def _vae_pallas_call():
    cmap2 = lambda b: (0, 0)          # constant blocks: fetched once, stay resident
    in_specs = [
        pl.BlockSpec((1, CINP, HW), lambda b: (b, 0, 0)),       # x (padded, bf16)
        pl.BlockSpec((1, 1, LATENT), lambda b: (b, 0, 0)),      # eps
        pl.BlockSpec((C1, K2 * CINP), cmap2),                   # w1  (8, 128)
        pl.BlockSpec((C1, 1), cmap2),                           # b1
        pl.BlockSpec((HW, K2 * S1HW), cmap2),                   # s1  (256, 1024)
        pl.BlockSpec((C2, K2 * C1), cmap2),                     # w2  (16, 128)
        pl.BlockSpec((C2, 1), cmap2),                           # b2
        pl.BlockSpec((S1HW, K2 * NSP), cmap2),                  # s2  (64, 256)
        pl.BlockSpec((FLAT, 2 * LATENT), cmap2),                # wfc (256, 64)
        pl.BlockSpec((1, 2 * LATENT), cmap2),                   # bfc
        pl.BlockSpec((LATENT, FLAT), cmap2),                    # wd  (32, 256)
        pl.BlockSpec((1, FLAT), cmap2),                         # bd
        pl.BlockSpec((C1, K2 * C2), cmap2),                     # wt2 (8, 256)
        pl.BlockSpec((C1, 1), cmap2),                           # bt2
        pl.BlockSpec((NSP, K2 * S1HW), cmap2),                  # st2 (16, 1024)
        pl.BlockSpec((CIN, K2 * C1), cmap2),                    # wt1 (4, 128)
        pl.BlockSpec((CIN, 1), cmap2),                          # bt1
        pl.BlockSpec((S1HW, K2 * HW), cmap2),                   # st1 (64, 4096)
    ]
    out_specs = [
        pl.BlockSpec((1, CIN, HW), lambda b: (b, 0, 0)),        # reconstruction
        pl.BlockSpec((1, 1, 2 * LATENT), lambda b: (b, 0, 0)),  # merged mu|logvar
    ]
    scratch = [
        pltpu.VMEM((K2 * CINP, S1HW), jnp.float32),   # z1  (128, 64)
        pltpu.VMEM((K2 * C1, NSP), jnp.float32),      # z2  (128, 16)
        pltpu.VMEM((1, FLAT), jnp.float32),           # zfc (1, 256)
        pltpu.VMEM((C2, NSP), jnp.float32),           # zhd (16, 16)
        pltpu.VMEM((K2 * C2, S1HW), jnp.float32),     # zt2 (256, 64)
        pltpu.VMEM((K2 * C1, HW), jnp.float32),       # zt1 (128, 256)
    ]
    out_shape = (
        jax.ShapeDtypeStruct((B, CIN, HW), jnp.float32),
        jax.ShapeDtypeStruct((B, 1, 2 * LATENT), jnp.float32),
    )
    return pl.pallas_call(
        _vae_kernel,
        out_shape=out_shape,
        grid_spec=pltpu.PrefetchScalarGridSpec(
            num_scalar_prefetch=0,
            grid=(B,),
            in_specs=in_specs,
            out_specs=out_specs,
            scratch_shapes=scratch,
        ),
        compiler_params=pltpu.CompilerParams(
            dimension_semantics=("parallel",),      # batch axis: v7x can use both TCs
            vmem_limit_bytes=64 * 1024 * 1024,
        ),
    )


# ---------------- parameters (torch-layout) + one-time packing ---------------
def init_params(key):
    keys = jax.random.split(key, 14)

    def u(k, shape, fan_in):
        bound = 1.0 / float(np.sqrt(fan_in))
        return jax.random.uniform(k, shape, jnp.float32, -bound, bound)

    p = {}
    p["conv1_w"] = u(keys[0], (C1, CIN, KH, KW), CIN * K2)      # (Cout, Cin, kh, kw)
    p["conv1_b"] = u(keys[1], (C1,), CIN * K2)
    p["conv2_w"] = u(keys[2], (C2, C1, KH, KW), C1 * K2)
    p["conv2_b"] = u(keys[3], (C2,), C1 * K2)
    p["fc_mu_w"] = u(keys[4], (LATENT, FLAT), FLAT)             # torch Linear (out, in)
    p["fc_mu_b"] = u(keys[5], (LATENT,), FLAT)
    p["fc_lv_w"] = u(keys[6], (LATENT, FLAT), FLAT)
    p["fc_lv_b"] = u(keys[7], (LATENT,), FLAT)
    p["fc_w"]    = u(keys[8], (FLAT, LATENT), LATENT)           # decoder fc (out, in)
    p["fc_b"]    = u(keys[9], (FLAT,), LATENT)
    p["convt2_w"] = u(keys[10], (C2, C1, KH, KW), C2 * K2)      # (Cin, Cout, kh, kw)
    p["convt2_b"] = u(keys[11], (C1,), C2 * K2)
    p["convt1_w"] = u(keys[12], (C1, CIN, KH, KW), C1 * K2)
    p["convt1_b"] = u(keys[13], (CIN,), C1 * K2)
    return p


def pack_params(p):
    """One-time packing: lane-dense 2-D weight slabs + batch-free selections."""
    bf16, f32 = jnp.bfloat16, jnp.float32

    def pack_conv_w(w, cin_pad):
        # torch Conv2d (Cout, Cin, kh, kw) -> (Cout, K2*cin_pad), col = k*cin_pad + c
        cout, cin, kh, kw = w.shape
        wt = jnp.transpose(w, (0, 2, 3, 1)).reshape(cout, kh * kw, cin)
        if cin_pad > cin:
            wt = jnp.concatenate(
                [wt, jnp.zeros((cout, kh * kw, cin_pad - cin), w.dtype)], axis=2)
        return wt.reshape(cout, kh * kw * cin_pad).astype(bf16)

    def pack_convT_w(w):
        # torch ConvTranspose2d (Cin, Cout, kh, kw) -> (Cout, K2*Cin), col = k*cin + c
        cin, cout, kh, kw = w.shape
        return jnp.transpose(w, (1, 2, 3, 0)).reshape(cout, kh * kw * cin).astype(bf16)

    w1 = pack_conv_w(p["conv1_w"], CINP)                  # (8, 128)
    w2 = pack_conv_w(p["conv2_w"], C1)                    # (16, 128)
    wt2 = pack_convT_w(p["convt2_w"])                     # (8, 256)
    wt1 = pack_convT_w(p["convt1_w"])                     # (4, 128)
    b1 = p["conv1_b"].reshape(C1, 1).astype(f32)
    b2 = p["conv2_b"].reshape(C2, 1).astype(f32)
    bt2 = p["convt2_b"].reshape(C1, 1).astype(f32)
    bt1 = p["convt1_b"].reshape(CIN, 1).astype(f32)

    # fc_mu / fc_logvar merged; flatten order matches torch (c*NSP + sp)
    wfc = jnp.concatenate([p["fc_mu_w"], p["fc_lv_w"]], axis=0).T.astype(bf16)   # (256, 64)
    bfc = jnp.concatenate([p["fc_mu_b"], p["fc_lv_b"]], axis=0).reshape(1, 2 * LATENT).astype(f32)
    wd = p["fc_w"].T.astype(bf16)                         # (32, 256)
    bd = p["fc_b"].reshape(1, FLAT).astype(f32)

    # batch-free constant 0/1 gather / scatter slabs (columns ordered tap-major)
    s1 = jnp.asarray(_conv_sel(H, W, S1H, S1W, KH, KW, 2, 1), bf16)        # (256, 1024)
    s2 = jnp.asarray(_conv_sel(S1H, S1W, S2H, S2W, KH, KW, 2, 1), bf16)    # (64, 256)
    st2 = jnp.asarray(_convT_sel(S2H, S2W, S1H, S1W, KH, KW, 2, 1), bf16)  # (16, 1024)
    st1 = jnp.asarray(_convT_sel(S1H, S1W, H, W, KH, KW, 2, 1), bf16)      # (64, 4096)

    return (w1, b1, s1, w2, b2, s2, wfc, bfc, wd, bd,
            wt2, bt2, st2, wt1, bt1, st1)


# ---------------- forward ----------------------------------------------------
@jax.jit
def vae_forward(packed, x, eps):
    """x: (B, CIN, H, W) f32.  eps: (B, LATENT) f32 noise (pass zeros for eval,
    which reproduces torch's `latent = mu` eval branch exactly)."""
    x2 = x.reshape(B, CIN, HW)
    x_pad = jnp.concatenate(
        [x2, jnp.zeros((B, CINP - CIN, HW), x2.dtype)], axis=1).astype(jnp.bfloat16)
    eps3 = eps.reshape(B, 1, LATENT).astype(jnp.float32)
    recon2d, mv = _vae_pallas_call()(x_pad, eps3, *packed)
    x_recon = recon2d.reshape(B, CIN, H, W)
    mu = mv[:, 0, :LATENT]
    logvar = mv[:, 0, LATENT:]
    return x_recon, mu, logvar


# ---------------- pure-JAX f32 reference (numerical check) -------------------
def _ref_forward(p, x, eps):
    def conv(xx, w, b, stride, pad):
        y = lax.conv_general_dilated(xx, w, (stride, stride),
                                     [(pad, pad), (pad, pad)],
                                     dimension_numbers=("NCHW", "OIHW", "NCHW"))
        return y + b.reshape(1, -1, 1, 1)

    def convT(xx, w_iokk, b, stride, pad):
        bsz, cin, hin, win = xx.shape
        k = w_iokk.shape[2]
        xd = jnp.zeros((bsz, cin, (hin - 1) * stride + 1, (win - 1) * stride + 1), xx.dtype)
        xd = xd.at[:, :, ::stride, ::stride].set(xx)
        pp = k - 1 - pad
        w_conv = jnp.flip(w_iokk, axis=(2, 3)).transpose(1, 0, 2, 3)
        y = lax.conv_general_dilated(xd, w_conv, (1, 1), [(pp, pp), (pp, pp)],
                                     dimension_numbers=("NCHW", "OIHW", "NCHW"))
        return y + b.reshape(1, -1, 1, 1)

    h1 = jax.nn.relu(conv(x, p["conv1_w"], p["conv1_b"], 2, 1))
    h2 = jax.nn.relu(conv(h1, p["conv2_w"], p["conv2_b"], 2, 1))
    flat = h2.reshape(B, -1)
    mu = flat @ p["fc_mu_w"].T + p["fc_mu_b"]
    logvar = flat @ p["fc_lv_w"].T + p["fc_lv_b"]
    z = mu + eps * jnp.exp(0.5 * logvar)
    hd = (z @ p["fc_w"].T + p["fc_b"]).reshape(B, C2, S2H, S2W)
    t2 = jax.nn.relu(convT(hd, p["convt2_w"], p["convt2_b"], 2, 1))
    t1 = convT(t2, p["convt1_w"], p["convt1_b"], 2, 1)
    return jax.nn.sigmoid(t1), mu, logvar


# ---------------- main --------------------------------------------------------
if __name__ == "__main__":
    key = jax.random.PRNGKey(0)
    k_param, k_x, k_eps = jax.random.split(key, 3)

    params = init_params(k_param)
    packed = pack_params(params)     # one-time packing (weights + 0/1 selections)

    x = jax.random.normal(k_x, (B, CIN, H, W), jnp.float32)
    eps = jax.random.normal(k_eps, (B, LATENT), jnp.float32)   # training-mode noise

    x_recon, mu, logvar = vae_forward(packed, x, eps)
    jax.block_until_ready((x_recon, mu, logvar))

    # shape / sanity checks
    assert x_recon.shape == (B, CIN, H, W)
    assert mu.shape == (B, LATENT) and logvar.shape == (B, LATENT)
    assert bool(jnp.all(jnp.isfinite(x_recon)))
    assert bool(jnp.all((x_recon >= 0.0) & (x_recon <= 1.0)))   # sigmoid output

    # numerical check vs. pure-JAX f32 reference (loose tol: bf16 MXU operands)
    r_recon, r_mu, r_lv = _ref_forward(params, x, eps)
    assert float(jnp.max(jnp.abs(mu - r_mu))) < 5e-2
    assert float(jnp.max(jnp.abs(logvar - r_lv))) < 5e-2
    assert float(jnp.max(jnp.abs(x_recon - r_recon))) < 5e-2

    print("KERNEL_OK")
</pallas_src>

<mosaic_0001>
module attributes {stable_mosaic.version = 11 : i64} {
  func.func @_vae_kernel(%arg0: i32, %arg1: memref<1x8x256xbf16, #tpu.memory_space<vmem>>, %arg2: memref<1x1x32xf32, #tpu.memory_space<vmem>>, %arg3: memref<8x128xbf16, #tpu.memory_space<vmem>>, %arg4: memref<8x1xf32, #tpu.memory_space<vmem>>, %arg5: memref<256x1024xbf16, #tpu.memory_space<vmem>>, %arg6: memref<16x128xbf16, #tpu.memory_space<vmem>>, %arg7: memref<16x1xf32, #tpu.memory_space<vmem>>, %arg8: memref<64x256xbf16, #tpu.memory_space<vmem>>, %arg9: memref<256x64xbf16, #tpu.memory_space<vmem>>, %arg10: memref<1x64xf32, #tpu.memory_space<vmem>>, %arg11: memref<32x256xbf16, #tpu.memory_space<vmem>>, %arg12: memref<1x256xf32, #tpu.memory_space<vmem>>, %arg13: memref<8x256xbf16, #tpu.memory_space<vmem>>, %arg14: memref<8x1xf32, #tpu.memory_space<vmem>>, %arg15: memref<16x1024xbf16, #tpu.memory_space<vmem>>, %arg16: memref<4x128xbf16, #tpu.memory_space<vmem>>, %arg17: memref<4x1xf32, #tpu.memory_space<vmem>>, %arg18: memref<64x4096xbf16, #tpu.memory_space<vmem>>, %arg19: memref<1x4x256xf32, #tpu.memory_space<vmem>>, %arg20: memref<1x1x64xf32, #tpu.memory_space<vmem>>, %arg21: memref<128x64xf32, #tpu.memory_space<vmem>>, %arg22: memref<128x16xf32, #tpu.memory_space<vmem>>, %arg23: memref<1x256xf32, #tpu.memory_space<vmem>>, %arg24: memref<16x16xf32, #tpu.memory_space<vmem>>, %arg25: memref<256x64xf32, #tpu.memory_space<vmem>>, %arg26: memref<128x256xf32, #tpu.memory_space<vmem>>) attributes {dimension_semantics = [#tpu.dimension_semantics<parallel>], iteration_bounds = array<i64: 2>, scalar_prefetch = 0 : i64, scratch_operands = 6 : i64, tpu.core_type = #tpu.core_type<tc>, window_params = [{transform_indices = @transform_0, window_bounds = array<i64: 1, 8, 256>}, {transform_indices = @transform_1, window_bounds = array<i64: 1, 1, 32>}, {pipeline_mode = #tpu.pipeline_mode<synchronous>, transform_indices = @transform_2, window_bounds = array<i64: 8, 128>}, {pipeline_mode = #tpu.pipeline_mode<synchronous>, transform_indices = @transform_3, window_bounds = array<i64: 8, 1>}, {pipeline_mode = #tpu.pipeline_mode<synchronous>, transform_indices = @transform_4, window_bounds = array<i64: 256, 1024>}, {pipeline_mode = #tpu.pipeline_mode<synchronous>, transform_indices = @transform_5, window_bounds = array<i64: 16, 128>}, {pipeline_mode = #tpu.pipeline_mode<synchronous>, transform_indices = @transform_6, window_bounds = array<i64: 16, 1>}, {pipeline_mode = #tpu.pipeline_mode<synchronous>, transform_indices = @transform_7, window_bounds = array<i64: 64, 256>}, {pipeline_mode = #tpu.pipeline_mode<synchronous>, transform_indices = @transform_8, window_bounds = array<i64: 256, 64>}, {pipeline_mode = #tpu.pipeline_mode<synchronous>, transform_indices = @transform_9, window_bounds = array<i64: 1, 64>}, {pipeline_mode = #tpu.pipeline_mode<synchronous>, transform_indices = @transform_10, window_bounds = array<i64: 32, 256>}, {pipeline_mode = #tpu.pipeline_mode<synchronous>, transform_indices = @transform_11, window_bounds = array<i64: 1, 256>}, {pipeline_mode = #tpu.pipeline_mode<synchronous>, transform_indices = @transform_12, window_bounds = array<i64: 8, 256>}, {pipeline_mode = #tpu.pipeline_mode<synchronous>, transform_indices = @transform_13, window_bounds = array<i64: 8, 1>}, {pipeline_mode = #tpu.pipeline_mode<synchronous>, transform_indices = @transform_14, window_bounds = array<i64: 16, 1024>}, {pipeline_mode = #tpu.pipeline_mode<synchronous>, transform_indices = @transform_15, window_bounds = array<i64: 4, 128>}, {pipeline_mode = #tpu.pipeline_mode<synchronous>, transform_indices = @transform_16, window_bounds = array<i64: 4, 1>}, {pipeline_mode = #tpu.pipeline_mode<synchronous>, transform_indices = @transform_17, window_bounds = array<i64: 64, 4096>}, {transform_indices = @transform_18, window_bounds = array<i64: 1, 4, 256>}, {transform_indices = @transform_19, window_bounds = array<i64: 1, 1, 64>}]} {
    %c0 = arith.constant 0 : index
    %c0_0 = arith.constant 0 : index
    %c0_1 = arith.constant 0 : index
    %0 = vector.load %arg1[%c0, %c0_0, %c0_1] : memref<1x8x256xbf16, #tpu.memory_space<vmem>>, vector<1x8x256xbf16>
    %1 = vector.shape_cast %0 : vector<1x8x256xbf16> to vector<8x256xbf16>
    %c0_2 = arith.constant 0 : index
    %c0_3 = arith.constant 0 : index
    %2 = vector.load %arg5[%c0_2, %c0_3] : memref<256x1024xbf16, #tpu.memory_space<vmem>>, vector<256x1024xbf16>
    %cst = arith.constant dense<0.000000e+00> : vector<8x1024xf32>
    %3 = tpu.matmul %1, %2, %cst {dimension_numbers = #tpu.dot_dimension_numbers<[1], [0], [0], [1], [0, 0, 1, 1], [], []>} : vector<8x256xbf16>, vector<256x1024xbf16>, vector<8x1024xf32> -> vector<8x1024xf32>
    %4 = vector.extract_strided_slice %3 {offsets = [0, 0], sizes = [8, 64], strides = [1, 1]} : vector<8x1024xf32> to vector<8x64xf32>
    %c0_4 = arith.constant 0 : index
    %c0_5 = arith.constant 0 : index
    %5 = vector.load %arg21[%c0_4, %c0_5] : memref<128x64xf32, #tpu.memory_space<vmem>>, vector<8x64xf32>
    tpu.vector_store %arg21[%c0_4, %c0_5], %4 {strides = array<i32>} : memref<128x64xf32, #tpu.memory_space<vmem>>, vector<8x64xf32>,
    %6 = vector.extract_strided_slice %3 {offsets = [0, 64], sizes = [8, 64], strides = [1, 1]} : vector<8x1024xf32> to vector<8x64xf32>
    %c8 = arith.constant 8 : index
    %c0_6 = arith.constant 0 : index
    %7 = vector.load %arg21[%c8, %c0_6] : memref<128x64xf32, #tpu.memory_space<vmem>>, vector<8x64xf32>
    tpu.vector_store %arg21[%c8, %c0_6], %6 {strides = array<i32>} : memref<128x64xf32, #tpu.memory_space<vmem>>, vector<8x64xf32>,
    %8 = vector.extract_strided_slice %3 {offsets = [0, 128], sizes = [8, 64], strides = [1, 1]} : vector<8x1024xf32> to vector<8x64xf32>
    %c16 = arith.constant 16 : index
    %c0_7 = arith.constant 0 : index
    %9 = vector.load %arg21[%c16, %c0_7] : memref<128x64xf32, #tpu.memory_space<vmem>>, vector<8x64xf32>
    tpu.vector_store %arg21[%c16, %c0_7], %8 {strides = array<i32>} : memref<128x64xf32, #tpu.memory_space<vmem>>, vector<8x64xf32>,
    %10 = vector.extract_strided_slice %3 {offsets = [0, 192], sizes = [8, 64], strides = [1, 1]} : vector<8x1024xf32> to vector<8x64xf32>
    %c24 = arith.constant 24 : index
    %c0_8 = arith.constant 0 : index
    %11 = vector.load %arg21[%c24, %c0_8] : memref<128x64xf32, #tpu.memory_space<vmem>>, vector<8x64xf32>
    tpu.vector_store %arg21[%c24, %c0_8], %10 {strides = array<i32>} : memref<128x64xf32, #tpu.memory_space<vmem>>, vector<8x64xf32>,
    %12 = vector.extract_strided_slice %3 {offsets = [0, 256], sizes = [8, 64], strides = [1, 1]} : vector<8x1024xf32> to vector<8x64xf32>
    %c32 = arith.constant 32 : index
    %c0_9 = arith.constant 0 : index
    %13 = vector.load %arg21[%c32, %c0_9] : memref<128x64xf32, #tpu.memory_space<vmem>>, vector<8x64xf32>
    tpu.vector_store %arg21[%c32, %c0_9], %12 {strides = array<i32>} : memref<128x64xf32, #tpu.memory_space<vmem>>, vector<8x64xf32>,
    %14 = vector.extract_strided_slice %3 {offsets = [0, 320], sizes = [8, 64], strides = [1, 1]} : vector<8x1024xf32> to vector<8x64xf32>
    %c40 = arith.constant 40 : index
    %c0_10 = arith.constant 0 : index
    %15 = vector.load %arg21[%c40, %c0_10] : memref<128x64xf32, #tpu.memory_space<vmem>>, vector<8x64xf32>
    tpu.vector_store %arg21[%c40, %c0_10], %14 {strides = array<i32>} : memref<128x64xf32, #tpu.memory_space<vmem>>, vector<8x64xf32>,
    %16 = vector.extract_strided_slice %3 {offsets = [0, 384], sizes = [8, 64], strides = [1, 1]} : vector<8x1024xf32> to vector<8x64xf32>
    %c48 = arith.constant 48 : index
    %c0_11 = arith.constant 0 : index
    %17 = vector.load %arg21[%c48, %c0_11] : memref<128x64xf32, #tpu.memory_space<vmem>>, vector<8x64xf32>
    tpu.vector_store %arg21[%c48, %c0_11], %16 {strides = array<i32>} : memref<128x64xf32, #tpu.memory_space<vmem>>, vector<8x64xf32>,
    %18 = vector.extract_strided_slice %3 {offsets = [0, 448], sizes = [8, 64], strides = [1, 1]} : vector<8x1024xf32> to vector<8x64xf32>
    %c56 = arith.constant 56 : index
    %c0_12 = arith.constant 0 : index
    %19 = vector.load %arg21[%c56, %c0_12] : memref<128x64xf32, #tpu.memory_space<vmem>>, vector<8x64xf32>
    tpu.vector_store %arg21[%c56, %c0_12], %18 {strides = array<i32>} : memref<128x64xf32, #tpu.memory_space<vmem>>, vector<8x64xf32>,
    %20 = vector.extract_strided_slice %3 {offsets = [0, 512], sizes = [8, 64], strides = [1, 1]} : vector<8x1024xf32> to vector<8x64xf32>
    %c64 = arith.constant 64 : index
    %c0_13 = arith.constant 0 : index
    %21 = vector.load %arg21[%c64, %c0_13] : memref<128x64xf32, #tpu.memory_space<vmem>>, vector<8x64xf32>
    tpu.vector_store %arg21[%c64, %c0_13], %20 {strides = array<i32>} : memref<128x64xf32, #tpu.memory_space<vmem>>, vector<8x64xf32>,
    %22 = vector.extract_strided_slice %3 {offsets = [0, 576], sizes = [8, 64], strides = [1, 1]} : vector<8x1024xf32> to vector<8x64xf32>
    %c72 = arith.constant 72 : index
    %c0_14 = arith.constant 0 : index
    %23 = vector.load %arg21[%c72, %c0_14] : memref<128x64xf32, #tpu.memory_space<vmem>>, vector<8x64xf32>
    tpu.vector_store %arg21[%c72, %c0_14], %22 {strides = array<i32>} : memref<128x64xf32, #tpu.memory_space<vmem>>, vector<8x64xf32>,
    %24 = vector.extract_strided_slice %3 {offsets = [0, 640], sizes = [8, 64], strides = [1, 1]} : vector<8x1024xf32> to vector<8x64xf32>
    %c80 = arith.constant 80 : index
    %c0_15 = arith.constant 0 : index
    %25 = vector.load %arg21[%c80, %c0_15] : memref<128x64xf32, #tpu.memory_space<vmem>>, vector<8x64xf32>
    tpu.vector_store %arg21[%c80, %c0_15], %24 {strides = array<i32>} : memref<128x64xf32, #tpu.memory_space<vmem>>, vector<8x64xf32>,
    %26 = vector.extract_strided_slice %3 {offsets = [0, 704], sizes = [8, 64], strides = [1, 1]} : vector<8x1024xf32> to vector<8x64xf32>
    %c88 = arith.constant 88 : index
    %c0_16 = arith.constant 0 : index
    %27 = vector.load %arg21[%c88, %c0_16] : memref<128x64xf32, #tpu.memory_space<vmem>>, vector<8x64xf32>
    tpu.vector_store %arg21[%c88, %c0_16], %26 {strides = array<i32>} : memref<128x64xf32, #tpu.memory_space<vmem>>, vector<8x64xf32>,
    %28 = vector.extract_strided_slice %3 {offsets = [0, 768], sizes = [8, 64], strides = [1, 1]} : vector<8x1024xf32> to vector<8x64xf32>
    %c96 = arith.constant 96 : index
    %c0_17 = arith.constant 0 : index
    %29 = vector.load %arg21[%c96, %c0_17] : memref<128x64xf32, #tpu.memory_space<vmem>>, vector<8x64xf32>
    tpu.vector_store %arg21[%c96, %c0_17], %28 {strides = array<i32>} : memref<128x64xf32, #tpu.memory_space<vmem>>, vector<8x64xf32>,
    %30 = vector.extract_strided_slice %3 {offsets = [0, 832], sizes = [8, 64], strides = [1, 1]} : vector<8x1024xf32> to vector<8x64xf32>
    %c104 = arith.constant 104 : index
    %c0_18 = arith.constant 0 : index
    %31 = vector.load %arg21[%c104, %c0_18] : memref<128x64xf32, #tpu.memory_space<vmem>>, vector<8x64xf32>
    tpu.vector_store %arg21[%c104, %c0_18], %30 {strides = array<i32>} : memref<128x64xf32, #tpu.memory_space<vmem>>, vector<8x64xf32>,
    %32 = vector.extract_strided_slice %3 {offsets = [0, 896], sizes = [8, 64], strides = [1, 1]} : vector<8x1024xf32> to vector<8x64xf32>
    %c112 = arith.constant 112 : index
    %c0_19 = arith.constant 0 : index
    %33 = vector.load %arg21[%c112, %c0_19] : memref<128x64xf32, #tpu.memory_space<vmem>>, vector<8x64xf32>
    tpu.vector_store %arg21[%c112, %c0_19], %32 {strides = array<i32>} : memref<128x64xf32, #tpu.memory_space<vmem>>, vector<8x64xf32>,
    %34 = vector.extract_strided_slice %3 {offsets = [0, 960], sizes = [8, 64], strides = [1, 1]} : vector<8x1024xf32> to vector<8x64xf32>
    %c120 = arith.constant 120 : index
    %c0_20 = arith.constant 0 : index
    %35 = vector.load %arg21[%c120, %c0_20] : memref<128x64xf32, #tpu.memory_space<vmem>>, vector<8x64xf32>
    tpu.vector_store %arg21[%c120, %c0_20], %34 {strides = array<i32>} : memref<128x64xf32, #tpu.memory_space<vmem>>, vector<8x64xf32>,
    %c0_21 = arith.constant 0 : index
    %c0_22 = arith.constant 0 : index
    %36 = vector.load %arg3[%c0_21, %c0_22] : memref<8x128xbf16, #tpu.memory_space<vmem>>, vector<8x128xbf16>
    %c0_23 = arith.constant 0 : index
    %c0_24 = arith.constant 0 : index
    %37 = vector.load %arg21[%c0_23, %c0_24] : memref<128x64xf32, #tpu.memory_space<vmem>>, vector<128x64xf32>
    %38 = arith.truncf %37 : vector<128x64xf32> to vector<128x64xbf16>
    %cst_25 = arith.constant dense<0.000000e+00> : vector<8x64xf32>
    %39 = tpu.matmul %36, %38, %cst_25 {dimension_numbers = #tpu.dot_dimension_numbers<[1], [0], [0], [1], [0, 0, 1, 1], [], []>} : vector<8x128xbf16>, vector<128x64xbf16>, vector<8x64xf32> -> vector<8x64xf32>
    %c0_26 = arith.constant 0 : index
    %c0_27 = arith.constant 0 : index
    %40 = vector.load %arg4[%c0_26, %c0_27] : memref<8x1xf32, #tpu.memory_space<vmem>>, vector<8x1xf32>
    %41 = vector.broadcast %40 : vector<8x1xf32> to vector<8x64xf32>
    %42 = arith.addf %39, %41 : vector<8x64xf32>
    %cst_28 = arith.constant 0.000000e+00 : f32
    %43 = vector.broadcast %cst_28 : f32 to vector<8x64xf32>
    %44 = arith.maximumf %42, %43 : vector<8x64xf32>
    %45 = arith.truncf %44 : vector<8x64xf32> to vector<8x64xbf16>
    %c0_29 = arith.constant 0 : index
    %c0_30 = arith.constant 0 : index
    %46 = vector.load %arg8[%c0_29, %c0_30] : memref<64x256xbf16, #tpu.memory_space<vmem>>, vector<64x256xbf16>
    %cst_31 = arith.constant dense<0.000000e+00> : vector<8x256xf32>
    %47 = tpu.matmul %45, %46, %cst_31 {dimension_numbers = #tpu.dot_dimension_numbers<[1], [0], [0], [1], [0, 0, 1, 1], [], []>} : vector<8x64xbf16>, vector<64x256xbf16>, vector<8x256xf32> -> vector<8x256xf32>
    %48 = vector.extract_strided_slice %47 {offsets = [0, 0], sizes = [8, 16], strides = [1, 1]} : vector<8x256xf32> to vector<8x16xf32>
    %c0_32 = arith.constant 0 : index
    %c0_33 = arith.constant 0 : index
    %49 = vector.load %arg22[%c0_32, %c0_33] : memref<128x16xf32, #tpu.memory_space<vmem>>, vector<8x16xf32>
    tpu.vector_store %arg22[%c0_32, %c0_33], %48 {strides = array<i32>} : memref<128x16xf32, #tpu.memory_space<vmem>>, vector<8x16xf32>,
    %50 = vector.extract_strided_slice %47 {offsets = [0, 16], sizes = [8, 16], strides = [1, 1]} : vector<8x256xf32> to vector<8x16xf32>
    %c8_34 = arith.constant 8 : index
    %c0_35 = arith.constant 0 : index
    %51 = vector.load %arg22[%c8_34, %c0_35] : memref<128x16xf32, #tpu.memory_space<vmem>>, vector<8x16xf32>
    tpu.vector_store %arg22[%c8_34, %c0_35], %50 {strides = array<i32>} : memref<128x16xf32, #tpu.memory_space<vmem>>, vector<8x16xf32>,
    %52 = vector.extract_strided_slice %47 {offsets = [0, 32], sizes = [8, 16], strides = [1, 1]} : vector<8x256xf32> to vector<8x16xf32>
    %c16_36 = arith.constant 16 : index
    %c0_37 = arith.constant 0 : index
    %53 = vector.load %arg22[%c16_36, %c0_37] : memref<128x16xf32, #tpu.memory_space<vmem>>, vector<8x16xf32>
    tpu.vector_store %arg22[%c16_36, %c0_37], %52 {strides = array<i32>} : memref<128x16xf32, #tpu.memory_space<vmem>>, vector<8x16xf32>,
    %54 = vector.extract_strided_slice %47 {offsets = [0, 48], sizes = [8, 16], strides = [1, 1]} : vector<8x256xf32> to vector<8x16xf32>
    %c24_38 = arith.constant 24 : index
    %c0_39 = arith.constant 0 : index
    %55 = vector.load %arg22[%c24_38, %c0_39] : memref<128x16xf32, #tpu.memory_space<vmem>>, vector<8x16xf32>
    tpu.vector_store %arg22[%c24_38, %c0_39], %54 {strides = array<i32>} : memref<128x16xf32, #tpu.memory_space<vmem>>, vector<8x16xf32>,
    %56 = vector.extract_strided_slice %47 {offsets = [0, 64], sizes = [8, 16], strides = [1, 1]} : vector<8x256xf32> to vector<8x16xf32>
    %c32_40 = arith.constant 32 : index
    %c0_41 = arith.constant 0 : index
    %57 = vector.load %arg22[%c32_40, %c0_41] : memref<128x16xf32, #tpu.memory_space<vmem>>, vector<8x16xf32>
    tpu.vector_store %arg22[%c32_40, %c0_41], %56 {strides = array<i32>} : memref<128x16xf32, #tpu.memory_space<vmem>>, vector<8x16xf32>,
    %58 = vector.extract_strided_slice %47 {offsets = [0, 80], sizes = [8, 16], strides = [1, 1]} : vector<8x256xf32> to vector<8x16xf32>
    %c40_42 = arith.constant 40 : index
    %c0_43 = arith.constant 0 : index
    %59 = vector.load %arg22[%c40_42, %c0_43] : memref<128x16xf32, #tpu.memory_space<vmem>>, vector<8x16xf32>
    tpu.vector_store %arg22[%c40_42, %c0_43], %58 {strides = array<i32>} : memref<128x16xf32, #tpu.memory_space<vmem>>, vector<8x16xf32>,
    %60 = vector.extract_strided_slice %47 {offsets = [0, 96], sizes = [8, 16], strides = [1, 1]} : vector<8x256xf32> to vector<8x16xf32>
    %c48_44 = arith.constant 48 : index
    %c0_45 = arith.constant 0 : index
    %61 = vector.load %arg22[%c48_44, %c0_45] : memref<128x16xf32, #tpu.memory_space<vmem>>, vector<8x16xf32>
    tpu.vector_store %arg22[%c48_44, %c0_45], %60 {strides = array<i32>} : memref<128x16xf32, #tpu.memory_space<vmem>>, vector<8x16xf32>,
    %62 = vector.extract_strided_slice %47 {offsets = [0, 112], sizes = [8, 16], strides = [1, 1]} : vector<8x256xf32> to vector<8x16xf32>
    %c56_46 = arith.constant 56 : index
    %c0_47 = arith.constant 0 : index
    %63 = vector.load %arg22[%c56_46, %c0_47] : memref<128x16xf32, #tpu.memory_space<vmem>>, vector<8x16xf32>
    tpu.vector_store %arg22[%c56_46, %c0_47], %62 {strides = array<i32>} : memref<128x16xf32, #tpu.memory_space<vmem>>, vector<8x16xf32>,
    %64 = vector.extract_strided_slice %47 {offsets = [0, 128], sizes = [8, 16], strides = [1, 1]} : vector<8x256xf32> to vector<8x16xf32>
    %c64_48 = arith.constant 64 : index
    %c0_49 = arith.constant 0 : index
    %65 = vector.load %arg22[%c64_48, %c0_49] : memref<128x16xf32, #tpu.memory_space<vmem>>, vector<8x16xf32>
    tpu.vector_store %arg22[%c64_48, %c0_49], %64 {strides = array<i32>} : memref<128x16xf32, #tpu.memory_space<vmem>>, vector<8x16xf32>,
    %66 = vector.extract_strided_slice %47 {offsets = [0, 144], sizes = [8, 16], strides = [1, 1]} : vector<8x256xf32> to vector<8x16xf32>
    %c72_50 = arith.constant 72 : index
    %c0_51 = arith.constant 0 : index
    %67 = vector.load %arg22[%c72_50, %c0_51] : memref<128x16xf32, #tpu.memory_space<vmem>>, vector<8x16xf32>
    tpu.vector_store %arg22[%c72_50, %c0_51], %66 {strides = array<i32>} : memref<128x16xf32, #tpu.memory_space<vmem>>, vector<8x16xf32>,
    %68 = vector.extract_strided_slice %47 {offsets = [0, 160], sizes = [8, 16], strides = [1, 1]} : vector<8x256xf32> to vector<8x16xf32>
    %c80_52 = arith.constant 80 : index
    %c0_53 = arith.constant 0 : index
    %69 = vector.load %arg22[%c80_52, %c0_53] : memref<128x16xf32, #tpu.memory_space<vmem>>, vector<8x16xf32>
    tpu.vector_store %arg22[%c80_52, %c0_53], %68 {strides = array<i32>} : memref<128x16xf32, #tpu.memory_space<vmem>>, vector<8x16xf32>,
    %70 = vector.extract_strided_slice %47 {offsets = [0, 176], sizes = [8, 16], strides = [1, 1]} : vector<8x256xf32> to vector<8x16xf32>
    %c88_54 = arith.constant 88 : index
    %c0_55 = arith.constant 0 : index
    %71 = vector.load %arg22[%c88_54, %c0_55] : memref<128x16xf32, #tpu.memory_space<vmem>>, vector<8x16xf32>
    tpu.vector_store %arg22[%c88_54, %c0_55], %70 {strides = array<i32>} : memref<128x16xf32, #tpu.memory_space<vmem>>, vector<8x16xf32>,
    %72 = vector.extract_strided_slice %47 {offsets = [0, 192], sizes = [8, 16], strides = [1, 1]} : vector<8x256xf32> to vector<8x16xf32>
    %c96_56 = arith.constant 96 : index
    %c0_57 = arith.constant 0 : index
    %73 = vector.load %arg22[%c96_56, %c0_57] : memref<128x16xf32, #tpu.memory_space<vmem>>, vector<8x16xf32>
    tpu.vector_store %arg22[%c96_56, %c0_57], %72 {strides = array<i32>} : memref<128x16xf32, #tpu.memory_space<vmem>>, vector<8x16xf32>,
    %74 = vector.extract_strided_slice %47 {offsets = [0, 208], sizes = [8, 16], strides = [1, 1]} : vector<8x256xf32> to vector<8x16xf32>
    %c104_58 = arith.constant 104 : index
    %c0_59 = arith.constant 0 : index
    %75 = vector.load %arg22[%c104_58, %c0_59] : memref<128x16xf32, #tpu.memory_space<vmem>>, vector<8x16xf32>
    tpu.vector_store %arg22[%c104_58, %c0_59], %74 {strides = array<i32>} : memref<128x16xf32, #tpu.memory_space<vmem>>, vector<8x16xf32>,
    %76 = vector.extract_strided_slice %47 {offsets = [0, 224], sizes = [8, 16], strides = [1, 1]} : vector<8x256xf32> to vector<8x16xf32>
    %c112_60 = arith.constant 112 : index
    %c0_61 = arith.constant 0 : index
    %77 = vector.load %arg22[%c112_60, %c0_61] : memref<128x16xf32, #tpu.memory_space<vmem>>, vector<8x16xf32>
    tpu.vector_store %arg22[%c112_60, %c0_61], %76 {strides = array<i32>} : memref<128x16xf32, #tpu.memory_space<vmem>>, vector<8x16xf32>,
    %78 = vector.extract_strided_slice %47 {offsets = [0, 240], sizes = [8, 16], strides = [1, 1]} : vector<8x256xf32> to vector<8x16xf32>
    %c120_62 = arith.constant 120 : index
    %c0_63 = arith.constant 0 : index
    %79 = vector.load %arg22[%c120_62, %c0_63] : memref<128x16xf32, #tpu.memory_space<vmem>>, vector<8x16xf32>
    tpu.vector_store %arg22[%c120_62, %c0_63], %78 {strides = array<i32>} : memref<128x16xf32, #tpu.memory_space<vmem>>, vector<8x16xf32>,
    %c0_64 = arith.constant 0 : index
    %c0_65 = arith.constant 0 : index
    %80 = vector.load %arg6[%c0_64, %c0_65] : memref<16x128xbf16, #tpu.memory_space<vmem>>, vector<16x128xbf16>
    %c0_66 = arith.constant 0 : index
    %c0_67 = arith.constant 0 : index
    %81 = vector.load %arg22[%c0_66, %c0_67] : memref<128x16xf32, #tpu.memory_space<vmem>>, vector<128x16xf32>
    %82 = arith.truncf %81 : vector<128x16xf32> to vector<128x16xbf16>
    %cst_68 = arith.constant dense<0.000000e+00> : vector<16x16xf32>
    %83 = tpu.matmul %80, %82, %cst_68 {dimension_numbers = #tpu.dot_dimension_numbers<[1], [0], [0], [1], [0, 0, 1, 1], [], []>} : vector<16x128xbf16>, vector<128x16xbf16>, vector<16x16xf32> -> vector<16x16xf32>
    %c0_69 = arith.constant 0 : index
    %c0_70 = arith.constant 0 : index
    %84 = vector.load %arg7[%c0_69, %c0_70] : memref<16x1xf32, #tpu.memory_space<vmem>>, vector<16x1xf32>
    %85 = vector.broadcast %84 : vector<16x1xf32> to vector<16x16xf32>
    %86 = arith.addf %83, %85 : vector<16x16xf32>
    %cst_71 = arith.constant 0.000000e+00 : f32
    %87 = vector.broadcast %cst_71 : f32 to vector<16x16xf32>
    %88 = arith.maximumf %86, %87 : vector<16x16xf32>
    %89 = vector.extract_strided_slice %88 {offsets = [0, 0], sizes = [1, 16], strides = [1, 1]} : vector<16x16xf32> to vector<1x16xf32>
    %c0_72 = arith.constant 0 : index
    %c0_73 = arith.constant 0 : index
    %90 = vector.load %arg23[%c0_72, %c0_73] : memref<1x256xf32, #tpu.memory_space<vmem>>, vector<1x16xf32>
    tpu.vector_store %arg23[%c0_72, %c0_73], %89 {strides = array<i32>} : memref<1x256xf32, #tpu.memory_space<vmem>>, vector<1x16xf32>,
    %91 = vector.extract_strided_slice %88 {offsets = [1, 0], sizes = [1, 16], strides = [1, 1]} : vector<16x16xf32> to vector<1x16xf32>
    %c0_74 = arith.constant 0 : index
    %c16_75 = arith.constant 16 : index
    %92 = vector.load %arg23[%c0_74, %c16_75] : memref<1x256xf32, #tpu.memory_space<vmem>>, vector<1x16xf32>
    tpu.vector_store %arg23[%c0_74, %c16_75], %91 {strides = array<i32>} : memref<1x256xf32, #tpu.memory_space<vmem>>, vector<1x16xf32>,
    %93 = vector.extract_strided_slice %88 {offsets = [2, 0], sizes = [1, 16], strides = [1, 1]} : vector<16x16xf32> to vector<1x16xf32>
    %c0_76 = arith.constant 0 : index
    %c32_77 = arith.constant 32 : index
    %94 = vector.load %arg23[%c0_76, %c32_77] : memref<1x256xf32, #tpu.memory_space<vmem>>, vector<1x16xf32>
    tpu.vector_store %arg23[%c0_76, %c32_77], %93 {strides = array<i32>} : memref<1x256xf32, #tpu.memory_space<vmem>>, vector<1x16xf32>,
    %95 = vector.extract_strided_slice %88 {offsets = [3, 0], sizes = [1, 16], strides = [1, 1]} : vector<16x16xf32> to vector<1x16xf32>
    %c0_78 = arith.constant 0 : index
    %c48_79 = arith.constant 48 : index
    %96 = vector.load %arg23[%c0_78, %c48_79] : memref<1x256xf32, #tpu.memory_space<vmem>>, vector<1x16xf32>
    tpu.vector_store %arg23[%c0_78, %c48_79], %95 {strides = array<i32>} : memref<1x256xf32, #tpu.memory_space<vmem>>, vector<1x16xf32>,
    %97 = vector.extract_strided_slice %88 {offsets = [4, 0], sizes = [1, 16], strides = [1, 1]} : vector<16x16xf32> to vector<1x16xf32>
    %c0_80 = arith.constant 0 : index
    %c64_81 = arith.constant 64 : index
    %98 = vector.load %arg23[%c0_80, %c64_81] : memref<1x256xf32, #tpu.memory_space<vmem>>, vector<1x16xf32>
    tpu.vector_store %arg23[%c0_80, %c64_81], %97 {strides = array<i32>} : memref<1x256xf32, #tpu.memory_space<vmem>>, vector<1x16xf32>,
    %99 = vector.extract_strided_slice %88 {offsets = [5, 0], sizes = [1, 16], strides = [1, 1]} : vector<16x16xf32> to vector<1x16xf32>
    %c0_82 = arith.constant 0 : index
    %c80_83 = arith.constant 80 : index
    %100 = vector.load %arg23[%c0_82, %c80_83] : memref<1x256xf32, #tpu.memory_space<vmem>>, vector<1x16xf32>
    tpu.vector_store %arg23[%c0_82, %c80_83], %99 {strides = array<i32>} : memref<1x256xf32, #tpu.memory_space<vmem>>, vector<1x16xf32>,
    %101 = vector.extract_strided_slice %88 {offsets = [6, 0], sizes = [1, 16], strides = [1, 1]} : vector<16x16xf32> to vector<1x16xf32>
    %c0_84 = arith.constant 0 : index
    %c96_85 = arith.constant 96 : index
    %102 = vector.load %arg23[%c0_84, %c96_85] : memref<1x256xf32, #tpu.memory_space<vmem>>, vector<1x16xf32>
    tpu.vector_store %arg23[%c0_84, %c96_85], %101 {strides = array<i32>} : memref<1x256xf32, #tpu.memory_space<vmem>>, vector<1x16xf32>,
    %103 = vector.extract_strided_slice %88 {offsets = [7, 0], sizes = [1, 16], strides = [1, 1]} : vector<16x16xf32> to vector<1x16xf32>
    %c0_86 = arith.constant 0 : index
    %c112_87 = arith.constant 112 : index
    %104 = vector.load %arg23[%c0_86, %c112_87] : memref<1x256xf32, #tpu.memory_space<vmem>>, vector<1x16xf32>
    tpu.vector_store %arg23[%c0_86, %c112_87], %103 {strides = array<i32>} : memref<1x256xf32, #tpu.memory_space<vmem>>, vector<1x16xf32>,
    %105 = vector.extract_strided_slice %88 {offsets = [8, 0], sizes = [1, 16], strides = [1, 1]} : vector<16x16xf32> to vector<1x16xf32>
    %c0_88 = arith.constant 0 : index
    %c128 = arith.constant 128 : index
    %106 = vector.load %arg23[%c0_88, %c128] : memref<1x256xf32, #tpu.memory_space<vmem>>, vector<1x16xf32>
    tpu.vector_store %arg23[%c0_88, %c128], %105 {strides = array<i32>} : memref<1x256xf32, #tpu.memory_space<vmem>>, vector<1x16xf32>,
    %107 = vector.extract_strided_slice %88 {offsets = [9, 0], sizes = [1, 16], strides = [1, 1]} : vector<16x16xf32> to vector<1x16xf32>
    %c0_89 = arith.constant 0 : index
    %c144 = arith.constant 144 : index
    %108 = vector.load %arg23[%c0_89, %c144] : memref<1x256xf32, #tpu.memory_space<vmem>>, vector<1x16xf32>
    tpu.vector_store %arg23[%c0_89, %c144], %107 {strides = array<i32>} : memref<1x256xf32, #tpu.memory_space<vmem>>, vector<1x16xf32>,
    %109 = vector.extract_strided_slice %88 {offsets = [10, 0], sizes = [1, 16], strides = [1, 1]} : vector<16x16xf32> to vector<1x16xf32>
    %c0_90 = arith.constant 0 : index
    %c160 = arith.constant 160 : index
    %110 = vector.load %arg23[%c0_90, %c160] : memref<1x256xf32, #tpu.memory_space<vmem>>, vector<1x16xf32>
    tpu.vector_store %arg23[%c0_90, %c160], %109 {strides = array<i32>} : memref<1x256xf32, #tpu.memory_space<vmem>>, vector<1x16xf32>,
    %111 = vector.extract_strided_slice %88 {offsets = [11, 0], sizes = [1, 16], strides = [1, 1]} : vector<16x16xf32> to vector<1x16xf32>
    %c0_91 = arith.constant 0 : index
    %c176 = arith.constant 176 : index
    %112 = vector.load %arg23[%c0_91, %c176] : memref<1x256xf32, #tpu.memory_space<vmem>>, vector<1x16xf32>
    tpu.vector_store %arg23[%c0_91, %c176], %111 {strides = array<i32>} : memref<1x256xf32, #tpu.memory_space<vmem>>, vector<1x16xf32>,
    %113 = vector.extract_strided_slice %88 {offsets = [12, 0], sizes = [1, 16], strides = [1, 1]} : vector<16x16xf32> to vector<1x16xf32>
    %c0_92 = arith.constant 0 : index
    %c192 = arith.constant 192 : index
    %114 = vector.load %arg23[%c0_92, %c192] : memref<1x256xf32, #tpu.memory_space<vmem>>, vector<1x16xf32>
    tpu.vector_store %arg23[%c0_92, %c192], %113 {strides = array<i32>} : memref<1x256xf32, #tpu.memory_space<vmem>>, vector<1x16xf32>,
    %115 = vector.extract_strided_slice %88 {offsets = [13, 0], sizes = [1, 16], strides = [1, 1]} : vector<16x16xf32> to vector<1x16xf32>
    %c0_93 = arith.constant 0 : index
    %c208 = arith.constant 208 : index
    %116 = vector.load %arg23[%c0_93, %c208] : memref<1x256xf32, #tpu.memory_space<vmem>>, vector<1x16xf32>
    tpu.vector_store %arg23[%c0_93, %c208], %115 {strides = array<i32>} : memref<1x256xf32, #tpu.memory_space<vmem>>, vector<1x16xf32>,
    %117 = vector.extract_strided_slice %88 {offsets = [14, 0], sizes = [1, 16], strides = [1, 1]} : vector<16x16xf32> to vector<1x16xf32>
    %c0_94 = arith.constant 0 : index
    %c224 = arith.constant 224 : index
    %118 = vector.load %arg23[%c0_94, %c224] : memref<1x256xf32, #tpu.memory_space<vmem>>, vector<1x16xf32>
    tpu.vector_store %arg23[%c0_94, %c224], %117 {strides = array<i32>} : memref<1x256xf32, #tpu.memory_space<vmem>>, vector<1x16xf32>,
    %119 = vector.extract_strided_slice %88 {offsets = [15, 0], sizes = [1, 16], strides = [1, 1]} : vector<16x16xf32> to vector<1x16xf32>
    %c0_95 = arith.constant 0 : index
    %c240 = arith.constant 240 : index
    %120 = vector.load %arg23[%c0_95, %c240] : memref<1x256xf32, #tpu.memory_space<vmem>>, vector<1x16xf32>
    tpu.vector_store %arg23[%c0_95, %c240], %119 {strides = array<i32>} : memref<1x256xf32, #tpu.memory_space<vmem>>, vector<1x16xf32>,
    %c0_96 = arith.constant 0 : index
    %c0_97 = arith.constant 0 : index
    %121 = vector.load %arg23[%c0_96, %c0_97] : memref<1x256xf32, #tpu.memory_space<vmem>>, vector<1x256xf32>
    %122 = arith.truncf %121 : vector<1x256xf32> to vector<1x256xbf16>
    %c0_98 = arith.constant 0 : index
    %c0_99 = arith.constant 0 : index
    %123 = vector.load %arg9[%c0_98, %c0_99] : memref<256x64xbf16, #tpu.memory_space<vmem>>, vector<256x64xbf16>
    %cst_100 = arith.constant dense<0.000000e+00> : vector<1x64xf32>
    %124 = tpu.matmul %122, %123, %cst_100 {dimension_numbers = #tpu.dot_dimension_numbers<[1], [0], [0], [1], [0, 0, 1, 1], [], []>} : vector<1x256xbf16>, vector<256x64xbf16>, vector<1x64xf32> -> vector<1x64xf32>
    %c0_101 = arith.constant 0 : index
    %c0_102 = arith.constant 0 : index
    %125 = vector.load %arg10[%c0_101, %c0_102] : memref<1x64xf32, #tpu.memory_space<vmem>>, vector<1x64xf32>
    %126 = arith.addf %124, %125 : vector<1x64xf32>
    %c0_103 = arith.constant 0 : index
    %c0_104 = arith.constant 0 : index
    %c0_105 = arith.constant 0 : index
    %127 = vector.load %arg20[%c0_103, %c0_104, %c0_105] : memref<1x1x64xf32, #tpu.memory_space<vmem>>, vector<1x1x64xf32>
    %128 = vector.shape_cast %127 : vector<1x1x64xf32> to vector<1x64xf32>
    %129 = vector.shape_cast %126 : vector<1x64xf32> to vector<1x1x64xf32>
    tpu.vector_store %arg20[%c0_103, %c0_104, %c0_105], %129 {strides = array<i32>} : memref<1x1x64xf32, #tpu.memory_space<vmem>>, vector<1x1x64xf32>,
    %130 = vector.extract_strided_slice %126 {offsets = [0, 0], sizes = [1, 32], strides = [1, 1]} : vector<1x64xf32> to vector<1x32xf32>
    %131 = vector.extract_strided_slice %126 {offsets = [0, 32], sizes = [1, 32], strides = [1, 1]} : vector<1x64xf32> to vector<1x32xf32>
    %c0_106 = arith.constant 0 : index
    %c0_107 = arith.constant 0 : index
    %c0_108 = arith.constant 0 : index
    %132 = vector.load %arg2[%c0_106, %c0_107, %c0_108] : memref<1x1x32xf32, #tpu.memory_space<vmem>>, vector<1x1x32xf32>
    %133 = vector.shape_cast %132 : vector<1x1x32xf32> to vector<1x32xf32>
    %cst_109 = arith.constant 5.000000e-01 : f32
    %134 = vector.broadcast %cst_109 : f32 to vector<1x32xf32>
    %135 = arith.mulf %134, %131 : vector<1x32xf32>
    %136 = math.exp %135 : vector<1x32xf32>
    %137 = arith.mulf %133, %136 : vector<1x32xf32>
    %138 = arith.addf %130, %137 : vector<1x32xf32>
    %139 = arith.truncf %138 : vector<1x32xf32> to vector<1x32xbf16>
    %c0_110 = arith.constant 0 : index
    %c0_111 = arith.constant 0 : index
    %140 = vector.load %arg11[%c0_110, %c0_111] : memref<32x256xbf16, #tpu.memory_space<vmem>>, vector<32x256xbf16>
    %cst_112 = arith.constant dense<0.000000e+00> : vector<1x256xf32>
    %141 = tpu.matmul %139, %140, %cst_112 {dimension_numbers = #tpu.dot_dimension_numbers<[1], [0], [0], [1], [0, 0, 1, 1], [], []>} : vector<1x32xbf16>, vector<32x256xbf16>, vector<1x256xf32> -> vector<1x256xf32>
    %c0_113 = arith.constant 0 : index
    %c0_114 = arith.constant 0 : index
    %142 = vector.load %arg12[%c0_113, %c0_114] : memref<1x256xf32, #tpu.memory_space<vmem>>, vector<1x256xf32>
    %143 = arith.addf %141, %142 : vector<1x256xf32>
    %144 = vector.extract_strided_slice %143 {offsets = [0, 0], sizes = [1, 16], strides = [1, 1]} : vector<1x256xf32> to vector<1x16xf32>
    %c0_115 = arith.constant 0 : index
    %c0_116 = arith.constant 0 : index
    %145 = vector.load %arg24[%c0_115, %c0_116] : memref<16x16xf32, #tpu.memory_space<vmem>>, vector<1x16xf32>
    tpu.vector_store %arg24[%c0_115, %c0_116], %144 {strides = array<i32>} : memref<16x16xf32, #tpu.memory_space<vmem>>, vector<1x16xf32>,
    %146 = vector.extract_strided_slice %143 {offsets = [0, 16], sizes = [1, 16], strides = [1, 1]} : vector<1x256xf32> to vector<1x16xf32>
    %c1 = arith.constant 1 : index
    %c0_117 = arith.constant 0 : index
    %147 = vector.load %arg24[%c1, %c0_117] : memref<16x16xf32, #tpu.memory_space<vmem>>, vector<1x16xf32>
    tpu.vector_store %arg24[%c1, %c0_117], %146 {strides = array<i32>} : memref<16x16xf32, #tpu.memory_space<vmem>>, vector<1x16xf32>,
    %148 = vector.extract_strided_slice %143 {offsets = [0, 32], sizes = [1, 16], strides = [1, 1]} : vector<1x256xf32> to vector<1x16xf32>
    %c2 = arith.constant 2 : index
    %c0_118 = arith.constant 0 : index
    %149 = vector.load %arg24[%c2, %c0_118] : memref<16x16xf32, #tpu.memory_space<vmem>>, vector<1x16xf32>
    tpu.vector_store %arg24[%c2, %c0_118], %148 {strides = array<i32>} : memref<16x16xf32, #tpu.memory_space<vmem>>, vector<1x16xf32>,
    %150 = vector.extract_strided_slice %143 {offsets = [0, 48], sizes = [1, 16], strides = [1, 1]} : vector<1x256xf32> to vector<1x16xf32>
    %c3 = arith.constant 3 : index
    %c0_119 = arith.constant 0 : index
    %151 = vector.load %arg24[%c3, %c0_119] : memref<16x16xf32, #tpu.memory_space<vmem>>, vector<1x16xf32>
    tpu.vector_store %arg24[%c3, %c0_119], %150 {strides = array<i32>} : memref<16x16xf32, #tpu.memory_space<vmem>>, vector<1x16xf32>,
    %152 = vector.extract_strided_slice %143 {offsets = [0, 64], sizes = [1, 16], strides = [1, 1]} : vector<1x256xf32> to vector<1x16xf32>
    %c4 = arith.constant 4 : index
    %c0_120 = arith.constant 0 : index
    %153 = vector.load %arg24[%c4, %c0_120] : memref<16x16xf32, #tpu.memory_space<vmem>>, vector<1x16xf32>
    tpu.vector_store %arg24[%c4, %c0_120], %152 {strides = array<i32>} : memref<16x16xf32, #tpu.memory_space<vmem>>, vector<1x16xf32>,
    %154 = vector.extract_strided_slice %143 {offsets = [0, 80], sizes = [1, 16], strides = [1, 1]} : vector<1x256xf32> to vector<1x16xf32>
    %c5 = arith.constant 5 : index
    %c0_121 = arith.constant 0 : index
    %155 = vector.load %arg24[%c5, %c0_121] : memref<16x16xf32, #tpu.memory_space<vmem>>, vector<1x16xf32>
    tpu.vector_store %arg24[%c5, %c0_121], %154 {strides = array<i32>} : memref<16x16xf32, #tpu.memory_space<vmem>>, vector<1x16xf32>,
    %156 = vector.extract_strided_slice %143 {offsets = [0, 96], sizes = [1, 16], strides = [1, 1]} : vector<1x256xf32> to vector<1x16xf32>
    %c6 = arith.constant 6 : index
    %c0_122 = arith.constant 0 : index
    %157 = vector.load %arg24[%c6, %c0_122] : memref<16x16xf32, #tpu.memory_space<vmem>>, vector<1x16xf32>
    tpu.vector_store %arg24[%c6, %c0_122], %156 {strides = array<i32>} : memref<16x16xf32, #tpu.memory_space<vmem>>, vector<1x16xf32>,
    %158 = vector.extract_strided_slice %143 {offsets = [0, 112], sizes = [1, 16], strides = [1, 1]} : vector<1x256xf32> to vector<1x16xf32>
    %c7 = arith.constant 7 : index
    %c0_123 = arith.constant 0 : index
    %159 = vector.load %arg24[%c7, %c0_123] : memref<16x16xf32, #tpu.memory_space<vmem>>, vector<1x16xf32>
    tpu.vector_store %arg24[%c7, %c0_123], %158 {strides = array<i32>} : memref<16x16xf32, #tpu.memory_space<vmem>>, vector<1x16xf32>,
    %160 = vector.extract_strided_slice %143 {offsets = [0, 128], sizes = [1, 16], strides = [1, 1]} : vector<1x256xf32> to vector<1x16xf32>
    %c8_124 = arith.constant 8 : index
    %c0_125 = arith.constant 0 : index
    %161 = vector.load %arg24[%c8_124, %c0_125] : memref<16x16xf32, #tpu.memory_space<vmem>>, vector<1x16xf32>
    tpu.vector_store %arg24[%c8_124, %c0_125], %160 {strides = array<i32>} : memref<16x16xf32, #tpu.memory_space<vmem>>, vector<1x16xf32>,
    %162 = vector.extract_strided_slice %143 {offsets = [0, 144], sizes = [1, 16], strides = [1, 1]} : vector<1x256xf32> to vector<1x16xf32>
    %c9 = arith.constant 9 : index
    %c0_126 = arith.constant 0 : index
    %163 = vector.load %arg24[%c9, %c0_126] : memref<16x16xf32, #tpu.memory_space<vmem>>, vector<1x16xf32>
    tpu.vector_store %arg24[%c9, %c0_126], %162 {strides = array<i32>} : memref<16x16xf32, #tpu.memory_space<vmem>>, vector<1x16xf32>,
    %164 = vector.extract_strided_slice %143 {offsets = [0, 160], sizes = [1, 16], strides = [1, 1]} : vector<1x256xf32> to vector<1x16xf32>
    %c10 = arith.constant 10 : index
    %c0_127 = arith.constant 0 : index
    %165 = vector.load %arg24[%c10, %c0_127] : memref<16x16xf32, #tpu.memory_space<vmem>>, vector<1x16xf32>
    tpu.vector_store %arg24[%c10, %c0_127], %164 {strides = array<i32>} : memref<16x16xf32, #tpu.memory_space<vmem>>, vector<1x16xf32>,
    %166 = vector.extract_strided_slice %143 {offsets = [0, 176], sizes = [1, 16], strides = [1, 1]} : vector<1x256xf32> to vector<1x16xf32>
    %c11 = arith.constant 11 : index
    %c0_128 = arith.constant 0 : index
    %167 = vector.load %arg24[%c11, %c0_128] : memref<16x16xf32, #tpu.memory_space<vmem>>, vector<1x16xf32>
    tpu.vector_store %arg24[%c11, %c0_128], %166 {strides = array<i32>} : memref<16x16xf32, #tpu.memory_space<vmem>>, vector<1x16xf32>,
    %168 = vector.extract_strided_slice %143 {offsets = [0, 192], sizes = [1, 16], strides = [1, 1]} : vector<1x256xf32> to vector<1x16xf32>
    %c12 = arith.constant 12 : index
    %c0_129 = arith.constant 0 : index
    %169 = vector.load %arg24[%c12, %c0_129] : memref<16x16xf32, #tpu.memory_space<vmem>>, vector<1x16xf32>
    tpu.vector_store %arg24[%c12, %c0_129], %168 {strides = array<i32>} : memref<16x16xf32, #tpu.memory_space<vmem>>, vector<1x16xf32>,
    %170 = vector.extract_strided_slice %143 {offsets = [0, 208], sizes = [1, 16], strides = [1, 1]} : vector<1x256xf32> to vector<1x16xf32>
    %c13 = arith.constant 13 : index
    %c0_130 = arith.constant 0 : index
    %171 = vector.load %arg24[%c13, %c0_130] : memref<16x16xf32, #tpu.memory_space<vmem>>, vector<1x16xf32>
    tpu.vector_store %arg24[%c13, %c0_130], %170 {strides = array<i32>} : memref<16x16xf32, #tpu.memory_space<vmem>>, vector<1x16xf32>,
    %172 = vector.extract_strided_slice %143 {offsets = [0, 224], sizes = [1, 16], strides = [1, 1]} : vector<1x256xf32> to vector<1x16xf32>
    %c14 = arith.constant 14 : index
    %c0_131 = arith.constant 0 : index
    %173 = vector.load %arg24[%c14, %c0_131] : memref<16x16xf32, #tpu.memory_space<vmem>>, vector<1x16xf32>
    tpu.vector_store %arg24[%c14, %c0_131], %172 {strides = array<i32>} : memref<16x16xf32, #tpu.memory_space<vmem>>, vector<1x16xf32>,
    %174 = vector.extract_strided_slice %143 {offsets = [0, 240], sizes = [1, 16], strides = [1, 1]} : vector<1x256xf32> to vector<1x16xf32>
    %c15 = arith.constant 15 : index
    %c0_132 = arith.constant 0 : index
    %175 = vector.load %arg24[%c15, %c0_132] : memref<16x16xf32, #tpu.memory_space<vmem>>, vector<1x16xf32>
    tpu.vector_store %arg24[%c15, %c0_132], %174 {strides = array<i32>} : memref<16x16xf32, #tpu.memory_space<vmem>>, vector<1x16xf32>,
    %c0_133 = arith.constant 0 : index
    %c0_134 = arith.constant 0 : index
    %176 = vector.load %arg24[%c0_133, %c0_134] : memref<16x16xf32, #tpu.memory_space<vmem>>, vector<16x16xf32>
    %177 = arith.truncf %176 : vector<16x16xf32> to vector<16x16xbf16>
    %c0_135 = arith.constant 0 : index
    %c0_136 = arith.constant 0 : index
    %178 = vector.load %arg15[%c0_135, %c0_136] : memref<16x1024xbf16, #tpu.memory_space<vmem>>, vector<16x1024xbf16>
    %cst_137 = arith.constant dense<0.000000e+00> : vector<16x1024xf32>
    %179 = tpu.matmul %177, %178, %cst_137 {dimension_numbers = #tpu.dot_dimension_numbers<[1], [0], [0], [1], [0, 0, 1, 1], [], []>} : vector<16x16xbf16>, vector<16x1024xbf16>, vector<16x1024xf32> -> vector<16x1024xf32>
    %180 = vector.extract_strided_slice %179 {offsets = [0, 0], sizes = [16, 64], strides = [1, 1]} : vector<16x1024xf32> to vector<16x64xf32>
    %c0_138 = arith.constant 0 : index
    %c0_139 = arith.constant 0 : index
    %181 = vector.load %arg25[%c0_138, %c0_139] : memref<256x64xf32, #tpu.memory_space<vmem>>, vector<16x64xf32>
    tpu.vector_store %arg25[%c0_138, %c0_139], %180 {strides = array<i32>} : memref<256x64xf32, #tpu.memory_space<vmem>>, vector<16x64xf32>,
    %182 = vector.extract_strided_slice %179 {offsets = [0, 64], sizes = [16, 64], strides = [1, 1]} : vector<16x1024xf32> to vector<16x64xf32>
    %c16_140 = arith.constant 16 : index
    %c0_141 = arith.constant 0 : index
    %183 = vector.load %arg25[%c16_140, %c0_141] : memref<256x64xf32, #tpu.memory_space<vmem>>, vector<16x64xf32>
    tpu.vector_store %arg25[%c16_140, %c0_141], %182 {strides = array<i32>} : memref<256x64xf32, #tpu.memory_space<vmem>>, vector<16x64xf32>,
    %184 = vector.extract_strided_slice %179 {offsets = [0, 128], sizes = [16, 64], strides = [1, 1]} : vector<16x1024xf32> to vector<16x64xf32>
    %c32_142 = arith.constant 32 : index
    %c0_143 = arith.constant 0 : index
    %185 = vector.load %arg25[%c32_142, %c0_143] : memref<256x64xf32, #tpu.memory_space<vmem>>, vector<16x64xf32>
    tpu.vector_store %arg25[%c32_142, %c0_143], %184 {strides = array<i32>} : memref<256x64xf32, #tpu.memory_space<vmem>>, vector<16x64xf32>,
    %186 = vector.extract_strided_slice %179 {offsets = [0, 192], sizes = [16, 64], strides = [1, 1]} : vector<16x1024xf32> to vector<16x64xf32>
    %c48_144 = arith.constant 48 : index
    %c0_145 = arith.constant 0 : index
    %187 = vector.load %arg25[%c48_144, %c0_145] : memref<256x64xf32, #tpu.memory_space<vmem>>, vector<16x64xf32>
    tpu.vector_store %arg25[%c48_144, %c0_145], %186 {strides = array<i32>} : memref<256x64xf32, #tpu.memory_space<vmem>>, vector<16x64xf32>,
    %188 = vector.extract_strided_slice %179 {offsets = [0, 256], sizes = [16, 64], strides = [1, 1]} : vector<16x1024xf32> to vector<16x64xf32>
    %c64_146 = arith.constant 64 : index
    %c0_147 = arith.constant 0 : index
    %189 = vector.load %arg25[%c64_146, %c0_147] : memref<256x64xf32, #tpu.memory_space<vmem>>, vector<16x64xf32>
    tpu.vector_store %arg25[%c64_146, %c0_147], %188 {strides = array<i32>} : memref<256x64xf32, #tpu.memory_space<vmem>>, vector<16x64xf32>,
    %190 = vector.extract_strided_slice %179 {offsets = [0, 320], sizes = [16, 64], strides = [1, 1]} : vector<16x1024xf32> to vector<16x64xf32>
    %c80_148 = arith.constant 80 : index
    %c0_149 = arith.constant 0 : index
    %191 = vector.load %arg25[%c80_148, %c0_149] : memref<256x64xf32, #tpu.memory_space<vmem>>, vector<16x64xf32>
    tpu.vector_store %arg25[%c80_148, %c0_149], %190 {strides = array<i32>} : memref<256x64xf32, #tpu.memory_space<vmem>>, vector<16x64xf32>,
    %192 = vector.extract_strided_slice %179 {offsets = [0, 384], sizes = [16, 64], strides = [1, 1]} : vector<16x1024xf32> to vector<16x64xf32>
    %c96_150 = arith.constant 96 : index
    %c0_151 = arith.constant 0 : index
    %193 = vector.load %arg25[%c96_150, %c0_151] : memref<256x64xf32, #tpu.memory_space<vmem>>, vector<16x64xf32>
    tpu.vector_store %arg25[%c96_150, %c0_151], %192 {strides = array<i32>} : memref<256x64xf32, #tpu.memory_space<vmem>>, vector<16x64xf32>,
    %194 = vector.extract_strided_slice %179 {offsets = [0, 448], sizes = [16, 64], strides = [1, 1]} : vector<16x1024xf32> to vector<16x64xf32>
    %c112_152 = arith.constant 112 : index
    %c0_153 = arith.constant 0 : index
    %195 = vector.load %arg25[%c112_152, %c0_153] : memref<256x64xf32, #tpu.memory_space<vmem>>, vector<16x64xf32>
    tpu.vector_store %arg25[%c112_152, %c0_153], %194 {strides = array<i32>} : memref<256x64xf32, #tpu.memory_space<vmem>>, vector<16x64xf32>,
    %196 = vector.extract_strided_slice %179 {offsets = [0, 512], sizes = [16, 64], strides = [1, 1]} : vector<16x1024xf32> to vector<16x64xf32>
    %c128_154 = arith.constant 128 : index
    %c0_155 = arith.constant 0 : index
    %197 = vector.load %arg25[%c128_154, %c0_155] : memref<256x64xf32, #tpu.memory_space<vmem>>, vector<16x64xf32>
    tpu.vector_store %arg25[%c128_154, %c0_155], %196 {strides = array<i32>} : memref<256x64xf32, #tpu.memory_space<vmem>>, vector<16x64xf32>,
    %198 = vector.extract_strided_slice %179 {offsets = [0, 576], sizes = [16, 64], strides = [1, 1]} : vector<16x1024xf32> to vector<16x64xf32>
    %c144_156 = arith.constant 144 : index
    %c0_157 = arith.constant 0 : index
    %199 = vector.load %arg25[%c144_156, %c0_157] : memref<256x64xf32, #tpu.memory_space<vmem>>, vector<16x64xf32>
    tpu.vector_store %arg25[%c144_156, %c0_157], %198 {strides = array<i32>} : memref<256x64xf32, #tpu.memory_space<vmem>>, vector<16x64xf32>,
    %200 = vector.extract_strided_slice %179 {offsets = [0, 640], sizes = [16, 64], strides = [1, 1]} : vector<16x1024xf32> to vector<16x64xf32>
    %c160_158 = arith.constant 160 : index
    %c0_159 = arith.constant 0 : index
    %201 = vector.load %arg25[%c160_158, %c0_159] : memref<256x64xf32, #tpu.memory_space<vmem>>, vector<16x64xf32>
    tpu.vector_store %arg25[%c160_158, %c0_159], %200 {strides = array<i32>} : memref<256x64xf32, #tpu.memory_space<vmem>>, vector<16x64xf32>,
    %202 = vector.extract_strided_slice %179 {offsets = [0, 704], sizes = [16, 64], strides = [1, 1]} : vector<16x1024xf32> to vector<16x64xf32>
    %c176_160 = arith.constant 176 : index
    %c0_161 = arith.constant 0 : index
    %203 = vector.load %arg25[%c176_160, %c0_161] : memref<256x64xf32, #tpu.memory_space<vmem>>, vector<16x64xf32>
    tpu.vector_store %arg25[%c176_160, %c0_161], %202 {strides = array<i32>} : memref<256x64xf32, #tpu.memory_space<vmem>>, vector<16x64xf32>,
    %204 = vector.extract_strided_slice %179 {offsets = [0, 768], sizes = [16, 64], strides = [1, 1]} : vector<16x1024xf32> to vector<16x64xf32>
    %c192_162 = arith.constant 192 : index
    %c0_163 = arith.constant 0 : index
    %205 = vector.load %arg25[%c192_162, %c0_163] : memref<256x64xf32, #tpu.memory_space<vmem>>, vector<16x64xf32>
    tpu.vector_store %arg25[%c192_162, %c0_163], %204 {strides = array<i32>} : memref<256x64xf32, #tpu.memory_space<vmem>>, vector<16x64xf32>,
    %206 = vector.extract_strided_slice %179 {offsets = [0, 832], sizes = [16, 64], strides = [1, 1]} : vector<16x1024xf32> to vector<16x64xf32>
    %c208_164 = arith.constant 208 : index
    %c0_165 = arith.constant 0 : index
    %207 = vector.load %arg25[%c208_164, %c0_165] : memref<256x64xf32, #tpu.memory_space<vmem>>, vector<16x64xf32>
    tpu.vector_store %arg25[%c208_164, %c0_165], %206 {strides = array<i32>} : memref<256x64xf32, #tpu.memory_space<vmem>>, vector<16x64xf32>,
    %208 = vector.extract_strided_slice %179 {offsets = [0, 896], sizes = [16, 64], strides = [1, 1]} : vector<16x1024xf32> to vector<16x64xf32>
    %c224_166 = arith.constant 224 : index
    %c0_167 = arith.constant 0 : index
    %209 = vector.load %arg25[%c224_166, %c0_167] : memref<256x64xf32, #tpu.memory_space<vmem>>, vector<16x64xf32>
    tpu.vector_store %arg25[%c224_166, %c0_167], %208 {strides = array<i32>} : memref<256x64xf32, #tpu.memory_space<vmem>>, vector<16x64xf32>,
    %210 = vector.extract_strided_slice %179 {offsets = [0, 960], sizes = [16, 64], strides = [1, 1]} : vector<16x1024xf32> to vector<16x64xf32>
    %c240_168 = arith.constant 240 : index
    %c0_169 = arith.constant 0 : index
    %211 = vector.load %arg25[%c240_168, %c0_169] : memref<256x64xf32, #tpu.memory_space<vmem>>, vector<16x64xf32>
    tpu.vector_store %arg25[%c240_168, %c0_169], %210 {strides = array<i32>} : memref<256x64xf32, #tpu.memory_space<vmem>>, vector<16x64xf32>,
    %c0_170 = arith.constant 0 : index
    %c0_171 = arith.constant 0 : index
    %212 = vector.load %arg13[%c0_170, %c0_171] : memref<8x256xbf16, #tpu.memory_space<vmem>>, vector<8x256xbf16>
    %c0_172 = arith.constant 0 : index
    %c0_173 = arith.constant 0 : index
    %213 = vector.load %arg25[%c0_172, %c0_173] : memref<256x64xf32, #tpu.memory_space<vmem>>, vector<256x64xf32>
    %214 = arith.truncf %213 : vector<256x64xf32> to vector<256x64xbf16>
    %cst_174 = arith.constant dense<0.000000e+00> : vector<8x64xf32>
    %215 = tpu.matmul %212, %214, %cst_174 {dimension_numbers = #tpu.dot_dimension_numbers<[1], [0], [0], [1], [0, 0, 1, 1], [], []>} : vector<8x256xbf16>, vector<256x64xbf16>, vector<8x64xf32> -> vector<8x64xf32>
    %c0_175 = arith.constant 0 : index
    %c0_176 = arith.constant 0 : index
    %216 = vector.load %arg14[%c0_175, %c0_176] : memref<8x1xf32, #tpu.memory_space<vmem>>, vector<8x1xf32>
    %217 = vector.broadcast %216 : vector<8x1xf32> to vector<8x64xf32>
    %218 = arith.addf %215, %217 : vector<8x64xf32>
    %cst_177 = arith.constant 0.000000e+00 : f32
    %219 = vector.broadcast %cst_177 : f32 to vector<8x64xf32>
    %220 = arith.maximumf %218, %219 : vector<8x64xf32>
    %221 = arith.truncf %220 : vector<8x64xf32> to vector<8x64xbf16>
    %c0_178 = arith.constant 0 : index
    %c0_179 = arith.constant 0 : index
    %222 = vector.load %arg18[%c0_178, %c0_179] : memref<64x4096xbf16, #tpu.memory_space<vmem>>, vector<64x4096xbf16>
    %cst_180 = arith.constant dense<0.000000e+00> : vector<8x4096xf32>
    %223 = tpu.matmul %221, %222, %cst_180 {dimension_numbers = #tpu.dot_dimension_numbers<[1], [0], [0], [1], [0, 0, 1, 1], [], []>} : vector<8x64xbf16>, vector<64x4096xbf16>, vector<8x4096xf32> -> vector<8x4096xf32>
    %224 = vector.extract_strided_slice %223 {offsets = [0, 0], sizes = [8, 256], strides = [1, 1]} : vector<8x4096xf32> to vector<8x256xf32>
    %c0_181 = arith.constant 0 : index
    %c0_182 = arith.constant 0 : index
    %225 = vector.load %arg26[%c0_181, %c0_182] : memref<128x256xf32, #tpu.memory_space<vmem>>, vector<8x256xf32>
    tpu.vector_store %arg26[%c0_181, %c0_182], %224 {strides = array<i32>} : memref<128x256xf32, #tpu.memory_space<vmem>>, vector<8x256xf32>,
    %226 = vector.extract_strided_slice %223 {offsets = [0, 256], sizes = [8, 256], strides = [1, 1]} : vector<8x4096xf32> to vector<8x256xf32>
    %c8_183 = arith.constant 8 : index
    %c0_184 = arith.constant 0 : index
    %227 = vector.load %arg26[%c8_183, %c0_184] : memref<128x256xf32, #tpu.memory_space<vmem>>, vector<8x256xf32>
    tpu.vector_store %arg26[%c8_183, %c0_184], %226 {strides = array<i32>} : memref<128x256xf32, #tpu.memory_space<vmem>>, vector<8x256xf32>,
    %228 = vector.extract_strided_slice %223 {offsets = [0, 512], sizes = [8, 256], strides = [1, 1]} : vector<8x4096xf32> to vector<8x256xf32>
    %c16_185 = arith.constant 16 : index
    %c0_186 = arith.constant 0 : index
    %229 = vector.load %arg26[%c16_185, %c0_186] : memref<128x256xf32, #tpu.memory_space<vmem>>, vector<8x256xf32>
    tpu.vector_store %arg26[%c16_185, %c0_186], %228 {strides = array<i32>} : memref<128x256xf32, #tpu.memory_space<vmem>>, vector<8x256xf32>,
    %230 = vector.extract_strided_slice %223 {offsets = [0, 768], sizes = [8, 256], strides = [1, 1]} : vector<8x4096xf32> to vector<8x256xf32>
    %c24_187 = arith.constant 24 : index
    %c0_188 = arith.constant 0 : index
    %231 = vector.load %arg26[%c24_187, %c0_188] : memref<128x256xf32, #tpu.memory_space<vmem>>, vector<8x256xf32>
    tpu.vector_store %arg26[%c24_187, %c0_188], %230 {strides = array<i32>} : memref<128x256xf32, #tpu.memory_space<vmem>>, vector<8x256xf32>,
    %232 = vector.extract_strided_slice %223 {offsets = [0, 1024], sizes = [8, 256], strides = [1, 1]} : vector<8x4096xf32> to vector<8x256xf32>
    %c32_189 = arith.constant 32 : index
    %c0_190 = arith.constant 0 : index
    %233 = vector.load %arg26[%c32_189, %c0_190] : memref<128x256xf32, #tpu.memory_space<vmem>>, vector<8x256xf32>
    tpu.vector_store %arg26[%c32_189, %c0_190], %232 {strides = array<i32>} : memref<128x256xf32, #tpu.memory_space<vmem>>, vector<8x256xf32>,
    %234 = vector.extract_strided_slice %223 {offsets = [0, 1280], sizes = [8, 256], strides = [1, 1]} : vector<8x4096xf32> to vector<8x256xf32>
    %c40_191 = arith.constant 40 : index
    %c0_192 = arith.constant 0 : index
    %235 = vector.load %arg26[%c40_191, %c0_192] : memref<128x256xf32, #tpu.memory_space<vmem>>, vector<8x256xf32>
    tpu.vector_store %arg26[%c40_191, %c0_192], %234 {strides = array<i32>} : memref<128x256xf32, #tpu.memory_space<vmem>>, vector<8x256xf32>,
    %236 = vector.extract_strided_slice %223 {offsets = [0, 1536], sizes = [8, 256], strides = [1, 1]} : vector<8x4096xf32> to vector<8x256xf32>
    %c48_193 = arith.constant 48 : index
    %c0_194 = arith.constant 0 : index
    %237 = vector.load %arg26[%c48_193, %c0_194] : memref<128x256xf32, #tpu.memory_space<vmem>>, vector<8x256xf32>
    tpu.vector_store %arg26[%c48_193, %c0_194], %236 {strides = array<i32>} : memref<128x256xf32, #tpu.memory_space<vmem>>, vector<8x256xf32>,
    %238 = vector.extract_strided_slice %223 {offsets = [0, 1792], sizes = [8, 256], strides = [1, 1]} : vector<8x4096xf32> to vector<8x256xf32>
    %c56_195 = arith.constant 56 : index
    %c0_196 = arith.constant 0 : index
    %239 = vector.load %arg26[%c56_195, %c0_196] : memref<128x256xf32, #tpu.memory_space<vmem>>, vector<8x256xf32>
    tpu.vector_store %arg26[%c56_195, %c0_196], %238 {strides = array<i32>} : memref<128x256xf32, #tpu.memory_space<vmem>>, vector<8x256xf32>,
    %240 = vector.extract_strided_slice %223 {offsets = [0, 2048], sizes = [8, 256], strides = [1, 1]} : vector<8x4096xf32> to vector<8x256xf32>
    %c64_197 = arith.constant 64 : index
    %c0_198 = arith.constant 0 : index
    %241 = vector.load %arg26[%c64_197, %c0_198] : memref<128x256xf32, #tpu.memory_space<vmem>>, vector<8x256xf32>
    tpu.vector_store %arg26[%c64_197, %c0_198], %240 {strides = array<i32>} : memref<128x256xf32, #tpu.memory_space<vmem>>, vector<8x256xf32>,
    %242 = vector.extract_strided_slice %223 {offsets = [0, 2304], sizes = [8, 256], strides = [1, 1]} : vector<8x4096xf32> to vector<8x256xf32>
    %c72_199 = arith.constant 72 : index
    %c0_200 = arith.constant 0 : index
    %243 = vector.load %arg26[%c72_199, %c0_200] : memref<128x256xf32, #tpu.memory_space<vmem>>, vector<8x256xf32>
    tpu.vector_store %arg26[%c72_199, %c0_200], %242 {strides = array<i32>} : memref<128x256xf32, #tpu.memory_space<vmem>>, vector<8x256xf32>,
    %244 = vector.extract_strided_slice %223 {offsets = [0, 2560], sizes = [8, 256], strides = [1, 1]} : vector<8x4096xf32> to vector<8x256xf32>
    %c80_201 = arith.constant 80 : index
    %c0_202 = arith.constant 0 : index
    %245 = vector.load %arg26[%c80_201, %c0_202] : memref<128x256xf32, #tpu.memory_space<vmem>>, vector<8x256xf32>
    tpu.vector_store %arg26[%c80_201, %c0_202], %244 {strides = array<i32>} : memref<128x256xf32, #tpu.memory_space<vmem>>, vector<8x256xf32>,
    %246 = vector.extract_strided_slice %223 {offsets = [0, 2816], sizes = [8, 256], strides = [1, 1]} : vector<8x4096xf32> to vector<8x256xf32>
    %c88_203 = arith.constant 88 : index
    %c0_204 = arith.constant 0 : index
    %247 = vector.load %arg26[%c88_203, %c0_204] : memref<128x256xf32, #tpu.memory_space<vmem>>, vector<8x256xf32>
    tpu.vector_store %arg26[%c88_203, %c0_204], %246 {strides = array<i32>} : memref<128x256xf32, #tpu.memory_space<vmem>>, vector<8x256xf32>,
    %248 = vector.extract_strided_slice %223 {offsets = [0, 3072], sizes = [8, 256], strides = [1, 1]} : vector<8x4096xf32> to vector<8x256xf32>
    %c96_205 = arith.constant 96 : index
    %c0_206 = arith.constant 0 : index
    %249 = vector.load %arg26[%c96_205, %c0_206] : memref<128x256xf32, #tpu.memory_space<vmem>>, vector<8x256xf32>
    tpu.vector_store %arg26[%c96_205, %c0_206], %248 {strides = array<i32>} : memref<128x256xf32, #tpu.memory_space<vmem>>, vector<8x256xf32>,
    %250 = vector.extract_strided_slice %223 {offsets = [0, 3328], sizes = [8, 256], strides = [1, 1]} : vector<8x4096xf32> to vector<8x256xf32>
    %c104_207 = arith.constant 104 : index
    %c0_208 = arith.constant 0 : index
    %251 = vector.load %arg26[%c104_207, %c0_208] : memref<128x256xf32, #tpu.memory_space<vmem>>, vector<8x256xf32>
    tpu.vector_store %arg26[%c104_207, %c0_208], %250 {strides = array<i32>} : memref<128x256xf32, #tpu.memory_space<vmem>>, vector<8x256xf32>,
    %252 = vector.extract_strided_slice %223 {offsets = [0, 3584], sizes = [8, 256], strides = [1, 1]} : vector<8x4096xf32> to vector<8x256xf32>
    %c112_209 = arith.constant 112 : index
    %c0_210 = arith.constant 0 : index
    %253 = vector.load %arg26[%c112_209, %c0_210] : memref<128x256xf32, #tpu.memory_space<vmem>>, vector<8x256xf32>
    tpu.vector_store %arg26[%c112_209, %c0_210], %252 {strides = array<i32>} : memref<128x256xf32, #tpu.memory_space<vmem>>, vector<8x256xf32>,
    %254 = vector.extract_strided_slice %223 {offsets = [0, 3840], sizes = [8, 256], strides = [1, 1]} : vector<8x4096xf32> to vector<8x256xf32>
    %c120_211 = arith.constant 120 : index
    %c0_212 = arith.constant 0 : index
    %255 = vector.load %arg26[%c120_211, %c0_212] : memref<128x256xf32, #tpu.memory_space<vmem>>, vector<8x256xf32>
    tpu.vector_store %arg26[%c120_211, %c0_212], %254 {strides = array<i32>} : memref<128x256xf32, #tpu.memory_space<vmem>>, vector<8x256xf32>,
    %c0_213 = arith.constant 0 : index
    %c0_214 = arith.constant 0 : index
    %256 = vector.load %arg16[%c0_213, %c0_214] : memref<4x128xbf16, #tpu.memory_space<vmem>>, vector<4x128xbf16>
    %c0_215 = arith.constant 0 : index
    %c0_216 = arith.constant 0 : index
    %257 = vector.load %arg26[%c0_215, %c0_216] : memref<128x256xf32, #tpu.memory_space<vmem>>, vector<128x256xf32>
    %258 = arith.truncf %257 : vector<128x256xf32> to vector<128x256xbf16>
    %cst_217 = arith.constant dense<0.000000e+00> : vector<4x256xf32>
    %259 = tpu.matmul %256, %258, %cst_217 {dimension_numbers = #tpu.dot_dimension_numbers<[1], [0], [0], [1], [0, 0, 1, 1], [], []>} : vector<4x128xbf16>, vector<128x256xbf16>, vector<4x256xf32> -> vector<4x256xf32>
    %c0_218 = arith.constant 0 : index
    %c0_219 = arith.constant 0 : index
    %260 = vector.load %arg17[%c0_218, %c0_219] : memref<4x1xf32, #tpu.memory_space<vmem>>, vector<4x1xf32>
    %261 = vector.broadcast %260 : vector<4x1xf32> to vector<4x256xf32>
    %262 = arith.addf %259, %261 : vector<4x256xf32>
    %263 = arith.negf %262 : vector<4x256xf32>
    %264 = math.exp %263 : vector<4x256xf32>
    %cst_220 = arith.constant 1.000000e+00 : f32
    %265 = vector.broadcast %cst_220 : f32 to vector<4x256xf32>
    %266 = arith.addf %265, %264 : vector<4x256xf32>
    %267 = arith.divf %265, %266 : vector<4x256xf32>
    %c0_221 = arith.constant 0 : index
    %c0_222 = arith.constant 0 : index
    %c0_223 = arith.constant 0 : index
    %268 = vector.load %arg19[%c0_221, %c0_222, %c0_223] : memref<1x4x256xf32, #tpu.memory_space<vmem>>, vector<1x4x256xf32>
    %269 = vector.shape_cast %268 : vector<1x4x256xf32> to vector<4x256xf32>
    %270 = vector.shape_cast %267 : vector<4x256xf32> to vector<1x4x256xf32>
    tpu.vector_store %arg19[%c0_221, %c0_222, %c0_223], %270 {strides = array<i32>} : memref<1x4x256xf32, #tpu.memory_space<vmem>>, vector<1x4x256xf32>,
    return
  }
  func.func @transform_0(%arg0: i32) -> (i32, i32, i32) {
    %c0_i32 = arith.constant 0 : i32
    %c0_i32_0 = arith.constant 0 : i32
    %c0_i32_1 = arith.constant 0 : i32
    return %arg0, %c0_i32, %c0_i32_0 : i32, i32, i32
  }
  func.func @transform_1(%arg0: i32) -> (i32, i32, i32) {
    %c0_i32 = arith.constant 0 : i32
    %c0_i32_0 = arith.constant 0 : i32
    %c0_i32_1 = arith.constant 0 : i32
    return %arg0, %c0_i32, %c0_i32_0 : i32, i32, i32
  }
  func.func @transform_2(%arg0: i32) -> (i32, i32) {
    %c0_i32 = arith.constant 0 : i32
    %c0_i32_0 = arith.constant 0 : i32
    %c0_i32_1 = arith.constant 0 : i32
    return %c0_i32, %c0_i32_0 : i32, i32
  }
  func.func @transform_3(%arg0: i32) -> (i32, i32) {
    %c0_i32 = arith.constant 0 : i32
    %c0_i32_0 = arith.constant 0 : i32
    %c0_i32_1 = arith.constant 0 : i32
    return %c0_i32, %c0_i32_0 : i32, i32
  }
  func.func @transform_4(%arg0: i32) -> (i32, i32) {
    %c0_i32 = arith.constant 0 : i32
    %c0_i32_0 = arith.constant 0 : i32
    %c0_i32_1 = arith.constant 0 : i32
    return %c0_i32, %c0_i32_0 : i32, i32
  }
  func.func @transform_5(%arg0: i32) -> (i32, i32) {
    %c0_i32 = arith.constant 0 : i32
    %c0_i32_0 = arith.constant 0 : i32
    %c0_i32_1 = arith.constant 0 : i32
    return %c0_i32, %c0_i32_0 : i32, i32
  }
  func.func @transform_6(%arg0: i32) -> (i32, i32) {
    %c0_i32 = arith.constant 0 : i32
    %c0_i32_0 = arith.constant 0 : i32
    %c0_i32_1 = arith.constant 0 : i32
    return %c0_i32, %c0_i32_0 : i32, i32
  }
  func.func @transform_7(%arg0: i32) -> (i32, i32) {
    %c0_i32 = arith.constant 0 : i32
    %c0_i32_0 = arith.constant 0 : i32
    %c0_i32_1 = arith.constant 0 : i32
    return %c0_i32, %c0_i32_0 : i32, i32
  }
  func.func @transform_8(%arg0: i32) -> (i32, i32) {
    %c0_i32 = arith.constant 0 : i32
    %c0_i32_0 = arith.constant 0 : i32
    %c0_i32_1 = arith.constant 0 : i32
    return %c0_i32, %c0_i32_0 : i32, i32
  }
  func.func @transform_9(%arg0: i32) -> (i32, i32) {
    %c0_i32 = arith.constant 0 : i32
    %c0_i32_0 = arith.constant 0 : i32
    %c0_i32_1 = arith.constant 0 : i32
    return %c0_i32, %c0_i32_0 : i32, i32
  }
  func.func @transform_10(%arg0: i32) -> (i32, i32) {
    %c0_i32 = arith.constant 0 : i32
    %c0_i32_0 = arith.constant 0 : i32
    %c0_i32_1 = arith.constant 0 : i32
    return %c0_i32, %c0_i32_0 : i32, i32
  }
  func.func @transform_11(%arg0: i32) -> (i32, i32) {
    %c0_i32 = arith.constant 0 : i32
    %c0_i32_0 = arith.constant 0 : i32
    %c0_i32_1 = arith.constant 0 : i32
    return %c0_i32, %c0_i32_0 : i32, i32
  }
  func.func @transform_12(%arg0: i32) -> (i32, i32) {
    %c0_i32 = arith.constant 0 : i32
    %c0_i32_0 = arith.constant 0 : i32
    %c0_i32_1 = arith.constant 0 : i32
    return %c0_i32, %c0_i32_0 : i32, i32
  }
  func.func @transform_13(%arg0: i32) -> (i32, i32) {
    %c0_i32 = arith.constant 0 : i32
    %c0_i32_0 = arith.constant 0 : i32
    %c0_i32_1 = arith.constant 0 : i32
    return %c0_i32, %c0_i32_0 : i32, i32
  }
  func.func @transform_14(%arg0: i32) -> (i32, i32) {
    %c0_i32 = arith.constant 0 : i32
    %c0_i32_0 = arith.constant 0 : i32
    %c0_i32_1 = arith.constant 0 : i32
    return %c0_i32, %c0_i32_0 : i32, i32
  }
  func.func @transform_15(%arg0: i32) -> (i32, i32) {
    %c0_i32 = arith.constant 0 : i32
    %c0_i32_0 = arith.constant 0 : i32
    %c0_i32_1 = arith.constant 0 : i32
    return %c0_i32, %c0_i32_0 : i32, i32
  }
  func.func @transform_16(%arg0: i32) -> (i32, i32) {
    %c0_i32 = arith.constant 0 : i32
    %c0_i32_0 = arith.constant 0 : i32
    %c0_i32_1 = arith.constant 0 : i32
    return %c0_i32, %c0_i32_0 : i32, i32
  }
  func.func @transform_17(%arg0: i32) -> (i32, i32) {
    %c0_i32 = arith.constant 0 : i32
    %c0_i32_0 = arith.constant 0 : i32
    %c0_i32_1 = arith.constant 0 : i32
    return %c0_i32, %c0_i32_0 : i32, i32
  }
  func.func @transform_18(%arg0: i32) -> (i32, i32, i32) {
    %c0_i32 = arith.constant 0 : i32
    %c0_i32_0 = arith.constant 0 : i32
    %c0_i32_1 = arith.constant 0 : i32
    return %arg0, %c0_i32, %c0_i32_0 : i32, i32, i32
  }
  func.func @transform_19(%arg0: i32) -> (i32, i32, i32) {
    %c0_i32 = arith.constant 0 : i32
    %c0_i32_0 = arith.constant 0 : i32
    %c0_i32_1 = arith.constant 0 : i32
    return %arg0, %c0_i32, %c0_i32_0 : i32, i32, i32
  }
}

</mosaic_0001>

<bundles_post_ra>
// kernel: vae_forward.1
= control target key start
LH: loop header
LB: loop body
LE: loop exit
PB: predicated region body
PF: predicated region fallthrough
CT: control target
= control target key end

     0   :  { %s7486_s0 = inlined_call_operand.hbm [shape: bf16[2,8,256], index: 0, kind: input, shape index: {}]   ;;  %s7487_s1 = inlined_call_operand.hbm [shape: f32[2,1,32], index: 1, kind: input, shape index: {}]   ;;  %s7488_s2 = inlined_call_operand.hbm [shape: bf16[8,128], index: 2, kind: input, shape index: {}]   ;;  %s7489_s3 = inlined_call_operand.hbm [shape: f32[8,1], index: 3, kind: input, shape index: {}]   ;;  %s7490_s4 = inlined_call_operand.hbm [shape: bf16[256,1024], index: 4, kind: input, shape index: {}]   ;;  %s7491_s5 = inlined_call_operand.hbm [shape: bf16[16,128], index: 5, kind: input, shape index: {}]   ;;  %s7492_s6 = inlined_call_operand.hbm [shape: f32[16,1], index: 6, kind: input, shape index: {}]   ;;  %s7493_s7 = inlined_call_operand.hbm [shape: bf16[64,256], index: 7, kind: input, shape index: {}]   ;;  %s7494_s8 = inlined_call_operand.hbm [shape: bf16[256,64], index: 8, kind: input, shape index: {}]   ;;  %s7495_s9 = inlined_call_operand.hbm [shape: f32[1,64], index: 9, kind: input, shape index: {}]   ;;  %s7496_s10 = inlined_call_operand.hbm [shape: bf16[32,256], index: 10, kind: input, shape index: {}]   ;;  %s7497_s11 = inlined_call_operand.hbm [shape: f32[1,256], index: 11, kind: input, shape index: {}]   ;;  %s7498_s12 = inlined_call_operand.hbm [shape: bf16[8,256], index: 12, kind: input, shape index: {}]   ;;  %s7499_s13 = inlined_call_operand.hbm [shape: f32[8,1], index: 13, kind: input, shape index: {}]   ;;  %s7500_s14 = inlined_call_operand.hbm [shape: bf16[16,1024], index: 14, kind: input, shape index: {}]   ;;  %s7501_s15 = inlined_call_operand.hbm [shape: bf16[4,128], index: 15, kind: input, shape index: {}]   ;;  %s7502_s16 = inlined_call_operand.hbm [shape: f32[4,1], index: 16, kind: input, shape index: {}]   ;;  %s7503_s17 = inlined_call_operand.hbm [shape: bf16[64,4096], index: 17, kind: input, shape index: {}]   ;;  %s7504_s18 = inlined_call_operand.hbm [shape: f32[2,4,256], index: 18, kind: output, shape index: {0}]   ;;  %s7505_s19 = inlined_call_operand.hbm [shape: f32[2,1,64], index: 19, kind: output, shape index: {1}]  }
   0x1   :  { %7535 = sst [smem:[#allocation59_spill]] %s7486_s0 }
   0x2   :  { %7536 = sst [smem:[#allocation60_spill]] %s7487_s1 }
   0x3   :  { %7537 = sst [smem:[#allocation61_spill]] %s7488_s2 }
   0x4   :  { %7538 = sst [smem:[#allocation62_spill]] %s7489_s3 }
   0x5   :  { %7539 = sst [smem:[#allocation63_spill]] %s7490_s4 }
   0x6   :  { %7540 = sst [smem:[#allocation64_spill]] %s7491_s5 }
   0x7   :  { %7541 = sst [smem:[#allocation65_spill]] %s7492_s6 }
   0x8   :  { %7542 = sst [smem:[#allocation66_spill]] %s7493_s7 }
   0x9   :  { %7543 = sst [smem:[#allocation67_spill]] %s7494_s8 }
   0xa   :  { %7544 = sst [smem:[#allocation68_spill]] %s7503_s17 }
   0xb   :  { %7545 = sst [smem:[#allocation69_spill]] %s7504_s18 }
   0xc   :  { %7546 = sst [smem:[#allocation70_spill]] %s7505_s19 }
   0xd   :  { %25 = vsyncpa [#allocation9], 0 }
   0xe   :  { %27 = vsyncpa [#allocation9 + $0x1], 0 }
   0xf   :  { %28 = vsyncpa [#allocation12], 0 }
  0x10   :  { %30 = vsyncpa [#allocation12 + $0x1], 0 }
  0x11   :  { %31 = vsyncpa [#allocation15], 0 }
  0x12   :  { %32 = vsyncpa [#allocation18], 0 }
  0x13   :  { %33 = vsyncpa [#allocation21], 0 }
  0x14   :  { %34 = vsyncpa [#allocation24], 0 }
  0x15   :  { %35 = vsyncpa [#allocation27], 0 }
  0x16   :  { %36 = vsyncpa [#allocation30], 0 }
  0x17   :  { %37 = vsyncpa [#allocation33], 0 }
  0x18   :  { %38 = vsyncpa [#allocation36], 0 }
  0x19   :  { %39 = vsyncpa [#allocation10], 0 }
  0x1a   :  { %41 = vsyncpa [#allocation10 + $0x1], 0 }
  0x1b   :  { %42 = vsyncpa [#allocation39], 0 }
  0x1c   :  { %44 = vsyncpa [#allocation39 + $0x1], 0  ;;  %s6562_s0 = smov 0   ;;  %s6564_s30 = smov 0  }
  0x1d   :  { %s6566_s20 = smov 0   ;;  %s6568_s21 = smov 0  }
  0x1e LB: > { %7547 = sst [smem:[#allocation53_spill]] %s6410_s0  ;;  %s6424_s1 = smov [#allocation13]   ;;  %s6422_s21 = sphi %s6568_s21, %s6933_s21   ;;  %s6418_s20 = sphi %s6566_s20, %s7624_s20   ;;  %s6414_s30 = sphi %s6564_s30, %s7623_s30   ;;  %s6410_s0 = sphi %s6562_s0, %s7622_s0  }
  0x1f   : > { %7548 = sst [smem:[#allocation54_spill]] %s6414_s30  ;;  %s508_s22 = sshll.u32 %s6424_s1, 4  ;;  %s509_s22 = int_to_ptr.vmem [resolvable:$true] %s508_s22 }
  0x20   : > { %7549 = sst [smem:[#allocation55_spill]] %s6418_s20  ;;  %s6583_s2 = sadd.s32 4294967295, %s6422_s21  }
  0x21   : > { %7550 = sst [smem:[#allocation56_spill]] %s6422_s21  ;;  %p5018_p0 = scmp.ge.s32.totalorder %s6422_s21, 1 }
  0x22   : > { %7551 = sst [smem:[#allocation57_spill]] %s6583_s2  ;;  %p7516_p1 = scmp.eq.s32.totalorder %s6583_s2, 0 }
  0x23   : > { %p495_p2 = scmp.lt.s32.totalorder %s6422_s21, 3  ;;  %s6425_s24 = smov [#allocation14]  }
  0x24   : > { %s519_s25 = sshll.u32 %s6425_s24, 4  ;;  %s6426_s3 = smov [#allocation17]   ;;  %s6595_s25 = int_to_ptr.vmem [resolvable:$true] %s519_s25 }
  0x25   : > { %p6588_p3 = pnand %p5018_p0, %p495_p2  ;;  %s542_s26 = sshll.u32 %s6426_s3, 4  ;;  %s6603_s26 = int_to_ptr.vmem [resolvable:$true] %s542_s26 }
  0x26   : > { %s7555_s1 = sld [smem:[#allocation61_spill]] }
  0x27   : > { %s7552_s23 = scalar_select %p6588_p3, 1, 0 }
  0x28   : > { %p5562_p5 = pneg %p6588_p3 }
  0x29   : > { %7553 = sst [smem:[#allocation58_spill]] %s7552_s23 }
  0x2a   : > { %p6599_p6 = pnand %p5562_p5, %p7516_p1 }
  0x2c   : > { %s5776_s18 = scalar_lea.hbm %s7555_s1, 64  ;;  %p6613_p8 = pneg %p6599_p6 }
  0x2d   : > { %p5777_p7 = scmp.ne.s32.totalorder %s7555_s1, %s5776_s18  ;;  %p5783_p11 = scmp.lt.u32.totalorder %s5776_s18, %s7555_s1 }
  0x2f   : > { %p5779_p9 = pnand %p6613_p8, %p5777_p7 }
  0x31   : > { %p5780_p10 = pneg %p5779_p9 }
  0x33   : > { %p5785_p12 = pnand %p5783_p11, %p5780_p10 }
  0x35   : > { %5788 = shalt.err (!%p5785_p12)
}
  0x36   : > { %s5789_s28 = scalar_lea.vmem %s509_s22, 64  ;;  %p5797_p5 = scmp.lt.s32.totalorder %s509_s22, %s509_s22 }
  0x37   : > { %p5790_p13 = scmp.ne.s32.totalorder %s509_s22, %s5789_s28  ;;  %p5798_p4 = scmp.lt.s32.totalorder %s5789_s28, %s5789_s28 }
  0x39   : > { %p5792_p0 = pnand %p5790_p13, %p6613_p8  ;;  %p5799_p1 = por %p5798_p4, %p5797_p5 }
  0x3b   : > { %p5793_p2 = pneg %p5792_p0 }
  0x3d   : > { %p5800_p3 = pnand %p5799_p1, %p5793_p2 }
  0x3f   : > { %5803 = shalt.err (!%p5800_p3)
}
  0x40   : > { %5565 = dma.hbm_to_vmem [thread:$0]  (!%p6599_p6), %s7555_s1, 64, %s509_s22, [#allocation12]  }
  0x41   : > { %s7557_s29 = sld [smem:[#allocation62_spill]] }
  0x47   : > { %s5804_s3 = scalar_lea.hbm %s7557_s29, 128 }
  0x48   : > { %p5805_p7 = scmp.ne.s32.totalorder %s7557_s29, %s5804_s3  ;;  %p5811_p1 = scmp.lt.u32.totalorder %s5804_s3, %s7557_s29 }
  0x4a   : > { %p5807_p9 = pnand %p5805_p7, %p6613_p8 }
  0x4c   : > { %p5808_p4 = pneg %p5807_p9 }
  0x4e   : > { %p5813_p3 = pnand %p5811_p1, %p5808_p4 }
  0x50   : > { %5816 = shalt.err (!%p5813_p3)
}
  0x51   : > { %s5817_s22 = scalar_lea.vmem %s6595_s25, 128  ;;  %p5825_p13 = scmp.lt.s32.totalorder %s6595_s25, %s6595_s25 }
  0x52   : > { %p5818_p10 = scmp.ne.s32.totalorder %s6595_s25, %s5817_s22  ;;  %p5826_p0 = scmp.lt.s32.totalorder %s5817_s22, %s5817_s22 }
  0x54   : > { %p5820_p11 = pnand %p5818_p10, %p6613_p8  ;;  %p5827_p2 = por %p5826_p0, %p5825_p13 }
  0x56   : > { %p5821_p12 = pneg %p5820_p11 }
  0x58   : > { %p5828_p5 = pnand %p5827_p2, %p5821_p12 }
  0x5a   : > { %5831 = shalt.err (!%p5828_p5)
}
  0x5b   : > { %5568 = dma.hbm_to_vmem [thread:$0]  (!%p6599_p6), %s7557_s29, 128, %s6595_s25, [#allocation15]  }
  0x5c   : > { %s7558_s5 = sld [smem:[#allocation64_spill]] }
  0x62   : > { %s5832_s23 = scalar_lea.hbm %s7558_s5, 128 }
  0x63   : > { %p5833_p7 = scmp.ne.s32.totalorder %s7558_s5, %s5832_s23  ;;  %p5839_p1 = scmp.lt.u32.totalorder %s5832_s23, %s7558_s5 }
  0x65   : > { %p5835_p9 = pnand %p5833_p7, %p6613_p8 }
  0x67   : > { %p5836_p4 = pneg %p5835_p9 }
  0x69   : > { %p5841_p3 = pnand %p5839_p1, %p5836_p4 }
  0x6b   : > { %5844 = shalt.err (!%p5841_p3)
}
  0x6c   : > { %s5845_s25 = scalar_lea.vmem %s6603_s26, 128  ;;  %p5853_p13 = scmp.lt.s32.totalorder %s6603_s26, %s6603_s26 }
  0x6d   : > { %p5846_p10 = scmp.ne.s32.totalorder %s6603_s26, %s5845_s25  ;;  %p5854_p0 = scmp.lt.s32.totalorder %s5845_s25, %s5845_s25 }
  0x6f   : > { %p5848_p11 = pnand %p5846_p10, %p6613_p8  ;;  %p5855_p2 = por %p5854_p0, %p5853_p13 }
  0x71   : > { %p5849_p12 = pneg %p5848_p11 }
  0x73   : > { %p5856_p5 = pnand %p5855_p2, %p5849_p12 }
  0x75   : > { %5859 = shalt.err (!%p5856_p5)
}
  0x76   : > { %s7525_s22 = smov 64   ;;  %s7526_s0 = smov 4  }
  0x77   : > { %5574 = dma.hbm_to_vmem [thread:$0]  (!%p6599_p6), %s7558_s5, 128, %s6603_s26, [#allocation18], %s7525_s22, %s7525_s22, %s7526_s0  }
  0x78   : > { %s6429_s19 = smov [#allocation20]   ;;  %s6430_s18 = smov [#allocation23]  }
  0x79   : > { %s568_s23 = sshll.u32 %s6429_s19, 4  ;;  %s595_s2 = sshll.u32 %s6430_s18, 4  ;;  %s569_s23 = int_to_ptr.vmem [resolvable:$true] %s568_s23  ;;  %s596_s2 = int_to_ptr.vmem [resolvable:$true] %s595_s2 }
  0x7a   : > { %s7559_s7 = sld [smem:[#allocation66_spill]] }
  0x80   : > { %s5860_s25 = scalar_lea.hbm %s7559_s7, 1024 }
  0x81   : > { %p5861_p7 = scmp.ne.s32.totalorder %s7559_s7, %s5860_s25  ;;  %p5867_p1 = scmp.lt.u32.totalorder %s5860_s25, %s7559_s7 }
  0x83   : > { %p5863_p9 = pnand %p5861_p7, %p6613_p8 }
  0x85   : > { %p5864_p4 = pneg %p5863_p9 }
  0x87   : > { %p5869_p3 = pnand %p5867_p1, %p5864_p4 }
  0x89   : > { %5872 = shalt.err (!%p5869_p3)
}
  0x8a   : > { %s5873_s26 = scalar_lea.vmem %s569_s23, 1024  ;;  %p5881_p13 = scmp.lt.s32.totalorder %s569_s23, %s569_s23 }
  0x8b   : > { %p5874_p10 = scmp.ne.s32.totalorder %s569_s23, %s5873_s26  ;;  %p5882_p0 = scmp.lt.s32.totalorder %s5873_s26, %s5873_s26 }
  0x8d   : > { %p5876_p11 = pnand %p5874_p10, %p6613_p8  ;;  %p5883_p2 = por %p5882_p0, %p5881_p13 }
  0x8f   : > { %p5877_p12 = pneg %p5876_p11 }
  0x91   : > { %p5884_p5 = pnand %p5883_p2, %p5877_p12 }
  0x93   : > { %5887 = shalt.err (!%p5884_p5)
}
  0x94   : > { %s7527_s1 = smov 128   ;;  %s7529_s29 = smov 8  }
  0x95   : > { %5580 = dma.hbm_to_vmem [thread:$0]  (!%p6599_p6), %s7559_s7, 1024, %s569_s23, [#allocation21], %s7527_s1, %s7527_s1, %s7529_s29  }
  0x96   : > { %s5888_s19 = scalar_lea.hbm %s7495_s9, 16 }
  0x97   : > { %p5889_p7 = scmp.ne.s32.totalorder %s7495_s9, %s5888_s19  ;;  %p5895_p1 = scmp.lt.u32.totalorder %s5888_s19, %s7495_s9 }
  0x99   : > { %p5891_p9 = pnand %p5889_p7, %p6613_p8 }
  0x9b   : > { %p5892_p4 = pneg %p5891_p9 }
  0x9d   : > { %p5897_p3 = pnand %p5895_p1, %p5892_p4 }
  0x9f   : > { %5900 = shalt.err (!%p5897_p3)
}
  0xa0   : > { %s5901_s26 = scalar_lea.vmem %s596_s2, 16  ;;  %s5908_s23 = scalar_lea.vmem %s596_s2, 32 }
  0xa1   : > { %p5902_p10 = scmp.ne.s32.totalorder %s596_s2, %s5901_s26  ;;  %p5909_p13 = scmp.lt.s32.totalorder %s596_s2, %s596_s2 }
  0xa2   : > { %p5910_p0 = scmp.lt.s32.totalorder %s5908_s23, %s5901_s26 }
  0xa3   : > { %p5904_p11 = pnand %p5902_p10, %p6613_p8 }
  0xa4   : > { %p5911_p2 = por %p5910_p0, %p5909_p13 }
  0xa5   : > { %p5905_p12 = pneg %p5904_p11 }
  0xa7   : > { %p5912_p5 = pnand %p5911_p2, %p5905_p12 }
  0xa9   : > { %5915 = shalt.err (!%p5912_p5)
}
  0xaa   : > { %5586 = dma.hbm_to_vmem [thread:$0]  (!%p6599_p6), %s7495_s9, 16, %s596_s2, [#allocation24]  }
  0xab   : > { %s6433_s30 = smov [#allocation26]   ;;  %s6434_s19 = smov [#allocation29]  }
  0xac   : > { %s619_s20 = sshll.u32 %s6433_s30, 4  ;;  %s641_s18 = sshll.u32 %s6434_s19, 4  ;;  %s620_s20 = int_to_ptr.vmem [resolvable:$true] %s619_s20  ;;  %s642_s18 = int_to_ptr.vmem [resolvable:$true] %s641_s18 }
  0xad   : > { %s5916_s25 = scalar_lea.hbm %s7497_s11, 32 }
  0xae   : > { %p5917_p7 = scmp.ne.s32.totalorder %s7497_s11, %s5916_s25  ;;  %p5923_p1 = scmp.lt.u32.totalorder %s5916_s25, %s7497_s11 }
  0xb0   : > { %p5919_p9 = pnand %p5917_p7, %p6613_p8 }
  0xb2   : > { %p5920_p4 = pneg %p5919_p9 }
  0xb4   : > { %p5925_p3 = pnand %p5923_p1, %p5920_p4 }
  0xb6   : > { %5928 = shalt.err (!%p5925_p3)
}
  0xb7   : > { %s5929_s2 = scalar_lea.vmem %s620_s20, 32  ;;  %p5937_p13 = scmp.lt.s32.totalorder %s620_s20, %s620_s20 }
  0xb8   : > { %p5930_p10 = scmp.ne.s32.totalorder %s620_s20, %s5929_s2  ;;  %p5938_p0 = scmp.lt.s32.totalorder %s5929_s2, %s5929_s2 }
  0xba   : > { %p5932_p11 = pnand %p5930_p10, %p6613_p8  ;;  %p5939_p2 = por %p5938_p0, %p5937_p13 }
  0xbc   : > { %p5933_p12 = pneg %p5932_p11 }
  0xbe   : > { %p5940_p5 = pnand %p5939_p2, %p5933_p12 }
  0xc0   : > { %5943 = shalt.err (!%p5940_p5)
}
  0xc1   : > { %5592 = dma.hbm_to_vmem [thread:$0]  (!%p6599_p6), %s7497_s11, 32, %s620_s20, [#allocation27]  }
  0xc2   : > { %s5944_s3 = scalar_lea.hbm %s7499_s13, 128 }
  0xc3   : > { %p5945_p7 = scmp.ne.s32.totalorder %s7499_s13, %s5944_s3  ;;  %p5951_p1 = scmp.lt.u32.totalorder %s5944_s3, %s7499_s13 }
  0xc5   : > { %p5947_p9 = pnand %p5945_p7, %p6613_p8 }
  0xc7   : > { %p5948_p4 = pneg %p5947_p9 }
  0xc9   : > { %p5953_p3 = pnand %p5951_p1, %p5948_p4 }
  0xcb   : > { %5956 = shalt.err (!%p5953_p3)
}
  0xcc   : > { %s5957_s17 = scalar_lea.vmem %s642_s18, 128  ;;  %p5965_p13 = scmp.lt.s32.totalorder %s642_s18, %s642_s18 }
  0xcd   : > { %p5958_p10 = scmp.ne.s32.totalorder %s642_s18, %s5957_s17  ;;  %p5966_p0 = scmp.lt.s32.totalorder %s5957_s17, %s5957_s17 }
  0xcf   : > { %p5960_p11 = pnand %p5958_p10, %p6613_p8  ;;  %p5967_p2 = por %p5966_p0, %p5965_p13 }
  0xd1   : > { %p5961_p12 = pneg %p5960_p11 }
  0xd3   : > { %p5968_p5 = pnand %p5967_p2, %p5961_p12 }
  0xd5   : > { %5971 = shalt.err (!%p5968_p5)
}
  0xd6   : > { %5598 = dma.hbm_to_vmem [thread:$0]  (!%p6599_p6), %s7499_s13, 128, %s642_s18, [#allocation30]  }
  0xd7   : > { %s6435_s21 = smov [#allocation32]   ;;  %s6436_s22 = smov [#allocation16]  }
  0xd8   : > { %s665_s30 = sshll.u32 %s6435_s21, 4  ;;  %s529_s19 = sshll.u32 %s6436_s22, 4  ;;  %s666_s30 = int_to_ptr.vmem [resolvable:$true] %s665_s30  ;;  %s530_s19 = int_to_ptr.vmem [resolvable:$true] %s529_s19 }
  0xd9   : > { %s5972_s25 = scalar_lea.hbm %s7501_s15, 32 }
  0xda   : > { %p5973_p7 = scmp.ne.s32.totalorder %s7501_s15, %s5972_s25  ;;  %p5979_p1 = scmp.lt.u32.totalorder %s5972_s25, %s7501_s15 }
  0xdc   : > { %p5975_p9 = pnand %p5973_p7, %p6613_p8 }
  0xde   : > { %p5976_p4 = pneg %p5975_p9 }
  0xe0   : > { %p5981_p3 = pnand %p5979_p1, %p5976_p4 }
  0xe2   : > { %5984 = shalt.err (!%p5981_p3)
}
  0xe3   : > { %s5985_s18 = scalar_lea.vmem %s666_s30, 32  ;;  %p5993_p13 = scmp.lt.s32.totalorder %s666_s30, %s666_s30 }
  0xe4   : > { %p5986_p10 = scmp.ne.s32.totalorder %s666_s30, %s5985_s18  ;;  %p5994_p0 = scmp.lt.s32.totalorder %s5985_s18, %s5985_s18 }
  0xe6   : > { %p5988_p11 = pnand %p5986_p10, %p6613_p8  ;;  %p5995_p2 = por %p5994_p0, %p5993_p13 }
  0xe8   : > { %p5989_p12 = pneg %p5988_p11 }
  0xea   : > { %p5996_p5 = pnand %p5995_p2, %p5989_p12 }
  0xec   : > { %5999 = shalt.err (!%p5996_p5)
}
  0xed   : > { %5604 = dma.hbm_to_vmem [thread:$0]  (!%p6599_p6), %s7501_s15, 32, %s666_s30, [#allocation33]  }
  0xee   : > { %s7560_s4 = sld [smem:[#allocation63_spill]] }
  0xf4   : > { %s6000_s28 = scalar_lea.hbm %s7560_s4, 16384 }
  0xf5   : > { %p6001_p7 = scmp.ne.s32.totalorder %s7560_s4, %s6000_s28  ;;  %p6007_p1 = scmp.lt.u32.totalorder %s6000_s28, %s7560_s4 }
  0xf7   : > { %p6003_p9 = pnand %p6001_p7, %p6613_p8 }
  0xf9   : > { %p6004_p4 = pneg %p6003_p9 }
  0xfb   : > { %p6009_p3 = pnand %p6007_p1, %p6004_p4 }
  0xfd   : > { %6012 = shalt.err (!%p6009_p3)
}
  0xfe   : > { %s6013_s20 = scalar_lea.vmem %s530_s19, 16384  ;;  %p6021_p13 = scmp.lt.s32.totalorder %s530_s19, %s530_s19 }
  0xff   : > { %p6014_p10 = scmp.ne.s32.totalorder %s530_s19, %s6013_s20  ;;  %p6022_p0 = scmp.lt.s32.totalorder %s6013_s20, %s6013_s20 }
 0x101   : > { %p6016_p11 = pnand %p6014_p10, %p6613_p8  ;;  %p6023_p2 = por %p6022_p0, %p6021_p13 }
 0x103   : > { %p6017_p12 = pneg %p6016_p11 }
 0x105   : > { %p6024_p5 = pnand %p6023_p2, %p6017_p12 }
 0x107   : > { %6027 = shalt.err (!%p6024_p5)
}
 0x108   : > { %s7531_s30 = smov 512   ;;  %s7532_s18 = smov 32  }
 0x109   : > { %5571 = dma.hbm_to_vmem [thread:$0]  (!%p6599_p6), %s7560_s4, 16384, %s530_s19, [#allocation15], %s7531_s30, %s7531_s30, %s7532_s18  }
 0x10a   : > { %s6439_s22 = smov [#allocation19]   ;;  %s6440_s28 = smov [#allocation22]  }
 0x10b   : > { %s555_s3 = sshll.u32 %s6439_s22, 4  ;;  %s581_s25 = sshll.u32 %s6440_s28, 4  ;;  %s556_s3 = int_to_ptr.vmem [resolvable:$true] %s555_s3  ;;  %s582_s25 = int_to_ptr.vmem [resolvable:$true] %s581_s25 }
 0x10c   : > { %s7561_s6 = sld [smem:[#allocation65_spill]] }
 0x112   : > { %s6028_s17 = scalar_lea.hbm %s7561_s6, 256 }
 0x113   : > { %p6029_p7 = scmp.ne.s32.totalorder %s7561_s6, %s6028_s17  ;;  %p6035_p1 = scmp.lt.u32.totalorder %s6028_s17, %s7561_s6 }
 0x115   : > { %p6031_p9 = pnand %p6029_p7, %p6613_p8 }
 0x117   : > { %p6032_p4 = pneg %p6031_p9 }
 0x119   : > { %p6037_p3 = pnand %p6035_p1, %p6032_p4 }
 0x11b   : > { %6040 = shalt.err (!%p6037_p3)
}
 0x11c   : > { %s6041_s19 = scalar_lea.vmem %s556_s3, 256  ;;  %p6049_p13 = scmp.lt.s32.totalorder %s556_s3, %s556_s3 }
 0x11d   : > { %p6042_p10 = scmp.ne.s32.totalorder %s556_s3, %s6041_s19  ;;  %p6050_p0 = scmp.lt.s32.totalorder %s6041_s19, %s6041_s19 }
 0x11f   : > { %p6044_p11 = pnand %p6042_p10, %p6613_p8  ;;  %p6051_p2 = por %p6050_p0, %p6049_p13 }
 0x121   : > { %p6045_p12 = pneg %p6044_p11 }
 0x123   : > { %p6052_p5 = pnand %p6051_p2, %p6045_p12 }
 0x125   : > { %6055 = shalt.err (!%p6052_p5)
}
 0x126   : > { %s7562_s0 = smov 8   ;;  %s7563_s2 = smov 128  }
 0x127   : > { %5577 = dma.hbm_to_vmem [thread:$0]  (!%p6599_p6), %s7561_s6, 256, %s556_s3, [#allocation18], %s7563_s2, %s7563_s2, %s7562_s0  }
 0x128   : > { %s7564_s8 = sld [smem:[#allocation67_spill]] }
 0x12e   : > { %s6056_s28 = scalar_lea.hbm %s7564_s8, 2048 }
 0x12f   : > { %p6057_p7 = scmp.ne.s32.totalorder %s7564_s8, %s6056_s28  ;;  %p6063_p1 = scmp.lt.u32.totalorder %s6056_s28, %s7564_s8 }
 0x131   : > { %p6059_p9 = pnand %p6057_p7, %p6613_p8 }
 0x133   : > { %p6060_p4 = pneg %p6059_p9 }
 0x135   : > { %p6065_p3 = pnand %p6063_p1, %p6060_p4 }
 0x137   : > { %6068 = shalt.err (!%p6065_p3)
}
 0x138   : > { %s6069_s19 = scalar_lea.vmem %s582_s25, 2048  ;;  %p6077_p13 = scmp.lt.s32.totalorder %s582_s25, %s582_s25 }
 0x139   : > { %p6070_p10 = scmp.ne.s32.totalorder %s582_s25, %s6069_s19  ;;  %p6078_p0 = scmp.lt.s32.totalorder %s6069_s19, %s6069_s19 }
 0x13b   : > { %p6072_p11 = pnand %p6070_p10, %p6613_p8  ;;  %p6079_p2 = por %p6078_p0, %p6077_p13 }
 0x13d   : > { %p6073_p12 = pneg %p6072_p11 }
 0x13f   : > { %p6080_p5 = pnand %p6079_p2, %p6073_p12 }
 0x141   : > { %6083 = shalt.err (!%p6080_p5)
}
 0x142   : > { %s7565_s3 = smov 4   ;;  %s7566_s1 = smov 64  }
 0x143   : > { %5583 = dma.hbm_to_vmem [thread:$0]  (!%p6599_p6), %s7564_s8, 2048, %s582_s25, [#allocation21], %s7566_s1, %s7566_s1, %s7565_s3  }
 0x144   : > { %s6441_s22 = smov [#allocation25]   ;;  %s6442_s26 = smov [#allocation28]  }
 0x145   : > { %s605_s28 = sshll.u32 %s6441_s22, 4  ;;  %s630_s23 = sshll.u32 %s6442_s26, 4  ;;  %s606_s28 = int_to_ptr.vmem [resolvable:$true] %s605_s28  ;;  %s631_s23 = int_to_ptr.vmem [resolvable:$true] %s630_s23 }
 0x146   : > { %s6084_s19 = scalar_lea.hbm %s7496_s10, 512 }
 0x147   : > { %p6085_p7 = scmp.ne.s32.totalorder %s7496_s10, %s6084_s19  ;;  %p6091_p1 = scmp.lt.u32.totalorder %s6084_s19, %s7496_s10 }
 0x149   : > { %p6087_p9 = pnand %p6085_p7, %p6613_p8 }
 0x14b   : > { %p6088_p4 = pneg %p6087_p9 }
 0x14d   : > { %p6093_p3 = pnand %p6091_p1, %p6088_p4 }
 0x14f   : > { %6096 = shalt.err (!%p6093_p3)
}
 0x150   : > { %s6097_s25 = scalar_lea.vmem %s606_s28, 512  ;;  %p6105_p13 = scmp.lt.s32.totalorder %s606_s28, %s606_s28 }
 0x151   : > { %p6098_p10 = scmp.ne.s32.totalorder %s606_s28, %s6097_s25  ;;  %p6106_p0 = scmp.lt.s32.totalorder %s6097_s25, %s6097_s25 }
 0x153   : > { %p6100_p11 = pnand %p6098_p10, %p6613_p8  ;;  %p6107_p2 = por %p6106_p0, %p6105_p13 }
 0x155   : > { %p6101_p12 = pneg %p6100_p11 }
 0x157   : > { %p6108_p5 = pnand %p6107_p2, %p6101_p12 }
 0x159   : > { %6111 = shalt.err (!%p6108_p5)
}
 0x15a   : > { %5589 = dma.hbm_to_vmem [thread:$0]  (!%p6599_p6), %s7496_s10, 512, %s606_s28, [#allocation24], %s7563_s2, %s7563_s2, %s7562_s0  }
 0x15b   : > { %s6112_s1 = scalar_lea.hbm %s7498_s12, 128 }
 0x15c   : > { %p6113_p7 = scmp.ne.s32.totalorder %s7498_s12, %s6112_s1  ;;  %p6119_p1 = scmp.lt.u32.totalorder %s6112_s1, %s7498_s12 }
 0x15e   : > { %p6115_p9 = pnand %p6113_p7, %p6613_p8 }
 0x160   : > { %p6116_p4 = pneg %p6115_p9 }
 0x162   : > { %p6121_p3 = pnand %p6119_p1, %p6116_p4 }
 0x164   : > { %6124 = shalt.err (!%p6121_p3)
}
 0x165   : > { %s6125_s20 = scalar_lea.vmem %s631_s23, 128  ;;  %p6133_p13 = scmp.lt.s32.totalorder %s631_s23, %s631_s23 }
 0x166   : > { %p6126_p10 = scmp.ne.s32.totalorder %s631_s23, %s6125_s20  ;;  %p6134_p0 = scmp.lt.s32.totalorder %s6125_s20, %s6125_s20 }
 0x168   : > { %p6128_p11 = pnand %p6126_p10, %p6613_p8  ;;  %p6135_p2 = por %p6134_p0, %p6133_p13 }
 0x16a   : > { %p6129_p12 = pneg %p6128_p11 }
 0x16c   : > { %p6136_p5 = pnand %p6135_p2, %p6129_p12 }
 0x16e   : > { %6139 = shalt.err (!%p6136_p5)
}
 0x16f   : > { %5595 = dma.hbm_to_vmem [thread:$0]  (!%p6599_p6), %s7498_s12, 128, %s631_s23, [#allocation27]  }
 0x170   : > { %s6443_s19 = smov [#allocation31]   ;;  %s6444_s25 = smov [#allocation34]  }
 0x171   : > { %s651_s29 = sshll.u32 %s6443_s19, 4  ;;  %s676_s4 = sshll.u32 %s6444_s25, 4  ;;  %s652_s29 = int_to_ptr.vmem [resolvable:$true] %s651_s29  ;;  %s677_s4 = int_to_ptr.vmem [resolvable:$true] %s676_s4 }
 0x172   : > { %s6140_s3 = scalar_lea.hbm %s7500_s14, 1024 }
 0x173   : > { %p6141_p7 = scmp.ne.s32.totalorder %s7500_s14, %s6140_s3  ;;  %p6147_p1 = scmp.lt.u32.totalorder %s6140_s3, %s7500_s14 }
 0x175   : > { %p6143_p9 = pnand %p6141_p7, %p6613_p8 }
 0x177   : > { %p6144_p4 = pneg %p6143_p9 }
 0x179   : > { %p6149_p3 = pnand %p6147_p1, %p6144_p4 }
 0x17b   : > { %6152 = shalt.err (!%p6149_p3)
}
 0x17c   : > { %s6153_s23 = scalar_lea.vmem %s652_s29, 1024  ;;  %p6161_p13 = scmp.lt.s32.totalorder %s652_s29, %s652_s29 }
 0x17d   : > { %p6154_p10 = scmp.ne.s32.totalorder %s652_s29, %s6153_s23  ;;  %p6162_p0 = scmp.lt.s32.totalorder %s6153_s23, %s6153_s23 }
 0x17f   : > { %p6156_p11 = pnand %p6154_p10, %p6613_p8  ;;  %p6163_p2 = por %p6162_p0, %p6161_p13 }
 0x181   : > { %p6157_p12 = pneg %p6156_p11 }
 0x183   : > { %p6164_p5 = pnand %p6163_p2, %p6157_p12 }
 0x185   : > { %6167 = shalt.err (!%p6164_p5)
}
 0x186   : > { %s7567_s17 = smov 32   ;;  %s7568_s20 = smov 512  }
 0x187   : > { %5601 = dma.hbm_to_vmem [thread:$0]  (!%p6599_p6), %s7500_s14, 1024, %s652_s29, [#allocation30], %s7568_s20, %s7568_s20, %s7567_s17  }
 0x188   : > { %s6168_s30 = scalar_lea.hbm %s7502_s16, 64 }
 0x189   : > { %p6169_p7 = scmp.ne.s32.totalorder %s7502_s16, %s6168_s30  ;;  %p6175_p1 = scmp.lt.u32.totalorder %s6168_s30, %s7502_s16 }
 0x18b   : > { %p6171_p9 = pnand %p6169_p7, %p6613_p8 }
 0x18d   : > { %p6172_p4 = pneg %p6171_p9 }
 0x18f   : > { %p6177_p3 = pnand %p6175_p1, %p6172_p4 }
 0x191   : > { %6180 = shalt.err (!%p6177_p3)
}
 0x192   : > { %s6181_s22 = scalar_lea.vmem %s677_s4, 64  ;;  %p6189_p13 = scmp.lt.s32.totalorder %s677_s4, %s677_s4 }
 0x193   : > { %p6182_p10 = scmp.ne.s32.totalorder %s677_s4, %s6181_s22  ;;  %p6190_p0 = scmp.lt.s32.totalorder %s6181_s22, %s6181_s22 }
 0x195   : > { %p6184_p11 = pnand %p6182_p10, %p6613_p8  ;;  %p6191_p2 = por %p6190_p0, %p6189_p13 }
 0x197   : > { %p6185_p12 = pneg %p6184_p11 }
 0x199   : > { %p6192_p5 = pnand %p6191_p2, %p6185_p12 }
 0x19b   : > { %6195 = shalt.err (!%p6192_p5)
}
 0x19c   : > { %5607 = dma.hbm_to_vmem [thread:$0]  (!%p6599_p6), %s7502_s16, 64, %s677_s4, [#allocation33]  }
 0x19d   : > { %s6445_s23 = smov [#allocation35]   ;;  %s7569_s28 = sld [smem:[#allocation68_spill]] }
 0x19e   : > { %s686_s17 = sshll.u32 %s6445_s23, 4  ;;  %s687_s17 = int_to_ptr.vmem [resolvable:$true] %s686_s17 }
 0x1a3   : > { %s6196_s19 = scalar_lea.hbm %s7569_s28, 16384 }
 0x1a4   : > { %p6197_p7 = scmp.ne.s32.totalorder %s7569_s28, %s6196_s19  ;;  %p6203_p1 = scmp.lt.u32.totalorder %s6196_s19, %s7569_s28 }
 0x1a6   : > { %p6199_p9 = pnand %p6197_p7, %p6613_p8 }
 0x1a8   : > { %p6200_p4 = pneg %p6199_p9 }
 0x1aa   : > { %p6205_p3 = pnand %p6203_p1, %p6200_p4 }
 0x1ac   : > { %6208 = shalt.err (!%p6205_p3)
}
 0x1ad   : > { %s6209_s4 = scalar_lea.vmem %s687_s17, 16384  ;;  %p6217_p13 = scmp.lt.s32.totalorder %s687_s17, %s687_s17 }
 0x1ae   : > { %p6210_p10 = scmp.ne.s32.totalorder %s687_s17, %s6209_s4  ;;  %p6218_p0 = scmp.lt.s32.totalorder %s6209_s4, %s6209_s4 }
 0x1b0   : > { %p6212_p11 = pnand %p6210_p10, %p6613_p8  ;;  %p6219_p2 = por %p6218_p0, %p6217_p13 }
 0x1b2   : > { %p6213_p12 = pneg %p6212_p11 }
 0x1b4   : > { %p6220_p5 = pnand %p6219_p2, %p6213_p12 }
 0x1b6   : > { %6223 = shalt.err (!%p6220_p5)
}
 0x1b7   : > { %s6446_s1 = smov 2048   ;;  %s7570_s29 = sld [smem:[#allocation56_spill]] }
 0x1b8   : > { %s7571_s26 = sld [smem:[#allocation55_spill]]  ;;  %s7572_s23 = sld [smem:[#allocation54_spill]] }
 0x1b9   : > { %s7573_s24 = sld [smem:[#allocation53_spill]]  ;;  %s7574_s20 = sld [smem:[#allocation57_spill]] }
 0x1ba   : > { %5610 = dma.hbm_to_vmem [thread:$0]  (!%p6599_p6), %s7569_s28, 16384, %s687_s17, [#allocation36], %s6446_s1, %s6446_s1, %s7563_s2  }
 0x1bd   : > { %s5017_s27 = sadd.s32 4294967294, %s7570_s29   ;;  %s6933_s21 = sadd.s32 1, %s7570_s29  }
 0x1be   : > { %s57_s0 = sadd.s32 1, %s7571_s26  ;;  %s54_s19 = ssub.s32 %s7570_s29, %s6933_s21 }
 0x1bf   : > { %p64_p8 = scmp.ne.s32.totalorder %s7571_s26, %s7572_s23  ;;  %p55_p7 = scmp.eq.s32.totalorder %s54_s19, 0 }
 0x1c0   : > { %p65_p9 = scmp.eq.s32.totalorder %s7570_s29, 0  ;;  %p70_p4 = scmp.ne.s32.totalorder %s7572_s23, %s7573_s24 }
 0x1c1   : > { %p456_p1 = scmp.eq.s32.totalorder %s7574_s20, 1  ;;  %p7575_p10 = scmp.eq.s32.totalorder %s7574_s20, 0 }
 0x1c2   : > { %s6945_s25 = scalar_select %p55_p7, %s7571_s26, %s57_s0  }
 0x1c3   : > { %p66_p3 = por %p65_p9, %p64_p8  ;;  %p6949_p11 = por %p7575_p10, %p70_p4 }
 0x1c4   : > { %p6953_p6 = por %p456_p1, %p64_p8  ;;  %p462_p12 = scmp.eq.s32.totalorder %s5017_s27, 1 }
 0x1c5   : > { %s7576_s2 = scalar_select %p6949_p11, 1, 0 }
 0x1c6   : > { %s7577_s17 = scalar_select %p6953_p6, 1, 0 }
 0x1c7   : > { %p5641_p13 = scmp.lt.s32.totalorder %s7570_s29, 2  ;;  %s6959_s30 = sand.u32 1, %s7571_s26  }
 0x1c8   : > { %p6961_p0 = por %p462_p12, %p70_p4  ;;  %s5036_s3 = sshll.u32 %s6959_s30, 3 }
 0x1c9   : > { %s5386_s4 = sshll.u32 %s7570_s29, 7  ;;  %s7579_s23 = sld [smem:[#allocation59_spill]] }
 0x1ca   : > { %s7578_s18 = scalar_select %p6961_p0, 1, 0 }
 0x1cb   : > { %s704_s20 = scalar_lea.vmem [#allocation8], %s5036_s3  ;;  %p6972_p2 = pnand %p5641_p13, %p66_p3 }
 0x1cc   : > { %s712_s26 = sshll.u32 %s704_s20, 4  ;;  %s701_s19 = scalar_lea.sflag [#allocation9], %s6959_s30  ;;  %s6976_s26 = int_to_ptr.vmem [resolvable:$true] %s712_s26 }
 0x1cd   : > { %p6226_p8 = pneg %p6972_p2 }
 0x1cf   : > { %s6970_s24 = scalar_lea.hbm %s7579_s23, %s5386_s4  ;;  %s6229_s1 = scalar_lea.hbm %s7579_s23, 256 }
 0x1d0   : > { %s6224_s5 = scalar_lea.hbm %s6970_s24, 128  ;;  %p6230_p4 = scmp.lt.u32.totalorder %s6970_s24, %s7579_s23 }
 0x1d1   : > { %p6225_p5 = scmp.ne.s32.totalorder %s6970_s24, %s6224_s5  ;;  %p6231_p1 = scmp.lt.u32.totalorder %s6229_s1, %s6224_s5 }
 0x1d2   : > { %p6233_p10 = scmp.lt.u32.totalorder %s6224_s5, %s6970_s24 }
 0x1d3   : > { %p6227_p7 = pnand %p6226_p8, %p6225_p5  ;;  %p6232_p3 = por %p6231_p1, %p6230_p4 }
 0x1d5   : > { %p6228_p9 = pneg %p6227_p7  ;;  %p6234_p12 = por %p6233_p10, %p6232_p3 }
 0x1d7   : > { %p6235_p13 = pnand %p6234_p12, %p6228_p9 }
 0x1d9   : > { %6238 = shalt.err (!%p6235_p13)
}
 0x1da   : > { %s6239_s0 = scalar_lea.vmem %s6976_s26, 128  ;;  %s6447_s3 = smov [#allocation8]  }
 0x1db   : > { %p6240_p5 = scmp.ne.s32.totalorder %s6976_s26, %s6239_s0  ;;  %s6244_s4 = sshll.u32 %s6447_s3, 4  ;;  %s6245_s4 = int_to_ptr.vmem [resolvable:$false] %s6244_s4 }
 0x1dc   : > { %s6246_s22 = scalar_lea.vmem %s6245_s4, 256  ;;  %p6247_p6 = scmp.lt.s32.totalorder %s6976_s26, %s6245_s4 }
 0x1dd   : > { %p6242_p7 = pnand %p6240_p5, %p6226_p8  ;;  %p6248_p4 = scmp.lt.s32.totalorder %s6246_s22, %s6239_s0 }
 0x1df   : > { %p6243_p0 = pneg %p6242_p7  ;;  %p6249_p1 = por %p6248_p4, %p6247_p6 }
 0x1e1   : > { %p6250_p3 = pnand %p6249_p1, %p6243_p0 }
 0x1e3   : > { %6253 = shalt.err (!%p6250_p3)
}
 0x1e4   : > { %5614 = dma.hbm_to_vmem [thread:$0]  (!%p6972_p2), %s6970_s24, 128, %s6976_s26, %s701_s19  }
 0x1e5   : > { %s5039_s5 = sshll.u32 %s7570_s29, 4  ;;  %s7581_s3 = sld [smem:[#allocation60_spill]] }
 0x1e6   : > { %s722_s0 = scalar_lea.vmem [#allocation11], %s6959_s30  ;;  %s7582_s22 = sand.u32 1, %s7570_s29  }
 0x1e7   : > { %s729_s4 = sshll.u32 %s722_s0, 4  ;;  %s720_s7 = scalar_lea.sflag [#allocation12], %s7582_s22  ;;  %s730_s4 = int_to_ptr.vmem [resolvable:$true] %s729_s4 }
 0x1eb   : > { %s7009_s6 = scalar_lea.hbm %s7581_s3, %s5039_s5  ;;  %s6259_s19 = scalar_lea.hbm %s7581_s3, 32 }
 0x1ec   : > { %s6254_s8 = scalar_lea.hbm %s7009_s6, 16  ;;  %p6260_p10 = scmp.lt.u32.totalorder %s7009_s6, %s7581_s3 }
 0x1ed   : > { %p6255_p6 = scmp.ne.s32.totalorder %s7009_s6, %s6254_s8  ;;  %p6261_p12 = scmp.lt.u32.totalorder %s6259_s19, %s6254_s8 }
 0x1ee   : > { %p6263_p5 = scmp.lt.u32.totalorder %s6254_s8, %s7009_s6 }
 0x1ef   : > { %p6257_p0 = pnand %p6255_p6, %p6226_p8  ;;  %p6262_p13 = por %p6261_p12, %p6260_p10 }
 0x1f1   : > { %p6258_p9 = pneg %p6257_p0  ;;  %p6264_p7 = por %p6263_p5, %p6262_p13 }
 0x1f3   : > { %p6265_p4 = pnand %p6264_p7, %p6258_p9 }
 0x1f5   : > { %6268 = shalt.err (!%p6265_p4)
}
 0x1f6   : > { %s6269_s29 = scalar_lea.vmem %s730_s4, 16  ;;  %s6448_s30 = smov [#allocation11]  }
 0x1f7   : > { %p6270_p1 = scmp.ne.s32.totalorder %s730_s4, %s6269_s29  ;;  %s6274_s20 = sshll.u32 %s6448_s30, 4  ;;  %s6275_s20 = int_to_ptr.vmem [resolvable:$false] %s6274_s20 }
 0x1f8   : > { %s6276_s0 = scalar_lea.vmem %s6275_s20, 32  ;;  %p6277_p0 = scmp.lt.s32.totalorder %s730_s4, %s6275_s20 }
 0x1f9   : > { %p6272_p3 = pnand %p6270_p1, %p6226_p8  ;;  %p6278_p11 = scmp.lt.s32.totalorder %s6276_s0, %s6269_s29 }
 0x1fb   : > { %p6273_p6 = pneg %p6272_p3  ;;  %p6279_p10 = por %p6278_p11, %p6277_p0 }
 0x1fd   : > { %p6280_p12 = pnand %p6279_p10, %p6273_p6 }
 0x1ff   : > { %6283 = shalt.err (!%p6280_p12)
}
 0x200   : > { %5617 = dma.hbm_to_vmem [thread:$0]  (!%p6972_p2), %s7009_s6, 16, %s730_s4, %s720_s7  }
 0x201   : > { %s7583_s8 = sld [smem:[#allocation58_spill]] }
 0x207   : > { %p7584_p9 = scmp.ne.s32.totalorder %s7583_s8, 0 }
 0x208   : > { %s7585_s22 = sld [smem:[#allocation54_spill]] (!%p7584_p9)  ;;  %p7586_p11 = scmp.ne.s32.totalorder (!%p7584_p9), %s7576_s2, 0 }
 0x209   : > { %738 = sbr.rel (%p7584_p9) target bundleno = 3936 (0xf60), region = 92 }
 0x20e   : > { %s7036_s24 = sand.u32 (!%p7584_p9), 1, %s7585_s22  }
 0x20f   : > { %s5041_s26 = sshll.u32 (!%p7584_p9), %s7036_s24, 3  ;;  %s741_s19 = scalar_lea.sflag (!%p7584_p9), [#allocation9], %s7036_s24 }
 0x210   : > { %s7042_s5 = scalar_lea.vmem [#allocation8], %s5041_s26 }
 0x211   : > { %6357 = dma.done.wait (%p7586_p11), %s741_s19, 128  }
 0x212   : > { %6359 = vsyncadd (%p7586_p11), %s741_s19, 4294967168  ;;  %s7587_s6 = sld [smem:[#allocation57_spill]]  ;;  %s752_s4 = scalar_lea.vmem [#allocation11], %s7036_s24 }
 0x218   : > { %s749_s7 = sand.u32 1, %s7587_s6  }
 0x219   : > { %s750_s27 = scalar_lea.sflag [#allocation12], %s749_s7 }
 0x21a   : > { %6361 = dma.done.wait (%p7586_p11), %s750_s27, 16  }
 0x21b   : > { %6363 = vsyncadd (%p7586_p11), %s750_s27, 4294967280  ;;  %p7588_p2 = scmp.eq.s32.totalorder %s7587_s6, 0 }
 0x21d   : > { %6365 = dma.done.wait (%p7588_p2), [#allocation12], 64   ;;  %p7589_p8 = pmov %p7588_p2 }
 0x21e   : > { %p7590_p13 = pmov %p7588_p2 }
 0x21f   : > { %6367 = vsyncadd (%p7589_p8), [#allocation12], 4294967232 }
 0x220   : > { %6369 = dma.done.wait (%p7590_p13), [#allocation15], 16512   ;;  %p7591_p5 = pmov %p7588_p2 }
 0x221   : > { %p7592_p7 = pmov %p7588_p2 }
 0x222   : > { %6371 = vsyncadd (%p7591_p5), [#allocation15], 4294950784 }
 0x223   : > { %6373 = dma.done.wait (%p7592_p7), [#allocation18], 384   ;;  %p7593_p4 = pmov %p7588_p2 }
 0x224   : > { %p7594_p1 = pmov %p7588_p2 }
 0x225   : > { %6375 = vsyncadd (%p7593_p4), [#allocation18], 4294966912 }
 0x226   : > { %6377 = dma.done.wait (%p7594_p1), [#allocation21], 3072   ;;  %p7595_p3 = pmov %p7594_p1 }
 0x227   : > { %p7596_p6 = pmov %p7594_p1 }
 0x228   : > { %6379 = vsyncadd (%p7595_p3), [#allocation21], 4294964224 }
 0x229   : > { %6381 = dma.done.wait (%p7596_p6), [#allocation24], 528   ;;  %p7597_p0 = pmov %p7594_p1 }
 0x22b   : > { %6383 = vsyncadd (%p7597_p0), [#allocation24], 4294966768  ;;  %p7598_p10 = pmov %p7597_p0 }
 0x22c   : > { %p7599_p12 = pmov %p7597_p0 }
 0x22d   : > { %6385 = dma.done.wait (%p7598_p10), [#allocation27], 160  }
 0x22e   : > { %6387 = vsyncadd (%p7599_p12), [#allocation27], 4294967136  ;;  %p7600_p9 = pmov %p7597_p0 }
 0x22f   : > { %p7601_p11 = pmov %p7597_p0 }
 0x230   : > { %6389 = dma.done.wait (%p7600_p9), [#allocation30], 1152  }
 0x231   : > { %6391 = vsyncadd (%p7601_p11), [#allocation30], 4294966144  ;;  %p7602_p2 = pmov %p7597_p0 }
 0x232   : > { %p7603_p8 = pmov %p7597_p0 }
 0x233   : > { %6393 = dma.done.wait (%p7602_p2), [#allocation33], 96  }
 0x234   : > { %6395 = vsyncadd (%p7603_p8), [#allocation33], 4294967200  ;;  %p7604_p13 = pmov %p7597_p0 }
 0x235   : > { %p7605_p5 = pmov %p7597_p0 }
 0x236   : > { %6397 = dma.done.wait (%p7604_p13), [#allocation36], 16384  }
 0x237   : > { %6399 = vsyncadd (%p7605_p5), [#allocation36], 4294950912  ;;  %v881_v0 = vld [vmem:[#allocation16] sm:$0xff]  ;;  %v882_v2 = vld [vmem:[#allocation16 + $0x8] sm:$0xff]  ;;  %vm1820_vm0 = vcmask 523264   ;;  %s6450_s2 = smov 64  }
 0x238   : > { %v885_v1 = vld [vmem:[#allocation16 + $0x20] sm:$0xff]  ;;  %v886_v4 = vld [vmem:[#allocation16 + $0x28] sm:$0xff]  ;;  %vm6451_vm1 = vmmov 0   ;;  %vm2034_vm2 = vcmask 130048   ;;  %s6453_s1 = smov 80   ;;  %s6454_s29 = smov 112  }
 0x239   : > { %v5062_v3 = vcombine.high %v881_v0, %v885_v1  ;;  %v5061_v5 = vcombine.low %v881_v0, %v885_v1  ;;  %v889_v6 = vld [vmem:[#allocation16 + $0x40] sm:$0xff]  ;;  %v5064_v8 = vcombine.high %v882_v2, %v886_v4  ;;  %v5063_v9 = vcombine.low %v882_v2, %v886_v4  ;;  %v890_v11 = vld [vmem:[#allocation16 + $0x48] sm:$0xff]  ;;  %s6455_s30 = smov 48   ;;  %s6456_s20 = smov 96  }
 0x23a   : > { %v893_v7 = vld [vmem:[#allocation16 + $0x60] sm:$0xff]  ;;  %v894_v12 = vld [vmem:[#allocation16 + $0x68] sm:$0xff]  ;;  %s6457_s0 = smov 16   ;;  %s6458_s8 = smov 32  }
 0x23b   : > { %v5070_v10 = vcombine.high %v889_v6, %v893_v7  ;;  %v897_v13 = vld [vmem:[#allocation16 + $0x80] sm:$0xff]  ;;  %1656 = vmatprep.subr.bf16.mxu0 %v5062_v3  ;;  %v5072_v14 = vcombine.high %v890_v11, %v894_v12  ;;  %v898_v16 = vld [vmem:[#allocation16 + $0x88] sm:$0xff]  ;;  %1697 = vmatprep.subr.bf16.mxu1 %v5064_v8  ;;  %v5069_v18 = vcombine.low %v889_v6, %v893_v7  ;;  %s878_s22 = scalar_lea.vmem [#allocation38], %s7036_s24  ;;  %s5383_s19 = sshll.u32 %s7587_s6, 4 }
 0x23c   : > { %v901_v15 = vld [vmem:[#allocation16 + $0xa0] sm:$0xff]  ;;  %v902_v17 = vld [vmem:[#allocation16 + $0xa8] sm:$0xff]  ;;  %1657 = vmatpush1.bf16.msra.mxu0 %v5061_v5  ;;  %1698 = vmatpush1.bf16.msra.mxu1 %v5063_v9  ;;  %v5071_v19 = vcombine.low %v890_v11, %v894_v12  ;;  %p7615_p4 = scmp.ne.s32.totalorder %s7577_s17, 0 }
 0x23d   : > { %1658 = vmatprep.subr.bf16.mxu0 %v5070_v10  ;;  %v5078_v20 = vcombine.high %v897_v13, %v901_v15  ;;  %1699 = vmatprep.subr.bf16.mxu1 %v5072_v14  ;;  %v5080_v21 = vcombine.high %v898_v16, %v902_v17  ;;  %v905_v22 = vld [vmem:[#allocation16 + $0xc0] sm:$0xff]  ;;  %v906_v24 = vld [vmem:[#allocation16 + $0xc8] sm:$0xff]  ;;  %v5077_v26 = vcombine.low %v897_v13, %v901_v15 }
 0x23e   : > { %v909_v23 = vld [vmem:[#allocation16 + $0xe0] sm:$0xff]  ;;  %v910_v25 = vld [vmem:[#allocation16 + $0xe8] sm:$0xff]  ;;  %v5079_v27 = vcombine.low %v898_v16, %v902_v17 }
 0x23f   : > { %v5086_v28 = vcombine.high %v905_v22, %v909_v23  ;;  %v5088_v29 = vcombine.high %v906_v24, %v910_v25  ;;  %v913_v30 = vld [vmem:[#allocation16 + $0x100] sm:$0xff]  ;;  %v914_v32 = vld [vmem:[#allocation16 + $0x108] sm:$0xff]  ;;  %v5085_v34 = vcombine.low %v905_v22, %v909_v23  ;;  %v5087_v35 = vcombine.low %v906_v24, %v910_v25 }
 0x240   : > { %1659 = vmatpush1.bf16.msra.mxu0 %v5069_v18  ;;  %1700 = vmatpush1.bf16.msra.mxu1 %v5071_v19  ;;  %v917_v31 = vld [vmem:[#allocation16 + $0x120] sm:$0xff]  ;;  %v918_v33 = vld [vmem:[#allocation16 + $0x128] sm:$0xff] }
 0x241   : > { %1660 = vmatprep.subr.bf16.mxu0 %v5078_v20  ;;  %1701 = vmatprep.subr.bf16.mxu1 %v5080_v21  ;;  %v5094_v36 = vcombine.high %v913_v30, %v917_v31  ;;  %v5096_v37 = vcombine.high %v914_v32, %v918_v33  ;;  %v921_v38 = vld [vmem:[#allocation16 + $0x140] sm:$0xff]  ;;  %v922_v40 = vld [vmem:[#allocation16 + $0x148] sm:$0xff]  ;;  %v5093_v42 = vcombine.low %v913_v30, %v917_v31 }
 0x242   : > { %v925_v39 = vld [vmem:[#allocation16 + $0x160] sm:$0xff]  ;;  %v926_v41 = vld [vmem:[#allocation16 + $0x168] sm:$0xff]  ;;  %v5095_v43 = vcombine.low %v914_v32, %v918_v33 }
 0x243   : > { %v5102_v44 = vcombine.high %v921_v38, %v925_v39  ;;  %v5104_v45 = vcombine.high %v922_v40, %v926_v41  ;;  %v929_v46 = vld [vmem:[#allocation16 + $0x180] sm:$0xff]  ;;  %v930_v48 = vld [vmem:[#allocation16 + $0x188] sm:$0xff]  ;;  %v5101_v50 = vcombine.low %v921_v38, %v925_v39  ;;  %v5103_v51 = vcombine.low %v922_v40, %v926_v41 }
 0x244   : > { %1661 = vmatpush1.bf16.msra.mxu0 %v5077_v26  ;;  %1702 = vmatpush1.bf16.msra.mxu1 %v5079_v27  ;;  %v933_v47 = vld [vmem:[#allocation16 + $0x1a0] sm:$0xff]  ;;  %v934_v49 = vld [vmem:[#allocation16 + $0x1a8] sm:$0xff] }
 0x245   : > { %1662 = vmatprep.subr.bf16.mxu0 %v5086_v28  ;;  %1703 = vmatprep.subr.bf16.mxu1 %v5088_v29  ;;  %v5110_v52 = vcombine.high %v929_v46, %v933_v47  ;;  %v7091_v53 = vld [vmem:[%s7042_s5] sm:$0xff]  ;;  %v5112_v54 = vcombine.high %v930_v48, %v934_v49  ;;  %v5109_v60 = vcombine.low %v929_v46, %v933_v47  ;;  %s4747_s5 = sshll.u32 %s878_s22, 4  ;;  %s4748_s5 = int_to_ptr.vmem [resolvable:$true] %s4747_s5 }
 0x246   : > { %v937_v55 = vld [vmem:[#allocation16 + $0x1c0] sm:$0xff]  ;;  %v7095_v57 = vcombine.high %v7091_v53, %v7091_v53  ;;  %v938_v58 = vld [vmem:[#allocation16 + $0x1c8] sm:$0xff]  ;;  %v5111_v61 = vcombine.low %v930_v48, %v934_v49 }
 0x247   : > { %v941_v56 = vld [vmem:[#allocation16 + $0x1e0] sm:$0xff]  ;;  %v942_v59 = vld [vmem:[#allocation16 + $0x1e8] sm:$0xff] }
 0x248   : > { %1663 = vmatpush1.bf16.msra.mxu0 %v5085_v34  ;;  %1704 = vmatpush1.bf16.msra.mxu1 %v5087_v35  ;;  %v5118_v62 = vcombine.high %v937_v55, %v941_v56  ;;  %v5120_v63 = vcombine.high %v938_v58, %v942_v59  ;;  %v945_v0 = vld [vmem:[#allocation16 + $0x200] sm:$0xff]  ;;  %v946_v2 = vld [vmem:[#allocation16 + $0x208] sm:$0xff]  ;;  %v5117_v4 = vcombine.low %v937_v55, %v941_v56 }
 0x249   : > { %1664 = vmatprep.subr.bf16.mxu0 %v5094_v36  ;;  %1705 = vmatprep.subr.bf16.mxu1 %v5096_v37  ;;  %v949_v1 = vld [vmem:[#allocation16 + $0x220] sm:$0xff]  ;;  %v950_v3 = vld [vmem:[#allocation16 + $0x228] sm:$0xff]  ;;  %v5119_v5 = vcombine.low %v938_v58, %v942_v59 }
 0x24a   : > { %1688 = vmatprep.mubr.bf16.mxu0 %v7095_v57  ;;  %1729 = vmatprep.mubr.bf16.mxu1 %v7095_v57  ;;  %v5126_v6 = vcombine.high %v945_v0, %v949_v1  ;;  %v5128_v7 = vcombine.high %v946_v2, %v950_v3  ;;  %v953_v8 = vld [vmem:[#allocation16 + $0x240] sm:$0xff]  ;;  %v954_v10 = vld [vmem:[#allocation16 + $0x248] sm:$0xff]  ;;  %v5125_v12 = vcombine.low %v945_v0, %v949_v1 }
 0x24b   : > { %v957_v9 = vld [vmem:[#allocation16 + $0x260] sm:$0xff]  ;;  %v958_v11 = vld [vmem:[#allocation16 + $0x268] sm:$0xff]  ;;  %v5127_v13 = vcombine.low %v946_v2, %v950_v3  ;;  %v883_v2 = vld [vmem:[#allocation16 + $0x10] sm:$0xff] }
 0x24c   : > { %1665 = vmatpush1.bf16.msra.mxu0 %v5093_v42  ;;  %1706 = vmatpush1.bf16.msra.mxu1 %v5095_v43  ;;  %v5134_v14 = vcombine.high %v953_v8, %v957_v9  ;;  %v5136_v15 = vcombine.high %v954_v10, %v958_v11  ;;  %v961_v16 = vld [vmem:[#allocation16 + $0x280] sm:$0xff]  ;;  %v962_v18 = vld [vmem:[#allocation16 + $0x288] sm:$0xff]  ;;  %v5133_v20 = vcombine.low %v953_v8, %v957_v9  ;;  %v887_v3 = vld [vmem:[#allocation16 + $0x30] sm:$0xff] }
 0x24d   : > { %1666 = vmatprep.subr.bf16.mxu0 %v5102_v44  ;;  %1707 = vmatprep.subr.bf16.mxu1 %v5104_v45  ;;  %v965_v17 = vld [vmem:[#allocation16 + $0x2a0] sm:$0xff]  ;;  %v966_v19 = vld [vmem:[#allocation16 + $0x2a8] sm:$0xff]  ;;  %v5135_v21 = vcombine.low %v954_v10, %v958_v11  ;;  %v5066_v8 = vcombine.high %v883_v2, %v887_v3  ;;  %v891_v9 = vld [vmem:[#allocation16 + $0x50] sm:$0xff] }
 0x24e   : > { %v5142_v22 = vcombine.high %v961_v16, %v965_v17  ;;  %v5144_v23 = vcombine.high %v962_v18, %v966_v19  ;;  %v969_v24 = vld [vmem:[#allocation16 + $0x2c0] sm:$0xff]  ;;  %v970_v26 = vld [vmem:[#allocation16 + $0x2c8] sm:$0xff]  ;;  %v5141_v28 = vcombine.low %v961_v16, %v965_v17  ;;  %v5143_v29 = vcombine.low %v962_v18, %v966_v19  ;;  %v895_v10 = vld [vmem:[#allocation16 + $0x70] sm:$0xff] }
 0x24f   : > { %v973_v25 = vld [vmem:[#allocation16 + $0x2e0] sm:$0xff]  ;;  %v974_v27 = vld [vmem:[#allocation16 + $0x2e8] sm:$0xff]  ;;  %v5074_v16 = vcombine.high %v891_v9, %v895_v10  ;;  %v899_v18 = vld [vmem:[#allocation16 + $0x90] sm:$0xff] }
 0x250   : > { %1667 = vmatpush1.bf16.msra.mxu0 %v5101_v50  ;;  %1708 = vmatpush1.bf16.msra.mxu1 %v5103_v51  ;;  %v5150_v30 = vcombine.high %v969_v24, %v973_v25  ;;  %v977_v31 = vld [vmem:[#allocation16 + $0x300] sm:$0xff]  ;;  %v5152_v32 = vcombine.high %v970_v26, %v974_v27  ;;  %v978_v34 = vld [vmem:[#allocation16 + $0x308] sm:$0xff]  ;;  %v5149_v36 = vcombine.low %v969_v24, %v973_v25  ;;  %v903_v19 = vld [vmem:[#allocation16 + $0xb0] sm:$0xff] }
 0x251   : > { %1668 = vmatprep.subr.bf16.mxu0 %v5110_v52  ;;  %1709 = vmatprep.subr.bf16.mxu1 %v5112_v54  ;;  %v981_v33 = vld [vmem:[#allocation16 + $0x320] sm:$0xff]  ;;  %v982_v35 = vld [vmem:[#allocation16 + $0x328] sm:$0xff]  ;;  %v5151_v39 = vcombine.low %v970_v26, %v974_v27  ;;  %v907_v25 = vld [vmem:[#allocation16 + $0xd0] sm:$0xff] }
 0x252   : > { %v985_v37 = vld [vmem:[#allocation16 + $0x340] sm:$0xff]  ;;  %v5158_v40 = vcombine.high %v977_v31, %v981_v33  ;;  %v986_v41 = vld [vmem:[#allocation16 + $0x348] sm:$0xff]  ;;  %v5160_v43 = vcombine.high %v978_v34, %v982_v35  ;;  %v5157_v44 = vcombine.low %v977_v31, %v981_v33  ;;  %v5159_v47 = vcombine.low %v978_v34, %v982_v35  ;;  %v911_v26 = vld [vmem:[#allocation16 + $0xf0] sm:$0xff] }
 0x253   : > { %v989_v38 = vld [vmem:[#allocation16 + $0x360] sm:$0xff]  ;;  %v990_v42 = vld [vmem:[#allocation16 + $0x368] sm:$0xff]  ;;  %v5090_v31 = vcombine.high %v907_v25, %v911_v26  ;;  %v915_v33 = vld [vmem:[#allocation16 + $0x110] sm:$0xff] }
 0x254   : > { %1669 = vmatpush1.bf16.msra.mxu0 %v5109_v60  ;;  %1710 = vmatpush1.bf16.msra.mxu1 %v5111_v61  ;;  %v993_v45 = vld [vmem:[#allocation16 + $0x380] sm:$0xff]  ;;  %v5166_v48 = vcombine.high %v985_v37, %v989_v38  ;;  %v994_v49 = vld [vmem:[#allocation16 + $0x388] sm:$0xff]  ;;  %v5168_v51 = vcombine.high %v986_v41, %v990_v42  ;;  %v5165_v52 = vcombine.low %v985_v37, %v989_v38  ;;  %v919_v34 = vld [vmem:[#allocation16 + $0x130] sm:$0xff] }
 0x255   : > { %1670 = vmatprep.subr.bf16.mxu0 %v5118_v62  ;;  %1711 = vmatprep.subr.bf16.mxu1 %v5120_v63  ;;  %v997_v46 = vld [vmem:[#allocation16 + $0x3a0] sm:$0xff]  ;;  %v998_v50 = vld [vmem:[#allocation16 + $0x3a8] sm:$0xff]  ;;  %v5167_v56 = vcombine.low %v986_v41, %v990_v42  ;;  %v920_v37 = vld [vmem:[#allocation16 + $0x138] sm:$0xff]  ;;  %v5089_v38 = vcombine.low %v907_v25, %v911_v26 }
 0x256   : > { %v1001_v54 = vld [vmem:[#allocation16 + $0x3c0] sm:$0xff]  ;;  %v5174_v58 = vcombine.high %v993_v45, %v997_v46  ;;  %v1002_v59 = vld [vmem:[#allocation16 + $0x3c8] sm:$0xff]  ;;  %v5176_v61 = vcombine.high %v994_v49, %v998_v50  ;;  %v5173_v62 = vcombine.low %v993_v45, %v997_v46  ;;  %v5175_v63 = vcombine.low %v994_v49, %v998_v50  ;;  %v927_v41 = vld [vmem:[#allocation16 + $0x170] sm:$0xff] }
 0x257   : > { %v1005_v55 = vld [vmem:[#allocation16 + $0x3e0] sm:$0xff]  ;;  %v1006_v60 = vld [vmem:[#allocation16 + $0x3e8] sm:$0xff]  ;;  %v5097_v45 = vcombine.low %v915_v33, %v919_v34  ;;  %v935_v49 = vld [vmem:[#allocation16 + $0x1b0] sm:$0xff] }
 0x258   : > { %1671 = vmatpush1.bf16.msra.mxu0 %v5117_v4  ;;  %1712 = vmatpush1.bf16.msra.mxu1 %v5119_v5  ;;  %v5182_v0 = vcombine.high %v1001_v54, %v1005_v55  ;;  %v5184_v1 = vcombine.high %v1002_v59, %v1006_v60  ;;  %v884_v4 = vld [vmem:[#allocation16 + $0x18] sm:$0xff]  ;;  %v971_v26 = vld [vmem:[#allocation16 + $0x2d0] sm:$0xff] }
 0x259   : > { %1672 = vmatprep.subr.bf16.mxu0 %v5126_v6  ;;  %1713 = vmatprep.subr.bf16.mxu1 %v5128_v7  ;;  %v888_v5 = vld [vmem:[#allocation16 + $0x38] sm:$0xff]  ;;  %v5181_v6 = vcombine.low %v1001_v54, %v1005_v55  ;;  %v5183_v7 = vcombine.low %v1002_v59, %v1006_v60  ;;  %v943_v59 = vld [vmem:[#allocation16 + $0x1f0] sm:$0xff] }
 0x25a   : > { %v5068_v11 = vcombine.high %v884_v4, %v888_v5  ;;  %v5067_v17 = vcombine.low %v884_v4, %v888_v5  ;;  %v948_v5 = vld [vmem:[#allocation16 + $0x218] sm:$0xff] }
 0x25c   : > { %1673 = vmatpush1.bf16.msra.mxu0 %v5125_v12  ;;  %1714 = vmatpush1.bf16.msra.mxu1 %v5127_v13  ;;  %v7101_v12 = vcombine.low %v7091_v53, %v7091_v53  ;;  %v892_v13 = vld [vmem:[#allocation16 + $0x58] sm:$0xff]  ;;  %v5073_v53 = vcombine.low %v891_v9, %v895_v10  ;;  %v955_v10 = vld [vmem:[#allocation16 + $0x250] sm:$0xff] }
 0x25d   : > { %1674 = vmatprep.subr.bf16.mxu0 %v5134_v14  ;;  %1715 = vmatprep.subr.bf16.mxu1 %v5136_v15  ;;  %v896_v14 = vld [vmem:[#allocation16 + $0x78] sm:$0xff]  ;;  %v5065_v15 = vcombine.low %v883_v2, %v887_v3  ;;  %v947_v2 = vld [vmem:[#allocation16 + $0x210] sm:$0xff] }
 0x25e   : > { %v5075_v24 = vcombine.low %v892_v13, %v896_v14  ;;  %v951_v3 = vld [vmem:[#allocation16 + $0x230] sm:$0xff] }
 0x260   : > { %1675 = vmatpush1.bf16.msra.mxu0 %v5133_v20  ;;  %1716 = vmatpush1.bf16.msra.mxu1 %v5135_v21  ;;  %v5076_v20 = vcombine.high %v892_v13, %v896_v14  ;;  %v900_v21 = vld [vmem:[#allocation16 + $0x98] sm:$0xff] }
 0x261   : > { %1676 = vmatprep.subr.bf16.mxu0 %v5142_v22  ;;  %1717 = vmatprep.subr.bf16.mxu1 %v5144_v23  ;;  %v904_v22 = vld [vmem:[#allocation16 + $0xb8] sm:$0xff]  ;;  %v5082_v23 = vcombine.high %v899_v18, %v903_v19 }
 0x262   : > { %v5084_v27 = vcombine.high %v900_v21, %v904_v22  ;;  %v956_v14 = vld [vmem:[#allocation16 + $0x258] sm:$0xff] }
 0x264   : > { %1677 = vmatpush1.bf16.msra.mxu0 %v5141_v28  ;;  %1718 = vmatpush1.bf16.msra.mxu1 %v5143_v29  ;;  %v908_v28 = vld [vmem:[#allocation16 + $0xd8] sm:$0xff] }
 0x265   : > { %1678 = vmatprep.subr.bf16.mxu0 %v5150_v30  ;;  %1719 = vmatprep.subr.bf16.mxu1 %v5152_v32  ;;  %v912_v29 = vld [vmem:[#allocation16 + $0xf8] sm:$0xff]  ;;  %v5081_v30 = vcombine.low %v899_v18, %v903_v19  ;;  %v5083_v32 = vcombine.low %v900_v21, %v904_v22  ;;  %v963_v19 = vld [vmem:[#allocation16 + $0x290] sm:$0xff] }
 0x266   : > { %v5092_v35 = vcombine.high %v908_v28, %v912_v29  ;;  %v964_v22 = vld [vmem:[#allocation16 + $0x298] sm:$0xff] }
 0x268   : > { %1679 = vmatpush1.bf16.msra.mxu0 %v5149_v36  ;;  %1720 = vmatpush1.bf16.msra.mxu1 %v5151_v39  ;;  %v916_v36 = vld [vmem:[#allocation16 + $0x118] sm:$0xff]  ;;  %v5098_v39 = vcombine.high %v915_v33, %v919_v34  ;;  %v979_v34 = vld [vmem:[#allocation16 + $0x310] sm:$0xff] }
 0x269   : > { %1680 = vmatprep.subr.bf16.mxu0 %v5158_v40  ;;  %1721 = vmatprep.subr.bf16.mxu1 %v5160_v43  ;;  %v5091_v40 = vcombine.low %v908_v28, %v912_v29  ;;  %v5100_v42 = vcombine.high %v916_v36, %v920_v37  ;;  %v924_v43 = vld [vmem:[#allocation16 + $0x158] sm:$0xff] }
 0x26a   : > { %v972_v29 = vld [vmem:[#allocation16 + $0x2d8] sm:$0xff] }
 0x26c   : > { %1681 = vmatpush1.bf16.msra.mxu0 %v5157_v44  ;;  %1722 = vmatpush1.bf16.msra.mxu1 %v5159_v47  ;;  %v928_v44 = vld [vmem:[#allocation16 + $0x178] sm:$0xff]  ;;  %v5099_v47 = vcombine.low %v916_v36, %v920_v37 }
 0x26d   : > { %1682 = vmatprep.subr.bf16.mxu0 %v5166_v48  ;;  %1723 = vmatprep.subr.bf16.mxu1 %v5168_v51  ;;  %v931_v48 = vld [vmem:[#allocation16 + $0x190] sm:$0xff]  ;;  %v5108_v50 = vcombine.high %v924_v43, %v928_v44  ;;  %v932_v51 = vld [vmem:[#allocation16 + $0x198] sm:$0xff] }
 0x26e   : > { %v5114_v55 = vcombine.high %v931_v48, %v935_v49  ;;  %v980_v37 = vld [vmem:[#allocation16 + $0x318] sm:$0xff] }
 0x270   : > { %1683 = vmatpush1.bf16.msra.mxu0 %v5165_v52  ;;  %1724 = vmatpush1.bf16.msra.mxu1 %v5167_v56  ;;  %v936_v52 = vld [vmem:[#allocation16 + $0x1b8] sm:$0xff]  ;;  %v5107_v56 = vcombine.low %v924_v43, %v928_v44 }
 0x271   : > { %1684 = vmatprep.subr.bf16.mxu0 %v5174_v58  ;;  %1725 = vmatprep.subr.bf16.mxu1 %v5176_v61  ;;  %v939_v58 = vld [vmem:[#allocation16 + $0x1d0] sm:$0xff]  ;;  %v5116_v60 = vcombine.high %v932_v51, %v936_v52  ;;  %v940_v61 = vld [vmem:[#allocation16 + $0x1d8] sm:$0xff] }
 0x272   : > { %v988_v44 = vld [vmem:[#allocation16 + $0x358] sm:$0xff] }
 0x274   : > { %1685 = vmatpush1.bf16.msra.mxu0 %v5173_v62  ;;  %1726 = vmatpush1.bf16.msra.mxu1 %v5175_v63  ;;  %v944_v62 = vld [vmem:[#allocation16 + $0x1f8] sm:$0xff]  ;;  %v5113_v63 = vcombine.low %v931_v48, %v935_v49  ;;  %v995_v49 = vld [vmem:[#allocation16 + $0x390] sm:$0xff] }
 0x275   : > { %1686 = vmatprep.subr.bf16.mxu0 %v5182_v0  ;;  %1727 = vmatprep.subr.bf16.mxu1 %v5184_v1  ;;  %v5122_v0 = vcombine.high %v939_v58, %v943_v59  ;;  %v5115_v1 = vcombine.low %v932_v51, %v936_v52  ;;  %v5124_v4 = vcombine.high %v940_v61, %v944_v62  ;;  %v996_v52 = vld [vmem:[#allocation16 + $0x398] sm:$0xff] }
 0x276   : > { %v5123_v9 = vcombine.low %v940_v61, %v944_v62  ;;  %v1004_v62 = vld [vmem:[#allocation16 + $0x3d8] sm:$0xff] }
 0x278   : > { %1687 = vmatpush1.bf16.msra.mxu0 %v5181_v6  ;;  %1728 = vmatpush1.bf16.msra.mxu1 %v5183_v7  ;;  %v952_v6 = vld [vmem:[#allocation16 + $0x238] sm:$0xff]  ;;  %v5121_v7 = vcombine.low %v939_v58, %v943_v59  ;;  %v1003_v59 = vld [vmem:[#allocation16 + $0x3d0] sm:$0xff] }
 0x279   : > { %1738 = vmatprep.subr.bf16.mxu0 %v5066_v8  ;;  %1779 = vmatprep.subr.bf16.mxu1 %v5068_v11  ;;  %v5130_v8 = vcombine.high %v947_v2, %v951_v3  ;;  %v959_v11 = vld [vmem:[#allocation16 + $0x270] sm:$0xff]  ;;  %v5132_v13 = vcombine.high %v948_v5, %v952_v6  ;;  %v5131_v18 = vcombine.low %v948_v5, %v952_v6  ;;  %v6449_v6 = vmov 0.0  }
 0x27b   : > { %1689 = vmatmul.mubr.bf16.vlgmr.msra.gmra.mrb[0].mxu0 %v7101_v12  ;;  %1730 = vmatmul.mubr.bf16.vlgmr.msra.gmra.mrb[0].mxu1 %v7101_v12 }
 0x27c   : > { %1739 = vmatpush1.bf16.msra.mxu0 %v5065_v15  ;;  %1780 = vmatpush1.bf16.msra.mxu1 %v5067_v17  ;;  %v960_v15 = vld [vmem:[#allocation16 + $0x278] sm:$0xff]  ;;  %v5138_v17 = vcombine.high %v955_v10, %v959_v11 }
 0x27d   : > { %1740 = vmatprep.subr.bf16.mxu0 %v5074_v16  ;;  %1781 = vmatprep.subr.bf16.mxu1 %v5076_v20  ;;  %v5129_v16 = vcombine.low %v947_v2, %v951_v3  ;;  %v967_v20 = vld [vmem:[#allocation16 + $0x2b0] sm:$0xff]  ;;  %v5140_v21 = vcombine.high %v956_v14, %v960_v15  ;;  %v5139_v25 = vcombine.low %v956_v14, %v960_v15 }
 0x27e   : > { %1770 = vmatprep.mubr.bf16.mxu0 %v7095_v57  ;;  %1811 = vmatprep.mubr.bf16.mxu1 %v7095_v57  ;;  %v923_v57 = vld [vmem:[#allocation16 + $0x150] sm:$0xff] }
 0x27f   : > { %v5106_v46 = vcombine.high %v923_v57, %v927_v41  ;;  %v5105_v54 = vcombine.low %v923_v57, %v927_v41  ;;  %v987_v41 = vld [vmem:[#allocation16 + $0x350] sm:$0xff] }
 0x280   : > { %1741 = vmatpush1.bf16.msra.mxu0 %v5073_v53  ;;  %1782 = vmatpush1.bf16.msra.mxu1 %v5075_v24  ;;  %v968_v53 = vld [vmem:[#allocation16 + $0x2b8] sm:$0xff]  ;;  %v5146_v24 = vcombine.high %v963_v19, %v967_v20 }
 0x281   : > { %1742 = vmatprep.subr.bf16.mxu0 %v5082_v23  ;;  %1783 = vmatprep.subr.bf16.mxu1 %v5084_v27  ;;  %v5137_v23 = vcombine.low %v955_v10, %v959_v11  ;;  %v975_v27 = vld [vmem:[#allocation16 + $0x2f0] sm:$0xff]  ;;  %v5148_v28 = vcombine.high %v964_v22, %v968_v53  ;;  %v5147_v33 = vcombine.low %v964_v22, %v968_v53  ;;  %v1894_v53 = vld [vmem:[#allocation14] sm:$0xff] }
 0x284   : > { %1743 = vmatpush1.bf16.msra.mxu0 %v5081_v30  ;;  %1784 = vmatpush1.bf16.msra.mxu1 %v5083_v32  ;;  %v976_v30 = vld [vmem:[#allocation16 + $0x2f8] sm:$0xff]  ;;  %v5154_v32 = vcombine.high %v971_v26, %v975_v27 }
 0x285   : > { %1744 = vmatprep.subr.bf16.mxu0 %v5090_v31  ;;  %1785 = vmatprep.subr.bf16.mxu1 %v5092_v35  ;;  %v5145_v31 = vcombine.low %v963_v19, %v967_v20  ;;  %v983_v35 = vld [vmem:[#allocation16 + $0x330] sm:$0xff]  ;;  %v5156_v36 = vcombine.high %v972_v29, %v976_v30  ;;  %v5155_v57 = vcombine.low %v972_v29, %v976_v30 }
 0x288   : > { %1745 = vmatpush1.bf16.msra.mxu0 %v5089_v38  ;;  %1786 = vmatpush1.bf16.msra.mxu1 %v5091_v40  ;;  %v984_v38 = vld [vmem:[#allocation16 + $0x338] sm:$0xff]  ;;  %v5162_v40 = vcombine.high %v979_v34, %v983_v35 }
 0x289   : > { %1746 = vmatprep.subr.bf16.mxu0 %v5098_v39  ;;  %1787 = vmatprep.subr.bf16.mxu1 %v5100_v42  ;;  %v5153_v39 = vcombine.low %v971_v26, %v975_v27  ;;  %v991_v42 = vld [vmem:[#allocation16 + $0x370] sm:$0xff]  ;;  %v5164_v43 = vcombine.high %v980_v37, %v984_v38  ;;  %v5163_v48 = vcombine.low %v980_v37, %v984_v38 }
 0x28c   : > { %1747 = vmatpush1.bf16.msra.mxu0 %v5097_v45  ;;  %1788 = vmatpush1.bf16.msra.mxu1 %v5099_v47  ;;  %v992_v45 = vld [vmem:[#allocation16 + $0x378] sm:$0xff]  ;;  %v5170_v47 = vcombine.high %v987_v41, %v991_v42 }
 0x28d   : > { %1748 = vmatprep.subr.bf16.mxu0 %v5106_v46  ;;  %1789 = vmatprep.subr.bf16.mxu1 %v5108_v50  ;;  %v5161_v46 = vcombine.low %v979_v34, %v983_v35  ;;  %v999_v50 = vld [vmem:[#allocation16 + $0x3b0] sm:$0xff]  ;;  %v5172_v51 = vcombine.high %v988_v44, %v992_v45  ;;  %v5171_v58 = vcombine.low %v988_v44, %v992_v45 }
 0x290   : > { %1749 = vmatpush1.bf16.msra.mxu0 %v5105_v54  ;;  %1790 = vmatpush1.bf16.msra.mxu1 %v5107_v56  ;;  %v1000_v54 = vld [vmem:[#allocation16 + $0x3b8] sm:$0xff]  ;;  %v5178_v56 = vcombine.high %v995_v49, %v999_v50 }
 0x291   : > { %1750 = vmatprep.subr.bf16.mxu0 %v5114_v55  ;;  %1791 = vmatprep.subr.bf16.mxu1 %v5116_v60  ;;  %v5169_v55 = vcombine.low %v987_v41, %v991_v42  ;;  %v1007_v60 = vld [vmem:[#allocation16 + $0x3f0] sm:$0xff]  ;;  %v5180_v61 = vcombine.high %v996_v52, %v1000_v54  ;;  %v5179_v2 = vcombine.low %v996_v52, %v1000_v54 }
 0x294   : > { %1751 = vmatpush1.bf16.msra.mxu0 %v5113_v63  ;;  %1792 = vmatpush1.bf16.msra.mxu1 %v5115_v1  ;;  %v1008_v63 = vld [vmem:[#allocation16 + $0x3f8] sm:$0xff]  ;;  %v5186_v1 = vcombine.high %v1003_v59, %v1007_v60 }
 0x295   : > { %1752 = vmatprep.subr.bf16.mxu0 %v5122_v0  ;;  %1793 = vmatprep.subr.bf16.mxu1 %v5124_v4  ;;  %v5177_v0 = vcombine.low %v995_v49, %v999_v50  ;;  %v5188_v3 = vcombine.high %v1004_v62, %v1008_v63  ;;  %v5185_v4 = vcombine.low %v1003_v59, %v1007_v60  ;;  %v5729_v59 = vld [vmem:[#allocation20] ss:$8 sps:$4 sm:$0xff]   ;;  %v5734_v60 = vld [vmem:[#allocation20 + $0x14] ss:$8 sps:$4 sm:$0xff]  }
 0x296   : > { %v5187_v5 = vcombine.low %v1004_v62, %v1008_v63  ;;  %v5737_v62 = vld [vmem:[#allocation20 + $0x24] ss:$8 sps:$4 sm:$0xff]   ;;  %v5735_v63 = vld [vmem:[#allocation20 + $0x20] ss:$8 sps:$4 sm:$0xff]  }
 0x298   : > { %1753 = vmatpush1.bf16.msra.mxu0 %v5121_v7  ;;  %1794 = vmatpush1.bf16.msra.mxu1 %v5123_v9 }
 0x299   : > { %1754 = vmatprep.subr.bf16.mxu0 %v5130_v8  ;;  %1795 = vmatprep.subr.bf16.mxu1 %v5132_v13 }
 0x29c   : > { %1755 = vmatpush1.bf16.msra.mxu0 %v5129_v16  ;;  %1796 = vmatpush1.bf16.msra.mxu1 %v5131_v18 }
 0x29d   : > { %1756 = vmatprep.subr.bf16.mxu0 %v5138_v17  ;;  %1797 = vmatprep.subr.bf16.mxu1 %v5140_v21 }
 0x2a0   : > { %1757 = vmatpush1.bf16.msra.mxu0 %v5137_v23  ;;  %1798 = vmatpush1.bf16.msra.mxu1 %v5139_v25  ;;  %v6452_v23 = vmov 0  }
 0x2a1   : > { %1758 = vmatprep.subr.bf16.mxu0 %v5146_v24  ;;  %1799 = vmatprep.subr.bf16.mxu1 %v5148_v28 }
 0x2a2   : > { %5725 = vset.pattern.permute.xlu0 %v6452_v23  ;;  %5726 = vset.pattern.permute.xlu1 %v6452_v23 }
 0x2a4   : > { %1759 = vmatpush1.bf16.msra.mxu0 %v5145_v31  ;;  %1800 = vmatpush1.bf16.msra.mxu1 %v5147_v33 }
 0x2a5   : > { %1760 = vmatprep.subr.bf16.mxu0 %v5154_v32  ;;  %1801 = vmatprep.subr.bf16.mxu1 %v5156_v36 }
 0x2a8   : > { %1761 = vmatpush1.bf16.msra.mxu0 %v5153_v39  ;;  %1802 = vmatpush1.bf16.msra.mxu1 %v5155_v57 }
 0x2a9   : > { %1762 = vmatprep.subr.bf16.mxu0 %v5162_v40  ;;  %1803 = vmatprep.subr.bf16.mxu1 %v5164_v43 }
 0x2ac   : > { %1763 = vmatpush1.bf16.msra.mxu0 %v5161_v46  ;;  %1804 = vmatpush1.bf16.msra.mxu1 %v5163_v48 }
 0x2ad   : > { %1764 = vmatprep.subr.bf16.mxu0 %v5170_v47  ;;  %1805 = vmatprep.subr.bf16.mxu1 %v5172_v51 }
 0x2b0   : > { %1765 = vmatpush1.bf16.msra.mxu0 %v5169_v55  ;;  %1806 = vmatpush1.bf16.msra.mxu1 %v5171_v58  ;;  %v5731_v55 = vld [vmem:[#allocation20 + $0x4] ss:$8 sps:$4 sm:$0xff]   ;;  %v1869_v58 = vld [vmem:[#allocation13] sm:$0xf] }
 0x2b1   : > { %1766 = vmatprep.subr.bf16.mxu0 %v5178_v56  ;;  %1807 = vmatprep.subr.bf16.mxu1 %v5180_v61  ;;  %v5732_v61 = vld [vmem:[#allocation20 + $0x10] ss:$8 sps:$4 sm:$0xff]  }
 0x2b4   : > { %1767 = vmatpush1.bf16.msra.mxu0 %v5177_v0  ;;  %1808 = vmatpush1.bf16.msra.mxu1 %v5179_v2  ;;  %v5740_v0 = vld [vmem:[#allocation20 + $0x34] ss:$8 sps:$4 sm:$0xff]  }
 0x2b5   : > { %1768 = vmatprep.subr.bf16.mxu0 %v5186_v1  ;;  %1809 = vmatprep.subr.bf16.mxu1 %v5188_v3  ;;  %v5738_v1 = vld [vmem:[#allocation20 + $0x30] ss:$8 sps:$4 sm:$0xff]  }
 0x2b8   : > { %1769 = vmatpush1.bf16.msra.mxu0 %v5185_v4  ;;  %1810 = vmatpush1.bf16.msra.mxu1 %v5187_v5 }
 0x2b9   : > { %5450 = vmatprep.subr.bf16.mxu0 %v6449_v6  ;;  %5470 = vmatprep.subr.bf16.mxu1 %v6449_v6 }
 0x2bb   : > { %1771 = vmatmul.mubr.bf16.vlgmr.msra.gmra.mrb[4].mxu0 %v7101_v12  ;;  %1812 = vmatmul.mubr.bf16.vlgmr.msra.gmra.mrb[4].mxu1 %v7101_v12 }
 0x2bc   : > { %5466 = vmatprep.mubr.msk.bf16.mxu0 %vm6451_vm1, %v6449_v6  ;;  %5486 = vmatprep.mubr.msk.bf16.mxu1 %vm6451_vm1, %v6449_v6 }
 0x34e   : > { %v1690_v7 = vpop.f32.mrb[0].mxu0  ;;  %v1731_v8 = vpop.f32.mrb[0].mxu1 }
 0x34f   : > { %1821 = vst.msk [vmem:[#allocation2] sm:$0xff] %vm1820_vm0, %v1690_v7  ;;  %1823 = vrot.lane.b32.xlu0 %v1690_v7, %s6450_s2  ;;  %v1692_v9 = vpop.f32.mrb[1].mxu0  ;;  %1833 = vst.msk [vmem:[#allocation2 + $0x20] sm:$0xff] %vm1820_vm0, %v1731_v8  ;;  %1835 = vrot.lane.b32.xlu1 %v1731_v8, %s6450_s2  ;;  %v1733_v10 = vpop.f32.mrb[1].mxu1 }
 0x350   : > { %1827 = vst.msk [vmem:[#allocation2 + $0x10] sm:$0xff] %vm1820_vm0, %v1692_v9  ;;  %v1694_v12 = vpop.f32.mrb[2].mxu0  ;;  %1839 = vst.msk [vmem:[#allocation2 + $0x30] sm:$0xff] %vm1820_vm0, %v1733_v10  ;;  %v1735_v13 = vpop.f32.mrb[2].mxu1 }
 0x351   : > { %v1695_v11 = vpop.f32.mrb[3].mxu0  ;;  %v1736_v14 = vpop.f32.mrb[3].mxu1 }
 0x353   : > { %1829 = vrot.lane.b32.xlu0 %v1692_v9, %s6450_s2  ;;  %1841 = vrot.lane.b32.xlu1 %v1733_v10, %s6450_s2 }
 0x356   : > { %v1870_v28 = vld [vmem:[#allocation2] sm:$0xff] }
 0x357   : > { %v1872_v31 = vld [vmem:[#allocation2 + $0x10] sm:$0xff]  ;;  %v1874_v35 = vld [vmem:[#allocation2 + $0x20] sm:$0xff] }
 0x358   : > { %v1876_v38 = vld [vmem:[#allocation2 + $0x30] sm:$0xff] }
 0x38e   : > { %v1772_v15 = vpop.f32.mrb[4].mxu0  ;;  %v1813_v17 = vpop.f32.mrb[4].mxu1 }
 0x38f   : > { %1845 = vst.msk [vmem:[#allocation2 + $0x40] sm:$0xff] %vm1820_vm0, %v1772_v15  ;;  %1847 = vrot.lane.b32.xlu0 %v1772_v15, %s6450_s2  ;;  %v1774_v16 = vpop.f32.mrb[5].mxu0  ;;  %1857 = vst.msk [vmem:[#allocation2 + $0x60] sm:$0xff] %vm1820_vm0, %v1813_v17  ;;  %v1815_v19 = vpop.f32.mrb[5].mxu1  ;;  %v2121_v15 = vld [vmem:[#allocation19] sm:$0xff] }
 0x390   : > { %1851 = vst.msk [vmem:[#allocation2 + $0x50] sm:$0xff] %vm1820_vm0, %v1774_v16  ;;  %1853 = vrot.lane.b32.xlu1 %v1774_v16, %s6450_s2  ;;  %v1776_v18 = vpop.f32.mrb[6].mxu0  ;;  %1863 = vst.msk [vmem:[#allocation2 + $0x70] sm:$0xff] %vm1820_vm0, %v1815_v19  ;;  %v1817_v21 = vpop.f32.mrb[6].mxu1  ;;  %v2122_v16 = vld [vmem:[#allocation19 + $0x8] sm:$0xff] }
 0x391   : > { %v1777_v20 = vpop.f32.mrb[7].mxu0  ;;  %v1818_v22 = vpop.f32.mrb[7].mxu1 }
 0x393   : > { %1859 = vrot.lane.b32.xlu0 %v1813_v17, %s6450_s2 }
 0x394   : > { %1865 = vrot.lane.b32.xlu1 %v1815_v19, %s6450_s2 }
 0x396   : > { %v1878_v43 = vld [vmem:[#allocation2 + $0x40] sm:$0xff] }
 0x397   : > { %1897 = vperm.xlu0 %5725, %v1894_v53   ;;  %v1880_v47 = vld [vmem:[#allocation2 + $0x50] sm:$0xff]  ;;  %v1882_v50 = vld [vmem:[#allocation2 + $0x60] sm:$0xff] }
 0x398   : > { %v1884_v54 = vld [vmem:[#allocation2 + $0x70] sm:$0xff] }
 0x3c1   : > { %v1824_v24 = vpop.permute.xlu0 %1823  ;;  %v1836_v25 = vpop.permute.xlu1 %1835 }
 0x3c2   : > { %1826 = vst.msk [vmem:[#allocation2 + $0x8] sm:$0xff] %vm1820_vm0, %v1824_v24  ;;  %1838 = vst.msk [vmem:[#allocation2 + $0x28] sm:$0xff] %vm1820_vm0, %v1836_v25 }
 0x3c5   : > { %v1830_v26 = vpop.permute.xlu0 %1829  ;;  %v1842_v27 = vpop.permute.xlu1 %1841 }
 0x3c6   : > { %1832 = vst.msk [vmem:[#allocation2 + $0x18] sm:$0xff] %vm1820_vm0, %v1830_v26  ;;  %1844 = vst.msk [vmem:[#allocation2 + $0x38] sm:$0xff] %vm1820_vm0, %v1842_v27 }
 0x3c9   : > { %v1871_v29 = vld [vmem:[#allocation2 + $0x8] sm:$0xff] }
 0x3ca   : > { %v1886_v30 = vpack.c.bf16 %v1871_v29, %v1870_v28  ;;  %v1875_v34 = vld [vmem:[#allocation2 + $0x28] sm:$0xff] }
 0x3cb   : > { %v1888_v36 = vpack.c.bf16 %v1875_v34, %v1874_v35 }
 0x3cc   : > { %5451 = vmatpush3.bf16.msra.mxu0 %v1886_v30 }
 0x3cd   : > { %5452 = vmatprep.subr.bf16.mxu0 %v6449_v6  ;;  %v1873_v32 = vld [vmem:[#allocation2 + $0x18] sm:$0xff] }
 0x3ce   : > { %v1887_v33 = vpack.c.bf16 %v1873_v32, %v1872_v31  ;;  %v1877_v37 = vld [vmem:[#allocation2 + $0x38] sm:$0xff] }
 0x3cf   : > { %v1889_v39 = vpack.c.bf16 %v1877_v37, %v1876_v38 }
 0x3d0   : > { %5453 = vmatpush3.bf16.msra.mxu0 %v1887_v33 }
 0x3d1   : > { %5454 = vmatprep.subr.bf16.mxu0 %v6449_v6 }
 0x3d4   : > { %5455 = vmatpush3.bf16.msra.mxu0 %v1888_v36 }
 0x3d5   : > { %5456 = vmatprep.subr.bf16.mxu0 %v6449_v6 }
 0x3d8   : > { %5457 = vmatpush3.bf16.msra.mxu0 %v1889_v39 }
 0x3d9   : > { %5458 = vmatprep.subr.bf16.mxu0 %v6449_v6 }
 0x401   : > { %v1848_v40 = vpop.permute.xlu0 %1847 }
 0x402   : > { %1850 = vst.msk [vmem:[#allocation2 + $0x48] sm:$0xff] %vm1820_vm0, %v1848_v40  ;;  %v1854_v57 = vpop.permute.xlu1 %1853 }
 0x403   : > { %1856 = vst.msk [vmem:[#allocation2 + $0x58] sm:$0xff] %vm1820_vm0, %v1854_v57 }
 0x405   : > { %v1860_v41 = vpop.permute.xlu0 %1859 }
 0x406   : > { %1862 = vst.msk [vmem:[#allocation2 + $0x68] sm:$0xff] %vm1820_vm0, %v1860_v41  ;;  %v1866_v42 = vpop.permute.xlu1 %1865 }
 0x407   : > { %1868 = vst.msk [vmem:[#allocation2 + $0x78] sm:$0xff] %vm1820_vm0, %v1866_v42 }
 0x409   : > { %v1879_v44 = vld [vmem:[#allocation2 + $0x48] sm:$0xff] }
 0x40a   : > { %v1890_v45 = vpack.c.bf16 %v1879_v44, %v1878_v43  ;;  %v1881_v46 = vld [vmem:[#allocation2 + $0x58] sm:$0xff] }
 0x40b   : > { %v1891_v48 = vpack.c.bf16 %v1881_v46, %v1880_v47 }
 0x40c   : > { %5459 = vmatpush3.bf16.msra.mxu0 %v1890_v45 }
 0x40d   : > { %5460 = vmatprep.subr.bf16.mxu0 %v6449_v6  ;;  %v1883_v49 = vld [vmem:[#allocation2 + $0x68] sm:$0xff] }
 0x40e   : > { %v1892_v51 = vpack.c.bf16 %v1883_v49, %v1882_v50  ;;  %v1885_v52 = vld [vmem:[#allocation2 + $0x78] sm:$0xff] }
 0x40f   : > { %v1893_v56 = vpack.c.bf16 %v1885_v52, %v1884_v54 }
 0x410   : > { %5461 = vmatpush3.bf16.msra.mxu0 %v1891_v48 }
 0x411   : > { %5462 = vmatprep.subr.bf16.mxu0 %v6449_v6 }
 0x414   : > { %5463 = vmatpush3.bf16.msra.mxu0 %v1892_v51 }
 0x415   : > { %5464 = vmatprep.subr.bf16.mxu0 %v6449_v6 }
 0x416   : > { %v1898_v2 = vpop.permute.xlu0 %1897 }
 0x418   : > { %5465 = vmatpush3.bf16.msra.mxu0 %v1893_v56  ;;  %v2182_v56 = vlaneseq }
 0x419   : > { %1993 = vmatprep.subr.bf16.mxu0 %v5731_v55  ;;  %v5741_v55 = vld [vmem:[#allocation17] sm:$0xff]  }
 0x41a   : > { %vm2184_vm3 = vcmp.lt.s32.totalorder %v2182_v56, 16  ;;  %vm2213_vm4 = vcmp.ge.s32.totalorder %v2182_v56, 16  ;;  %vm2214_vm5 = vcmp.lt.s32.totalorder %v2182_v56, 32  ;;  %vm2221_vm7 = vcmp.ge.s32.totalorder %v2182_v56, 32 }
 0x41b   : > { %5467 = vmatmul.mubr.bf16.vlgmr.msra.gmra.mrb[8].mxu0 %v1869_v58  ;;  %v6459_v58 = vmov 1966171168   ;;  %vm2215_vm6 = vmand %vm2213_vm4, %vm2214_vm5  ;;  %vm2222_vm8 = vcmp.lt.s32.totalorder %v2182_v56, 48  ;;  %vm7224_vm10 = vcmp.ge.s32.totalorder %v2182_v56, 48  ;;  %vm2230_vm11 = vcmp.lt.s32.totalorder %v2182_v56, 64 }
 0x41c   : > { %1994 = vmatpush1.bf16.msra.mxu0 %v5729_v59  ;;  %2025 = vmatprep.mubr.bf16.mxu0 %v6452_v23  ;;  %v2189_v59 = vunpack.c.l.s4 %v6459_v58  ;;  %vm2223_vm9 = vmand %vm2221_vm7, %vm2222_vm8  ;;  %vm7230_vm12 = vcmp.ge.s32.totalorder %v2182_v56, 64  ;;  %vm7235_vm13 = vcmp.lt.s32.totalorder %v2182_v56, 80  ;;  %vm7246_vm1 = vcmp.ge.s32.totalorder %v2182_v56, 80 }
 0x41d   : > { %1995 = vmatprep.subr.bf16.mxu0 %v5734_v60  ;;  %vm2231_vm14 = vmand %vm7224_vm10, %vm2230_vm11  ;;  %vm2274_vm5 = vcmp.ge.s32.totalorder %v2182_v56, 96  ;;  %vm2282_vm8 = vcmp.ge.s32.totalorder %v2182_v56, 112  ;;  %vm2548_vm11 = vcmask 516096  }
 0x41e   : > { %v2190_v60 = vunpack.c.0.s8 %v2189_v59  ;;  %vm2253_vm15 = vmand %vm7230_vm12, %vm7235_vm13  ;;  %vm2611_vm12 = vcmask 261120   ;;  %vm2656_vm13 = vcmask 122880  }
 0x420   : > { %1996 = vmatpush1.bf16.msra.mxu0 %v5732_v61  ;;  %v7187_v61 = vshrl.u32 %v2182_v56, 7 }
 0x421   : > { %1997 = vmatprep.subr.bf16.mxu0 %v5737_v62 }
 0x424   : > { %1998 = vmatpush1.bf16.msra.mxu0 %v5735_v63 }
 0x425   : > { %1999 = vmatprep.subr.bf16.mxu0 %v5740_v0 }
 0x428   : > { %2000 = vmatpush1.bf16.msra.mxu0 %v5738_v1 }
 0x4ee   : > { %v1934_v3 = vpop.f32.mrb[8].mxu0 }
 0x4ef   : > { %v1935_v4 = vadd.f32 %v1934_v3, %v1898_v2  ;;  %v5468_v5 = vpop.f32.mrb[9].mxu0 }
 0x4f0   : > { %v1937_v7 = vpop.f32.mrb[10].mxu0 }
 0x4f1   : > { %v1940_v8 = vmax.f32 %v1935_v4, 0.0  ;;  %v5469_v9 = vpop.f32.mrb[11].mxu0 }
 0x4f3   : > { %v1941_v12 = vpack.c.bf16 %v1940_v8, %v1940_v8  ;;  %v5742_v8 = vld [vmem:[#allocation22 + $0x40] sm:$0xff]  }
 0x4f4   : > { %5406 = vmatprep.subr.bf16.mxu0 %v5742_v8 }
 0x4f5   : > { %5197 = vmatmul.mubr.msk.bf16.vlgmr.msra.gmra.mrb[12].mxu0 %vm1820_vm0, %v1941_v12 }
 0x5c8   : > { %v2027_v10 = vpop.f32.mrb[12].mxu0 }
 0x5c9   : > { %2035 = vst.msk [vmem:[#allocation3] sm:$0xff] %vm2034_vm2, %v2027_v10  ;;  %2045 = vrot.lane.b32.xlu0 %v2027_v10, %s6453_s1  ;;  %2037 = vrot.lane.b32.xlu1 %v2027_v10, %s6454_s29  ;;  %v2029_v11 = vpop.f32.mrb[13].mxu0 }
 0x5ca   : > { %2065 = vst.msk [vmem:[#allocation3 + $0x40] sm:$0xff] %vm2034_vm2, %v2029_v11  ;;  %v2031_v13 = vpop.f32.mrb[14].mxu0 }
 0x5cb   : > { %v2032_v14 = vpop.f32.mrb[15].mxu0 }
 0x5cc   : > { %v5744_v14 = vld [vmem:[#allocation22 + $0x48] sm:$0xff]  }
 0x5cd   : > { %2053 = vrot.lane.b32.xlu0 %v2027_v10, %s6455_s30  ;;  %2041 = vrot.lane.b32.xlu1 %v2027_v10, %s6456_s20 }
 0x5d0   : > { %v2097_v53 = vld [vmem:[#allocation3] sm:$0xff] }
 0x5d1   : > { %2061 = vrot.lane.b32.xlu0 %v2027_v10, %s6457_s0  ;;  %2049 = vrot.lane.b32.xlu1 %v2027_v10, %s6450_s2  ;;  %v2105_v41 = vld [vmem:[#allocation3 + $0x40] sm:$0xff] }
 0x5d5   : > { %2057 = vrot.lane.b32.xlu1 %v2027_v10, %s6458_s8  ;;  %2071 = vrot.lane.b32.xlu0 %v2029_v11, %s6456_s20  ;;  %v5743_v10 = vld [vmem:[#allocation22] sm:$0xff]  }
 0x5d6   : > { %5407 = vmatpush3.bf16.msra.mxu0 %v5743_v10 }
 0x5d7   : > { %5408 = vmatprep.subr.bf16.mxu0 %v5744_v14 }
 0x5d9   : > { %2079 = vrot.lane.b32.xlu0 %v2029_v11, %s6450_s2  ;;  %2067 = vrot.lane.b32.xlu1 %v2029_v11, %s6454_s29 }
 0x5dd   : > { %2087 = vrot.lane.b32.xlu0 %v2029_v11, %s6458_s8  ;;  %2075 = vrot.lane.b32.xlu1 %v2029_v11, %s6453_s1 }
 0x5e1   : > { %2125 = vperm.xlu0 %5725, %v2121_v15   ;;  %2083 = vrot.lane.b32.xlu1 %v2029_v11, %s6455_s30 }
 0x5e5   : > { %2091 = vrot.lane.b32.xlu1 %v2029_v11, %s6457_s0 }
 0x5e9   : > { %2130 = vperm.xlu1 %5726, %v2122_v16  }
 0x63b   : > { %v2046_v17 = vpop.permute.xlu0 %2045  ;;  %v2038_v18 = vpop.permute.xlu1 %2037 }
 0x63c   : > { %2048 = vst.msk [vmem:[#allocation3 + $0x18] sm:$0xff] %vm2034_vm2, %v2046_v17  ;;  %2040 = vst.msk [vmem:[#allocation3 + $0x8] sm:$0xff] %vm2034_vm2, %v2038_v18 }
 0x63f   : > { %v2054_v19 = vpop.permute.xlu0 %2053  ;;  %v2042_v20 = vpop.permute.xlu1 %2041 }
 0x640   : > { %2056 = vst.msk [vmem:[#allocation3 + $0x28] sm:$0xff] %vm2034_vm2, %v2054_v19  ;;  %2044 = vst.msk [vmem:[#allocation3 + $0x10] sm:$0xff] %vm2034_vm2, %v2042_v20  ;;  %v5745_v19 = vld [vmem:[#allocation22 + $0x8] sm:$0xff]  }
 0x641   : > { %5409 = vmatpush3.bf16.msra.mxu0 %v5745_v19 }
 0x643   : > { %v2062_v21 = vpop.permute.xlu0 %2061  ;;  %v2050_v22 = vpop.permute.xlu1 %2049  ;;  %v2098_v24 = vld [vmem:[#allocation3 + $0x8] sm:$0xff]  ;;  %v2100_v29 = vld [vmem:[#allocation3 + $0x18] sm:$0xff] }
 0x644   : > { %2064 = vst.msk [vmem:[#allocation3 + $0x38] sm:$0xff] %vm2034_vm2, %v2062_v21  ;;  %2052 = vst.msk [vmem:[#allocation3 + $0x20] sm:$0xff] %vm2034_vm2, %v2050_v22  ;;  %v2113_v25 = vpack.c.bf16 %v2098_v24, %v2097_v53  ;;  %v5746_v53 = vld [vmem:[#allocation22 + $0x50] sm:$0xff]  }
 0x645   : > { %5410 = vmatprep.subr.bf16.mxu0 %v5746_v53 }
 0x646   : > { %5471 = vmatpush3.bf16.msra.mxu1 %v2113_v25 }
 0x647   : > { %v2058_v26 = vpop.permute.xlu1 %2057  ;;  %v2072_v27 = vpop.permute.xlu0 %2071  ;;  %5472 = vmatprep.subr.bf16.mxu1 %v6449_v6  ;;  %v2099_v28 = vld [vmem:[#allocation3 + $0x10] sm:$0xff]  ;;  %v2102_v34 = vld [vmem:[#allocation3 + $0x28] sm:$0xff] }
 0x648   : > { %2060 = vst.msk [vmem:[#allocation3 + $0x30] sm:$0xff] %vm2034_vm2, %v2058_v26  ;;  %2074 = vst.msk [vmem:[#allocation3 + $0x50] sm:$0xff] %vm2034_vm2, %v2072_v27  ;;  %v2114_v30 = vpack.c.bf16 %v2100_v29, %v2099_v28  ;;  %v5747_v26 = vld [vmem:[#allocation22 + $0x10] sm:$0xff]   ;;  %v5748_v29 = vld [vmem:[#allocation22 + $0x58] sm:$0xff]  }
 0x649   : > { %5411 = vmatpush3.bf16.msra.mxu0 %v5747_v26  ;;  %v5761_v26 = vld [vmem:[#allocation25 + $0x10] ss:$8 sps:$4 sm:$0xff]  }
 0x64a   : > { %5473 = vmatpush3.bf16.msra.mxu1 %v2114_v30  ;;  %5412 = vmatprep.subr.bf16.mxu0 %v5748_v29 }
 0x64b   : > { %v2080_v31 = vpop.permute.xlu0 %2079  ;;  %v2068_v32 = vpop.permute.xlu1 %2067  ;;  %5474 = vmatprep.subr.bf16.mxu1 %v6449_v6  ;;  %v2101_v33 = vld [vmem:[#allocation3 + $0x20] sm:$0xff]  ;;  %v2104_v39 = vld [vmem:[#allocation3 + $0x38] sm:$0xff] }
 0x64c   : > { %2082 = vst.msk [vmem:[#allocation3 + $0x60] sm:$0xff] %vm2034_vm2, %v2080_v31  ;;  %2070 = vst.msk [vmem:[#allocation3 + $0x48] sm:$0xff] %vm2034_vm2, %v2068_v32  ;;  %v2115_v35 = vpack.c.bf16 %v2102_v34, %v2101_v33  ;;  %v5749_v31 = vld [vmem:[#allocation22 + $0x18] sm:$0xff]   ;;  %v5750_v33 = vld [vmem:[#allocation22 + $0x60] sm:$0xff]  }
 0x64d   : > { %5413 = vmatpush3.bf16.msra.mxu0 %v5749_v31 }
 0x64e   : > { %5475 = vmatpush3.bf16.msra.mxu1 %v2115_v35  ;;  %5414 = vmatprep.subr.bf16.mxu0 %v5750_v33 }
 0x64f   : > { %v2088_v36 = vpop.permute.xlu0 %2087  ;;  %v2076_v37 = vpop.permute.xlu1 %2075  ;;  %5476 = vmatprep.subr.bf16.mxu1 %v6449_v6  ;;  %v2103_v38 = vld [vmem:[#allocation3 + $0x30] sm:$0xff] }
 0x650   : > { %2090 = vst.msk [vmem:[#allocation3 + $0x70] sm:$0xff] %vm2034_vm2, %v2088_v36  ;;  %2078 = vst.msk [vmem:[#allocation3 + $0x58] sm:$0xff] %vm2034_vm2, %v2076_v37  ;;  %v2116_v40 = vpack.c.bf16 %v2104_v39, %v2103_v38  ;;  %v2107_v45 = vld [vmem:[#allocation3 + $0x50] sm:$0xff]  ;;  %v5751_v36 = vld [vmem:[#allocation22 + $0x20] sm:$0xff]  }
 0x651   : > { %5415 = vmatpush3.bf16.msra.mxu0 %v5751_v36  ;;  %v5752_v39 = vld [vmem:[#allocation22 + $0x68] sm:$0xff]  }
 0x652   : > { %5477 = vmatpush3.bf16.msra.mxu1 %v2116_v40  ;;  %v5753_v40 = vld [vmem:[#allocation22 + $0x28] sm:$0xff]   ;;  %5416 = vmatprep.subr.bf16.mxu0 %v5752_v39 }
 0x653   : > { %v2084_v57 = vpop.permute.xlu1 %2083  ;;  %5478 = vmatprep.subr.bf16.mxu1 %v6449_v6  ;;  %v2106_v42 = vld [vmem:[#allocation3 + $0x48] sm:$0xff]  ;;  %v2109_v48 = vld [vmem:[#allocation3 + $0x60] sm:$0xff] }
 0x654   : > { %2086 = vst.msk [vmem:[#allocation3 + $0x68] sm:$0xff] %vm2034_vm2, %v2084_v57  ;;  %v2117_v43 = vpack.c.bf16 %v2106_v42, %v2105_v41  ;;  %v5754_v57 = vld [vmem:[#allocation22 + $0x70] sm:$0xff]  }
 0x655   : > { %5417 = vmatpush3.bf16.msra.mxu0 %v5753_v40 }
 0x656   : > { %5479 = vmatpush3.bf16.msra.mxu1 %v2117_v43  ;;  %v5755_v43 = vld [vmem:[#allocation22 + $0x30] sm:$0xff]   ;;  %5418 = vmatprep.subr.bf16.mxu0 %v5754_v57 }
 0x657   : > { %v2092_v44 = vpop.permute.xlu1 %2091  ;;  %5480 = vmatprep.subr.bf16.mxu1 %v6449_v6  ;;  %v2108_v46 = vld [vmem:[#allocation3 + $0x58] sm:$0xff]  ;;  %v2111_v51 = vld [vmem:[#allocation3 + $0x70] sm:$0xff] }
 0x658   : > { %2094 = vst.msk [vmem:[#allocation3 + $0x78] sm:$0xff] %vm2034_vm2, %v2092_v44  ;;  %v2118_v47 = vpack.c.bf16 %v2108_v46, %v2107_v45  ;;  %v5756_v44 = vld [vmem:[#allocation22 + $0x78] sm:$0xff]  }
 0x659   : > { %5419 = vmatpush3.bf16.msra.mxu0 %v5755_v43  ;;  %v2724_v43 = vld [vmem:[#allocation31 + $0x20] sm:$0xff] }
 0x65a   : > { %5481 = vmatpush3.bf16.msra.mxu1 %v2118_v47  ;;  %v5757_v47 = vld [vmem:[#allocation22 + $0x38] sm:$0xff]   ;;  %5420 = vmatprep.subr.bf16.mxu0 %v5756_v44 }
 0x65b   : > { %5482 = vmatprep.subr.bf16.mxu1 %v6449_v6  ;;  %v2110_v49 = vld [vmem:[#allocation3 + $0x68] sm:$0xff] }
 0x65c   : > { %v2119_v50 = vpack.c.bf16 %v2110_v49, %v2109_v48  ;;  %v2721_v44 = vld [vmem:[#allocation31 + $0x8] sm:$0xff] }
 0x65d   : > { %5421 = vmatpush3.bf16.msra.mxu0 %v5757_v47  ;;  %v2725_v47 = vld [vmem:[#allocation31 + $0x28] sm:$0xff] }
 0x65e   : > { %5483 = vmatpush3.bf16.msra.mxu1 %v2119_v50 }
 0x65f   : > { %5484 = vmatprep.subr.bf16.mxu1 %v6449_v6  ;;  %v2112_v52 = vld [vmem:[#allocation3 + $0x78] sm:$0xff]  ;;  %v7190_v6 = vsub.s32 %v2190_v60, %v7187_v61 }
 0x660   : > { %v2120_v54 = vpack.c.bf16 %v2112_v52, %v2111_v51  ;;  %v2126_v62 = vpop.permute.xlu0 %2125 }
 0x662   : > { %5485 = vmatpush3.bf16.msra.mxu1 %v2120_v54 }
 0x665   : > { %5487 = vmatmul.mubr.bf16.vlgmr.msra.gmra.mrb[8].mxu1 %v5741_v55  ;;  %v2723_v55 = vld [vmem:[#allocation31 + $0x18] sm:$0xff] }
 0x666   : > { %2647 = vmatprep.mubr.bf16.mxu1 %v6452_v23 }
 0x668   : > { %v2131_v0 = vpop.permute.xlu1 %2130 }
 0x738   : > { %v2173_v63 = vpop.f32.mrb[8].mxu1 }
 0x739   : > { %v2174_v1 = vadd.f32 %v2173_v63, %v2126_v62  ;;  %v5488_v2 = vpop.f32.mrb[9].mxu1 }
 0x73a   : > { %v2176_v3 = vpop.f32.mrb[10].mxu1 }
 0x73b   : > { %v2180_v4 = vmax.f32 %v2174_v1, 0.0  ;;  %v2177_v5 = vadd.f32 %v2176_v3, %v2131_v0  ;;  %v5489_v7 = vpop.f32.mrb[11].mxu1 }
 0x73d   : > { %2186 = vst.msk [vmem:[#allocation4] sm:$0x1] %vm2184_vm3, %v2180_v4  ;;  %v2194_v9 = vrot.slane %v2180_v4, %v7190_v6  ;;  %v2181_v12 = vmax.f32 %v2177_v5, 0.0  ;;  %v2233_v15 = vcombine.high %v2180_v4, %v2180_v4 }
 0x73f   : > { %2286 = vst.msk [vmem:[#allocation4 + $0x1] sm:$0x1] %vm2184_vm3, %v2181_v12  ;;  %v2294_v11 = vrot.slane %v2181_v12, %v7190_v6  ;;  %v2195_v13 = vcombine.high %v2194_v9, %v2194_v9  ;;  %v2202_v18 = vrot.slane %v2194_v9, %v7190_v6  ;;  %v2324_v20 = vcombine.high %v2181_v12, %v2181_v12 }
 0x740   : > { %v2240_v25 = vrot.slane %v2233_v15, %v7190_v6  ;;  %vm2267_vm3 = vcmp.lt.s32.totalorder %v2182_v56, 96  ;;  %v2369_v9 = vsub.s32 0, %v7187_v61  ;;  %v2373_v12 = vsub.s32 1, %v7187_v61 }
 0x741   : > { %v2209_v16 = vrot.slane %v2195_v13, %v7190_v6  ;;  %v2295_v17 = vcombine.high %v2294_v11, %v2294_v11  ;;  %v2302_v22 = vrot.slane %v2294_v11, %v7190_v6  ;;  %v2217_v24 = vcombine.high %v2202_v18, %v2202_v18  ;;  %vm2268_vm4 = vmand %vm7246_vm1, %vm2267_vm3  ;;  %v2411_v18 = vld [vmem:[#allocation23] sm:$0x1] }
 0x742   : > { %v2331_v28 = vrot.slane %v2324_v20, %v7190_v6  ;;  %v2247_v30 = vrot.slane %v2240_v25, %v7190_v6  ;;  %v2255_v35 = vcombine.high %v2240_v25, %v2240_v25  ;;  %v5763_v25 = vld [vmem:[#allocation25 + $0x14] ss:$8 sps:$4 sm:$0xff]  }
 0x743   : > { %2210 = vrot.lane.b32.xlu0 %v2209_v16, %s6457_s0  ;;  %v2309_v21 = vrot.slane %v2295_v17, %v7190_v6  ;;  %v2314_v27 = vcombine.high %v2302_v22, %v2302_v22  ;;  %v2225_v34 = vcombine.high %v2209_v16, %v2209_v16  ;;  %v5760_v16 = vld [vmem:[#allocation25 + $0x4] ss:$8 sps:$4 sm:$0xff]  }
 0x744   : > { %v2338_v32 = vrot.slane %v2331_v28, %v7190_v6  ;;  %v2343_v38 = vcombine.high %v2331_v28, %v2331_v28  ;;  %v2262_v41 = vrot.slane %v2255_v35, %v7190_v6  ;;  %v2270_v45 = vcombine.high %v2247_v30, %v2247_v30  ;;  %2615 = vmatprep.subr.bf16.mxu1 %v5760_v16  ;;  %v2579_v35 = vld [vmem:[#allocation26] sm:$0x3] }
 0x745   : > { %2310 = vrot.lane.b32.xlu1 %v2309_v21, %s6457_s0  ;;  %v2319_v37 = vcombine.high %v2309_v21, %v2309_v21  ;;  %v2604_v36 = vrot.slane %v2579_v35, %v2369_v9 }
 0x746   : > { %v2350_v42 = vrot.slane %v2343_v38, %v7190_v6  ;;  %v2355_v46 = vcombine.high %v2338_v32, %v2338_v32  ;;  %v2278_v48 = vcombine.high %v2262_v41, %v2262_v41 }
 0x747   : > { %2218 = vrot.lane.b32.xlu0 %v2217_v24, %s6458_s8 }
 0x748   : > { %v2360_v49 = vcombine.high %v2350_v42, %v2350_v42 }
 0x749   : > { %2315 = vrot.lane.b32.xlu1 %v2314_v27, %s6458_s8 }
 0x74b   : > { %2248 = vrot.lane.b32.xlu0 %v2247_v30, %s6450_s2  ;;  %v2550_v30 = vld [vmem:[%s752_s4] sm:$0x1]  ;;  %s7614_s4 = sld [smem:[#allocation70_spill]] }
 0x74d   : > { %2339 = vrot.lane.b32.xlu1 %v2338_v32, %s6450_s2 }
 0x74f   : > { %2226 = vrot.lane.b32.xlu0 %v2225_v34, %s6455_s30 }
 0x751   : > { %2320 = vrot.lane.b32.xlu1 %v2319_v37, %s6455_s30  ;;  %v2608_v37 = vrot.slane %v2579_v35, %v2373_v12 }
 0x753   : > { %2263 = vrot.lane.b32.xlu0 %v2262_v41, %s6453_s1 }
 0x755   : > { %2351 = vrot.lane.b32.xlu1 %v2350_v42, %s6453_s1  ;;  %v2720_v42 = vld [vmem:[#allocation31] sm:$0xff] }
 0x757   : > { %2271 = vrot.lane.b32.xlu0 %v2270_v45, %s6456_s20  ;;  %v5220_v45 = vcombine.low %v2720_v42, %v2724_v43 }
 0x759   : > { %2356 = vrot.lane.b32.xlu1 %v2355_v46, %s6456_s20  ;;  %v5221_v46 = vcombine.high %v2720_v42, %v2724_v43  ;;  %v3175_v42 = vld [vmem:[#allocation35 + $0x100] sm:$0xff] }
 0x75a   : > { %v3191_v43 = vld [vmem:[#allocation35 + $0x180] sm:$0xff] }
 0x75b   : > { %2279 = vrot.lane.b32.xlu0 %v2278_v48, %s6454_s29  ;;  %v2722_v48 = vld [vmem:[#allocation31 + $0x10] sm:$0xff] }
 0x75d   : > { %2361 = vrot.lane.b32.xlu1 %v2360_v49, %s6454_s29  ;;  %v2726_v49 = vld [vmem:[#allocation31 + $0x30] sm:$0xff] }
 0x7b5   : > { %v2211_v50 = vpop.permute.xlu0 %2210 }
 0x7b6   : > { %2216 = vst.msk [vmem:[#allocation4] sm:$0x1] %vm2215_vm6, %v2211_v50  ;;  %v5222_v50 = vcombine.low %v2721_v44, %v2725_v47 }
 0x7b7   : > { %v2311_v51 = vpop.permute.xlu1 %2310 }
 0x7b8   : > { %2313 = vst.msk [vmem:[#allocation4 + $0x1] sm:$0x1] %vm2215_vm6, %v2311_v51  ;;  %vm2275_vm6 = vcmp.lt.s32.totalorder %v2182_v56, 112  ;;  %v5223_v51 = vcombine.high %v2721_v44, %v2725_v47  ;;  %v5267_v44 = vcombine.high %v3175_v42, %v3191_v43 }
 0x7b9   : > { %v2219_v52 = vpop.permute.xlu0 %2218  ;;  %vm2276_vm7 = vmand %vm2274_vm5, %vm2275_vm6 }
 0x7ba   : > { %2224 = vst.msk [vmem:[#allocation4] sm:$0x1] %vm2223_vm9, %v2219_v52  ;;  %v5224_v52 = vcombine.low %v2722_v48, %v2726_v49  ;;  %2814 = vmatprep.subr.bf16.mxu0 %v5223_v51 }
 0x7bb   : > { %v2316_v54 = vpop.permute.xlu1 %2315 }
 0x7bc   : > { %2318 = vst.msk [vmem:[#allocation4 + $0x1] sm:$0x1] %vm2223_vm9, %v2316_v54  ;;  %vm2283_vm9 = vcmp.lt.s32.totalorder %v2182_v56, 128  ;;  %v5758_v56 = vld [vmem:[#allocation25] ss:$8 sps:$4 sm:$0xff]   ;;  %v5225_v54 = vcombine.high %v2722_v48, %v2726_v49 }
 0x7bd   : > { %v2249_v58 = vpop.permute.xlu0 %2248  ;;  %vm2284_vm10 = vmand %vm2282_vm8, %vm2283_vm9  ;;  %2616 = vmatpush1.bf16.msra.mxu1 %v5758_v56 }
 0x7be   : > { %2617 = vmatprep.subr.bf16.mxu1 %v5763_v25 }
 0x7bf   : > { %v2340_v62 = vpop.permute.xlu1 %2339 }
 0x7c1   : > { %v2227_v0 = vpop.permute.xlu0 %2226  ;;  %2618 = vmatpush1.bf16.msra.mxu1 %v5761_v26 }
 0x7c2   : > { %2232 = vst.msk [vmem:[#allocation4] sm:$0x1] %vm2231_vm14, %v2227_v0  ;;  %2771 = vmatprep.subr.bf16.mxu1 %v5221_v46 }
 0x7c3   : > { %v2321_v1 = vpop.permute.xlu1 %2320  ;;  %2254 = vst.msk [vmem:[#allocation4] sm:$0x1] %vm2253_vm15, %v2249_v58  ;;  %v2727_v58 = vld [vmem:[#allocation31 + $0x38] sm:$0xff] }
 0x7c4   : > { %2323 = vst.msk [vmem:[#allocation4 + $0x1] sm:$0x1] %vm2231_vm14, %v2321_v1  ;;  %v5226_v59 = vcombine.low %v2723_v55, %v2727_v58  ;;  %v5227_v60 = vcombine.high %v2723_v55, %v2727_v58 }
 0x7c5   : > { %v2264_v2 = vpop.permute.xlu0 %2263  ;;  %2342 = vst.msk [vmem:[#allocation4 + $0x1] sm:$0x1] %vm2253_vm15, %v2340_v62 }
 0x7c6   : > { %2269 = vst.msk [vmem:[#allocation4] sm:$0x1] %vm2268_vm4, %v2264_v2 }
 0x7c7   : > { %v2352_v3 = vpop.permute.xlu1 %2351 }
 0x7c8   : > { %2354 = vst.msk [vmem:[#allocation4 + $0x1] sm:$0x1] %vm2268_vm4, %v2352_v3 }
 0x7c9   : > { %v2272_v4 = vpop.permute.xlu0 %2271 }
 0x7ca   : > { %2277 = vst.msk [vmem:[#allocation4] sm:$0x1] %vm2276_vm7, %v2272_v4 }
 0x7cb   : > { %v2357_v5 = vpop.permute.xlu1 %2356 }
 0x7cc   : > { %2359 = vst.msk [vmem:[#allocation4 + $0x1] sm:$0x1] %vm2276_vm7, %v2357_v5 }
 0x7cd   : > { %v2280_v7 = vpop.permute.xlu0 %2279 }
 0x7ce   : > { %2285 = vst.msk [vmem:[#allocation4] sm:$0x1] %vm2284_vm10, %v2280_v7 }
 0x7cf   : > { %v2362_v8 = vpop.permute.xlu1 %2361 }
 0x7d0   : > { %2364 = vst.msk [vmem:[#allocation4 + $0x1] sm:$0x1] %vm2284_vm10, %v2362_v8 }
 0x7d7   : > { %v2365_v10 = vld [vmem:[#allocation4] sm:$0x3] }
 0x7d8   : > { %v2370_v11 = vrot.slane %v2365_v10, %v2369_v9  ;;  %v2374_v13 = vrot.slane %v2365_v10, %v2373_v12 }
 0x7da   : > { %v2377_v14 = vpack.c.bf16 %v2370_v11, %v2370_v11  ;;  %v2378_v15 = vpack.c.bf16 %v2374_v13, %v2374_v13 }
 0x7dc   : > { %2540 = vmatprep.mubr.bf16.mxu0 %v2378_v15 }
 0x7dd   : > { %2541 = vmatmul.mubr.bf16.vlgmr.msra.gmra.mrb[16].mxu0 %v2377_v14 }
 0x7de   : > { %2846 = vmatprep.mubr.bf16.mxu0 %v6452_v23  ;;  %2815 = vmatpush1.bf16.msra.mxu0 %v5222_v50 }
 0x7df   : > { %2900 = vmatprep.subr.bf16.mxu0 %v5227_v60 }
 0x8b0   : > { %v5422_v17 = vpop.f32.mrb[16].mxu0 }
 0x8b1   : > { %v5423_v19 = vpop.f32.mrb[17].mxu0 }
 0x8b2   : > { %v5424_v20 = vadd.f32 %v5423_v19, %v5422_v17  ;;  %v5425_v61 = vpop.f32.mrb[18].mxu0 }
 0x8b3   : > { %v5426_v21 = vpop.f32.mrb[19].mxu0 }
 0x8b4   : > { %v2543_v22 = vadd.f32 %v5424_v20, %v2411_v18 }
 0x8b6   : > { %v2551_v53 = vmul.f32 0.5, %v2543_v22  ;;  %2549 = vst.msk [vmem:[%s878_s22] sm:$0x1] %vm2548_vm11, %v2543_v22 }
 0x8b8   : > { %v2552_v24 = vmul.f32 1.442695, %v2551_v53 }
 0x8ba   : > { %5766 = vpow2.f32 %v2552_v24 }
 0x8c4   : > { %v5767_v27 = vpop.eup %5766 }
 0x8c5   : > { %v2561_v28 = vrot.slane %v5767_v27, %v7190_v6 }
 0x8c7   : > { %v2568_v29 = vrot.slane %v2561_v28, %v7190_v6 }
 0x8c9   : > { %2569 = vrot.lane.b32.xlu0 %v2568_v29, %s6456_s20 }
 0x93b   : > { %v2570_v31 = vpop.permute.xlu0 %2569 }
 0x93c   : > { %v2572_v32 = vmul.f32 %v2570_v31, %v2550_v30 }
 0x93e   : > { %v2573_v33 = vadd.f32 %v2572_v32, %v2543_v22 }
 0x940   : > { %v2574_v34 = vpack.c.bf16 %v2573_v33, %v2573_v33 }
 0x942   : > { %5219 = vmatmul.mubr.msk.bf16.vlgmr.msra.gmra.mrb[12].mxu1 %vm2611_vm12, %v2574_v34 }
 0x943   : > { %2803 = vmatprep.mubr.bf16.mxu1 %v6452_v23  ;;  %2772 = vmatpush1.bf16.msra.mxu1 %v5220_v45  ;;  %v5266_v45 = vcombine.low %v3175_v42, %v3191_v43 }
 0x944   : > { %2857 = vmatprep.subr.bf16.mxu1 %v5225_v54 }
 0xa15   : > { %v2649_v38 = vpop.f32.mrb[12].mxu1 }
 0xa16   : > { %v2650_v39 = vadd.f32 %v2649_v38, %v2604_v36  ;;  %v2651_v40 = vpop.f32.mrb[13].mxu1  ;;  %v7336_v36 = vld [vmem:[#allocation28] sm:$0xff]  ;;  %v3088_v38 = vld [vmem:[#allocation29] sm:$0xff] }
 0xa17   : > { %v2652_v6 = vadd.f32 %v2651_v40, %v2608_v37  ;;  %v2653_v57 = vpop.f32.mrb[14].mxu1  ;;  %v5233_v37 = vcombine.high %v7336_v36, %v7336_v36  ;;  %v3143_v40 = vld [vmem:[#allocation35] sm:$0xff] }
 0xa18   : > { %2657 = vst.msk [vmem:[#allocation5] sm:$0x1] %vm2656_vm13, %v2650_v39  ;;  %v2654_v41 = vpop.f32.mrb[15].mxu1  ;;  %2663 = vrot.lane.b32.xlu0 %v2650_v39, %s6456_s20  ;;  %2659 = vrot.lane.b32.xlu1 %v2650_v39, %s6454_s29 }
 0xa19   : > { %2687 = vst.msk [vmem:[#allocation5 + $0x8] sm:$0x1] %vm2656_vm13, %v2652_v6 }
 0xa1c   : > { %2671 = vrot.lane.b32.xlu0 %v2650_v39, %s6450_s2  ;;  %2667 = vrot.lane.b32.xlu1 %v2650_v39, %s6453_s1 }
 0xa20   : > { %2679 = vrot.lane.b32.xlu0 %v2650_v39, %s6458_s8  ;;  %2675 = vrot.lane.b32.xlu1 %v2650_v39, %s6455_s30 }
 0xa24   : > { %2689 = vrot.lane.b32.xlu0 %v2652_v6, %s6454_s29  ;;  %2683 = vrot.lane.b32.xlu1 %v2650_v39, %s6457_s0  ;;  %v4651_v39 = vld [vmem:[#allocation34] sm:$0xf]  ;;  %s6284_s29 = scalar_lea.vmem %s4748_s5, 16 }
 0xa25   : > { %p6285_p7 = scmp.ne.s32.totalorder %s4748_s5, %s6284_s29 }
 0xa27   : > { %p6286_p1 = pnand %p6285_p7, %p7615_p4 }
 0xa28   : > { %2697 = vrot.lane.b32.xlu0 %v2652_v6, %s6453_s1  ;;  %2693 = vrot.lane.b32.xlu1 %v2652_v6, %s6456_s20  ;;  %s4721_s1 = scalar_lea.sflag [#allocation39], %s7036_s24 }
 0xa29   : > { %p6287_p3 = pneg %p6286_p1 }
 0xa2c   : > { %2705 = vrot.lane.b32.xlu0 %v2652_v6, %s6455_s30  ;;  %2701 = vrot.lane.b32.xlu1 %v2652_v6, %s6450_s2  ;;  %s6460_s30 = smov [#allocation38]  }
 0xa2d   : > { %s6288_s20 = sshll.u32 %s6460_s30, 4  ;;  %s6289_s20 = int_to_ptr.vmem [resolvable:$false] %s6288_s20 }
 0xa2e   : > { %p6291_p6 = scmp.lt.s32.totalorder %s4748_s5, %s6289_s20 }
 0xa30   : > { %2713 = vrot.lane.b32.xlu0 %v2652_v6, %s6457_s0  ;;  %2709 = vrot.lane.b32.xlu1 %v2652_v6, %s6458_s8  ;;  %v3159_v6 = vld [vmem:[#allocation35 + $0x80] sm:$0xff]  ;;  %s6290_s0 = scalar_lea.vmem %s6289_s20, 32 }
 0xa31   : > { %v5234_v57 = vcombine.low %v3143_v40, %v3159_v6  ;;  %v5235_v41 = vcombine.high %v3143_v40, %v3159_v6  ;;  %v3145_v6 = vld [vmem:[#allocation35 + $0x10] sm:$0xff]  ;;  %p6292_p0 = scmp.lt.s32.totalorder %s6290_s0, %s6284_s29 }
 0xa33   : > { %p6293_p10 = por %p6292_p0, %p6291_p6 }
 0xa35   : > { %p6294_p12 = pnand %p6293_p10, %p6287_p3 }
 0xa8a   : > { %v2664_v62 = vpop.permute.xlu0 %2663  ;;  %v2660_v63 = vpop.permute.xlu1 %2659 }
 0xa8b   : > { %2666 = vst.msk [vmem:[#allocation5 + $0x2] sm:$0x1] %vm2656_vm13, %v2664_v62  ;;  %2662 = vst.msk [vmem:[#allocation5 + $0x1] sm:$0x1] %vm2656_vm13, %v2660_v63 }
 0xa8e   : > { %v2672_v0 = vpop.permute.xlu0 %2671  ;;  %v2668_v1 = vpop.permute.xlu1 %2667 }
 0xa8f   : > { %2674 = vst.msk [vmem:[#allocation5 + $0x4] sm:$0x1] %vm2656_vm13, %v2672_v0  ;;  %2670 = vst.msk [vmem:[#allocation5 + $0x3] sm:$0x1] %vm2656_vm13, %v2668_v1 }
 0xa92   : > { %v2680_v2 = vpop.permute.xlu0 %2679  ;;  %v2676_v3 = vpop.permute.xlu1 %2675 }
 0xa93   : > { %2682 = vst.msk [vmem:[#allocation5 + $0x6] sm:$0x1] %vm2656_vm13, %v2680_v2  ;;  %2678 = vst.msk [vmem:[#allocation5 + $0x5] sm:$0x1] %vm2656_vm13, %v2676_v3 }
 0xa96   : > { %v2690_v4 = vpop.permute.xlu0 %2689  ;;  %v2684_v5 = vpop.permute.xlu1 %2683 }
 0xa97   : > { %2692 = vst.msk [vmem:[#allocation5 + $0x9] sm:$0x1] %vm2656_vm13, %v2690_v4  ;;  %2686 = vst.msk [vmem:[#allocation5 + $0x7] sm:$0x1] %vm2656_vm13, %v2684_v5 }
 0xa9a   : > { %v2698_v7 = vpop.permute.xlu0 %2697  ;;  %v2694_v8 = vpop.permute.xlu1 %2693 }
 0xa9b   : > { %2700 = vst.msk [vmem:[#allocation5 + $0xb] sm:$0x1] %vm2656_vm13, %v2698_v7  ;;  %2696 = vst.msk [vmem:[#allocation5 + $0xa] sm:$0x1] %vm2656_vm13, %v2694_v8 }
 0xa9e   : > { %v2706_v9 = vpop.permute.xlu0 %2705  ;;  %v2702_v12 = vpop.permute.xlu1 %2701  ;;  %v2717_v13 = vld [vmem:[#allocation5] sm:$0xff] }
 0xa9f   : > { %2708 = vst.msk [vmem:[#allocation5 + $0xd] sm:$0x1] %vm2656_vm13, %v2706_v9  ;;  %2704 = vst.msk [vmem:[#allocation5 + $0xc] sm:$0x1] %vm2656_vm13, %v2702_v12 }
 0xaa2   : > { %v2714_v10 = vpop.permute.xlu0 %2713  ;;  %v2710_v11 = vpop.permute.xlu1 %2709 }
 0xaa3   : > { %2716 = vst.msk [vmem:[#allocation5 + $0xf] sm:$0x1] %vm2656_vm13, %v2714_v10  ;;  %2712 = vst.msk [vmem:[#allocation5 + $0xe] sm:$0x1] %vm2656_vm13, %v2710_v11 }
 0xaaa   : > { %v2718_v14 = vld [vmem:[#allocation5 + $0x8] sm:$0xff] }
 0xaab   : > { %v2719_v15 = vpack.c.bf16 %v2718_v14, %v2717_v13 }
 0xaad   : > { %5228 = vmatmul.mubr.msk.bf16.vlgmr.msra.gmra.mrb[16].mxu1 %vm2034_vm2, %v2719_v15  ;;  %5229 = vmatmul.mubr.msk.bf16.vlgmr.msra.gmra.mrb[20].mxu0 %vm2034_vm2, %v2719_v15 }
 0xaae   : > { %2858 = vmatpush1.bf16.msra.mxu1 %v5224_v52  ;;  %2901 = vmatpush1.bf16.msra.mxu0 %v5226_v59 }
 0xaaf   : > { %2889 = vmatprep.mubr.bf16.mxu1 %v6452_v23  ;;  %2932 = vmatprep.mubr.bf16.mxu0 %v6452_v23 }
 0xab0   : > { %3914 = vmatprep.subr.bf16.mxu0 %v5235_v41 }
 0xab5   : > { %5230 = vmatmul.mubr.msk.bf16.vlgmr.msra.gmra.mrb[20].mxu1 %vm2034_vm2, %v2719_v15  ;;  %5231 = vmatmul.mubr.msk.bf16.vlgmr.msra.gmra.mrb[24].mxu0 %vm2034_vm2, %v2719_v15 }
 0xab6   : > { %3946 = vmatprep.mubr.bf16.mxu0 %v6452_v23  ;;  %3133 = vmatprep.mubr.bf16.mxu1 %v5233_v37 }
 0xab7   : > { %3915 = vmatpush1.bf16.msra.mxu0 %v5234_v57  ;;  %v3161_v57 = vld [vmem:[#allocation35 + $0x90] sm:$0xff] }
 0xab8   : > { %3916 = vmatprep.subr.bf16.mxu0 %v5267_v44  ;;  %v5239_v43 = vcombine.high %v3145_v6, %v3161_v57 }
 0xabb   : > { %3917 = vmatpush1.bf16.msra.mxu0 %v5266_v45  ;;  %v3177_v45 = vld [vmem:[#allocation35 + $0x110] sm:$0xff] }
 0xb80   : > { %v2805_v56 = vpop.f32.mrb[16].mxu1  ;;  %v2848_v16 = vpop.f32.mrb[20].mxu0 }
 0xb81   : > { %2943 = vst.msk [vmem:[#allocation6] sm:$0xff] %vm1820_vm0, %v2805_v56  ;;  %2967 = vst.msk [vmem:[#allocation6 + $0x40] sm:$0xff] %vm1820_vm0, %v2848_v16  ;;  %v2807_v17 = vpop.f32.mrb[17].mxu1  ;;  %v2850_v18 = vpop.f32.mrb[21].mxu0 }
 0xb82   : > { %2955 = vst.msk [vmem:[#allocation6 + $0x20] sm:$0xff] %vm1820_vm0, %v2807_v17  ;;  %2979 = vst.msk [vmem:[#allocation6 + $0x60] sm:$0xff] %vm1820_vm0, %v2850_v18  ;;  %v2809_v19 = vpop.f32.mrb[18].mxu1  ;;  %v2852_v20 = vpop.f32.mrb[22].mxu0 }
 0xb83   : > { %2944 = vst.msk [vmem:[#allocation6 + $0x8] sm:$0xff] %vm1820_vm0, %v2809_v19  ;;  %2968 = vst.msk [vmem:[#allocation6 + $0x48] sm:$0xff] %vm1820_vm0, %v2852_v20  ;;  %v2811_v61 = vpop.f32.mrb[19].mxu1  ;;  %v2854_v21 = vpop.f32.mrb[23].mxu0 }
 0xb84   : > { %2956 = vst.msk [vmem:[#allocation6 + $0x28] sm:$0xff] %vm1820_vm0, %v2811_v61  ;;  %2980 = vst.msk [vmem:[#allocation6 + $0x68] sm:$0xff] %vm1820_vm0, %v2854_v21 }
 0xb88   : > { %v2891_v22 = vpop.f32.mrb[20].mxu1  ;;  %v2934_v53 = vpop.f32.mrb[24].mxu0  ;;  %v3040_v34 = vld [vmem:[#allocation6] sm:$0xff] }
 0xb89   : > { %2991 = vst.msk [vmem:[#allocation6 + $0x80] sm:$0xff] %vm1820_vm0, %v2891_v22  ;;  %3015 = vst.msk [vmem:[#allocation6 + $0xc0] sm:$0xff] %vm1820_vm0, %v2934_v53  ;;  %v2936_v24 = vpop.f32.mrb[25].mxu0  ;;  %2995 = vrot.lane.b32.xlu1 %v2891_v22, %s6450_s2  ;;  %v2893_v25 = vpop.f32.mrb[21].mxu1  ;;  %v3044_v7 = vld [vmem:[#allocation6 + $0x20] sm:$0xff] }
 0xb8a   : > { %3027 = vst.msk [vmem:[#allocation6 + $0xe0] sm:$0xff] %vm1820_vm0, %v2936_v24  ;;  %3003 = vst.msk [vmem:[#allocation6 + $0xa0] sm:$0xff] %vm1820_vm0, %v2893_v25  ;;  %v2895_v26 = vpop.f32.mrb[22].mxu1  ;;  %v2938_v27 = vpop.f32.mrb[26].mxu0  ;;  %v3041_v30 = vld [vmem:[#allocation6 + $0x8] sm:$0xff] }
 0xb8b   : > { %2992 = vst.msk [vmem:[#allocation6 + $0x88] sm:$0xff] %vm1820_vm0, %v2895_v26  ;;  %3016 = vst.msk [vmem:[#allocation6 + $0xc8] sm:$0xff] %vm1820_vm0, %v2938_v27  ;;  %v2940_v28 = vpop.f32.mrb[27].mxu0  ;;  %2997 = vrot.lane.b32.xlu0 %v2895_v26, %s6450_s2  ;;  %v2897_v29 = vpop.f32.mrb[23].mxu1  ;;  %v3072_v35 = vpack.c.bf16 %v3041_v30, %v3040_v34  ;;  %v3045_v4 = vld [vmem:[#allocation6 + $0x28] sm:$0xff] }
 0xb8c   : > { %3028 = vst.msk [vmem:[#allocation6 + $0xe8] sm:$0xff] %vm1820_vm0, %v2940_v28  ;;  %3004 = vst.msk [vmem:[#allocation6 + $0xa8] sm:$0xff] %vm1820_vm0, %v2897_v29  ;;  %v3074_v12 = vpack.c.bf16 %v3045_v4, %v3044_v7  ;;  %v3053_v34 = vld [vmem:[#allocation6 + $0x68] sm:$0xff]  ;;  %v3144_v7 = vld [vmem:[#allocation35 + $0x8] sm:$0xff] }
 0xb8d   : > { %2947 = vrot.lane.b32.xlu1 %v2805_v56, %s6450_s2 }
 0xb8f   : > { %2949 = vrot.lane.b32.xlu0 %v2809_v19, %s6450_s2 }
 0xb90   : > { %v3056_v31 = vld [vmem:[#allocation6 + $0x80] sm:$0xff] }
 0xb91   : > { %3007 = vrot.lane.b32.xlu1 %v2893_v25, %s6450_s2  ;;  %v3060_v1 = vld [vmem:[#allocation6 + $0xa0] sm:$0xff] }
 0xb92   : > { %v3057_v32 = vld [vmem:[#allocation6 + $0x88] sm:$0xff] }
 0xb93   : > { %3009 = vrot.lane.b32.xlu0 %v2897_v29, %s6450_s2  ;;  %v3080_v33 = vpack.c.bf16 %v3057_v32, %v3056_v31  ;;  %v3061_v59 = vld [vmem:[#allocation6 + $0xa8] sm:$0xff]  ;;  %v3068_v32 = vld [vmem:[#allocation6 + $0xe0] sm:$0xff] }
 0xb94   : > { %v3082_v3 = vpack.c.bf16 %v3061_v59, %v3060_v1  ;;  %v3065_v13 = vld [vmem:[#allocation6 + $0xc8] sm:$0xff] }
 0xb95   : > { %2959 = vrot.lane.b32.xlu1 %v2807_v17, %s6450_s2  ;;  %5428 = vmatprep.subr.bf16.mxu1 %v3080_v33  ;;  %v3064_v17 = vld [vmem:[#allocation6 + $0xc0] sm:$0xff] }
 0xb96   : > { %5429 = vmatpush3.bf16.msra.mxu1 %v3072_v35  ;;  %v3084_v19 = vpack.c.bf16 %v3065_v13, %v3064_v17  ;;  %v3052_v35 = vld [vmem:[#allocation6 + $0x60] sm:$0xff] }
 0xb97   : > { %2961 = vrot.lane.b32.xlu0 %v2811_v61, %s6450_s2 }
 0xb99   : > { %3019 = vrot.lane.b32.xlu1 %v2934_v53, %s6450_s2 }
 0xb9b   : > { %3021 = vrot.lane.b32.xlu0 %v2938_v27, %s6450_s2  ;;  %v3069_v27 = vld [vmem:[#allocation6 + $0xe8] sm:$0xff] }
 0xb9c   : > { %v3086_v33 = vpack.c.bf16 %v3069_v27, %v3068_v32 }
 0xb9d   : > { %2971 = vrot.lane.b32.xlu1 %v2848_v16, %s6450_s2 }
 0xb9f   : > { %2973 = vrot.lane.b32.xlu0 %v2852_v20, %s6450_s2  ;;  %v3049_v20 = vld [vmem:[#allocation6 + $0x48] sm:$0xff] }
 0xba1   : > { %3031 = vrot.lane.b32.xlu1 %v2936_v24, %s6450_s2 }
 0xba3   : > { %3033 = vrot.lane.b32.xlu0 %v2940_v28, %s6450_s2 }
 0xba5   : > { %2983 = vrot.lane.b32.xlu1 %v2850_v18, %s6450_s2 }
 0xba7   : > { %2985 = vrot.lane.b32.xlu0 %v2854_v21, %s6450_s2  ;;  %v3048_v21 = vld [vmem:[#allocation6 + $0x40] sm:$0xff]  ;;  %s7416_s2 = scalar_lea.hbm %s7614_s4, %s5383_s19 }
 0xba8   : > { %v3076_v24 = vpack.c.bf16 %v3049_v20, %v3048_v21  ;;  %v3192_v21 = vld [vmem:[#allocation35 + $0x188] sm:$0xff] }
 0xba9   : > { %3091 = vperm.xlu1 %5726, %v3088_v38  }
 0xbab   : > { %4654 = vperm.xlu0 %5725, %v4651_v39   ;;  %v3078_v39 = vpack.c.bf16 %v3053_v34, %v3052_v35 }
 0xbfb   : > { %v2996_v46 = vpop.permute.xlu1 %2995 }
 0xbfc   : > { %3001 = vst.msk [vmem:[#allocation6 + $0x90] sm:$0xff] %vm1820_vm0, %v2996_v46  ;;  %v3193_v46 = vld [vmem:[#allocation35 + $0x190] sm:$0xff] }
 0xbfd   : > { %v2998_v47 = vpop.permute.xlu0 %2997 }
 0xbfe   : > { %3002 = vst.msk [vmem:[#allocation6 + $0x98] sm:$0xff] %vm1820_vm0, %v2998_v47  ;;  %v5232_v47 = vcombine.low %v7336_v36, %v7336_v36  ;;  %v3239_v36 = vld [vmem:[#allocation35 + $0x300] sm:$0xff] }
 0xbff   : > { %v2948_v48 = vpop.permute.xlu1 %2947 }
 0xc00   : > { %2953 = vst.msk [vmem:[#allocation6 + $0x10] sm:$0xff] %vm1820_vm0, %v2948_v48  ;;  %v5238_v48 = vcombine.low %v3145_v6, %v3161_v57 }
 0xc01   : > { %v2950_v49 = vpop.permute.xlu0 %2949 }
 0xc02   : > { %2954 = vst.msk [vmem:[#allocation6 + $0x18] sm:$0xff] %vm1820_vm0, %v2950_v49  ;;  %v5271_v49 = vcombine.high %v3177_v45, %v3193_v46 }
 0xc03   : > { %v3008_v50 = vpop.permute.xlu1 %3007  ;;  %v3058_v52 = vld [vmem:[#allocation6 + $0x90] sm:$0xff] }
 0xc04   : > { %3013 = vst.msk [vmem:[#allocation6 + $0xb0] sm:$0xff] %vm1820_vm0, %v3008_v50  ;;  %v5270_v50 = vcombine.low %v3177_v45, %v3193_v46  ;;  %v3149_v45 = vld [vmem:[#allocation35 + $0x30] sm:$0xff] }
 0xc05   : > { %v3010_v51 = vpop.permute.xlu0 %3009  ;;  %v3059_v54 = vld [vmem:[#allocation6 + $0x98] sm:$0xff]  ;;  %v3165_v46 = vld [vmem:[#allocation35 + $0xb0] sm:$0xff] }
 0xc06   : > { %3014 = vst.msk [vmem:[#allocation6 + $0xb8] sm:$0xff] %vm1820_vm0, %v3010_v51  ;;  %v3081_v55 = vpack.c.bf16 %v3059_v54, %v3058_v52  ;;  %v3207_v51 = vld [vmem:[#allocation35 + $0x200] sm:$0xff]  ;;  %v3209_v54 = vld [vmem:[#allocation35 + $0x210] sm:$0xff] }
 0xc07   : > { %v2960_v58 = vpop.permute.xlu1 %2959  ;;  %v3042_v62 = vld [vmem:[#allocation6 + $0x10] sm:$0xff] }
 0xc08   : > { %2965 = vst.msk [vmem:[#allocation6 + $0x30] sm:$0xff] %vm1820_vm0, %v2960_v58  ;;  %5430 = vmatprep.subr.bf16.mxu1 %v3081_v55  ;;  %v3223_v52 = vld [vmem:[#allocation35 + $0x280] sm:$0xff]  ;;  %v3225_v58 = vld [vmem:[#allocation35 + $0x290] sm:$0xff] }
 0xc09   : > { %v2962_v60 = vpop.permute.xlu0 %2961  ;;  %v3043_v63 = vld [vmem:[#allocation6 + $0x18] sm:$0xff]  ;;  %v5299_v55 = vcombine.high %v3207_v51, %v3223_v52  ;;  %v5298_v59 = vcombine.low %v3207_v51, %v3223_v52  ;;  %v3178_v51 = vld [vmem:[#allocation35 + $0x118] sm:$0xff] }
 0xc0a   : > { %2966 = vst.msk [vmem:[#allocation6 + $0x38] sm:$0xff] %vm1820_vm0, %v2962_v60  ;;  %v3073_v0 = vpack.c.bf16 %v3043_v63, %v3042_v62  ;;  %v5302_v60 = vcombine.low %v3209_v54, %v3225_v58  ;;  %v5303_v62 = vcombine.high %v3209_v54, %v3225_v58  ;;  %v3255_v63 = vld [vmem:[#allocation35 + $0x380] sm:$0xff]  ;;  %v3194_v52 = vld [vmem:[#allocation35 + $0x198] sm:$0xff]  ;;  %v3181_v54 = vld [vmem:[#allocation35 + $0x130] sm:$0xff] }
 0xc0b   : > { %v3020_v2 = vpop.permute.xlu1 %3019  ;;  %v3062_v8 = vld [vmem:[#allocation6 + $0xb0] sm:$0xff]  ;;  %3918 = vmatprep.subr.bf16.mxu0 %v5299_v55  ;;  %v5331_v1 = vcombine.high %v3239_v36, %v3255_v63  ;;  %v3197_v55 = vld [vmem:[#allocation35 + $0x1b0] sm:$0xff] }
 0xc0c   : > { %3025 = vst.msk [vmem:[#allocation6 + $0xd0] sm:$0xff] %vm1820_vm0, %v3020_v2  ;;  %5431 = vmatpush3.bf16.msra.mxu1 %v3073_v0  ;;  %3919 = vmatpush1.bf16.msra.mxu0 %v5298_v59  ;;  %v3241_v0 = vld [vmem:[#allocation35 + $0x310] sm:$0xff]  ;;  %v5246_v59 = vcombine.low %v3149_v45, %v3165_v46 }
 0xc0d   : > { %v3022_v5 = vpop.permute.xlu0 %3021  ;;  %5432 = vmatprep.subr.bf16.mxu1 %v3082_v3  ;;  %v3063_v9 = vld [vmem:[#allocation6 + $0xb8] sm:$0xff]  ;;  %v3257_v2 = vld [vmem:[#allocation35 + $0x390] sm:$0xff]  ;;  %v5330_v3 = vcombine.low %v3239_v36, %v3255_v63  ;;  %3920 = vmatprep.subr.bf16.mxu0 %v5331_v1  ;;  %v3210_v36 = vld [vmem:[#allocation35 + $0x218] sm:$0xff] }
 0xc0e   : > { %3026 = vst.msk [vmem:[#allocation6 + $0xd8] sm:$0xff] %vm1820_vm0, %v3022_v5  ;;  %v3083_v10 = vpack.c.bf16 %v3063_v9, %v3062_v8  ;;  %v5334_v4 = vcombine.low %v3241_v0, %v3257_v2  ;;  %v5335_v5 = vcombine.high %v3241_v0, %v3257_v2  ;;  %v3160_v8 = vld [vmem:[#allocation35 + $0x88] sm:$0xff]  ;;  %v3147_v9 = vld [vmem:[#allocation35 + $0x20] sm:$0xff]  ;;  %v3226_v63 = vld [vmem:[#allocation35 + $0x298] sm:$0xff]  ;;  %v5272_v2 = vcombine.low %v3178_v51, %v3194_v52 }
 0xc0f   : > { %v2972_v11 = vpop.permute.xlu1 %2971  ;;  %v3046_v15 = vld [vmem:[#allocation6 + $0x30] sm:$0xff]  ;;  %v3213_v0 = vld [vmem:[#allocation35 + $0x230] sm:$0xff] }
 0xc10   : > { %2977 = vst.msk [vmem:[#allocation6 + $0x50] sm:$0xff] %vm1820_vm0, %v2972_v11  ;;  %5433 = vmatpush3.bf16.msra.mxu1 %v3074_v12  ;;  %3921 = vmatpush1.bf16.msra.mxu0 %v5330_v3  ;;  %v5236_v12 = vcombine.low %v3144_v7, %v3160_v8  ;;  %v3163_v11 = vld [vmem:[#allocation35 + $0xa0] sm:$0xff]  ;;  %v3229_v1 = vld [vmem:[#allocation35 + $0x2b0] sm:$0xff]  ;;  %v5278_v3 = vcombine.low %v3181_v54, %v3197_v55 }
 0xc11   : > { %v2974_v14 = vpop.permute.xlu0 %2973  ;;  %5434 = vmatprep.subr.bf16.mxu1 %v3083_v10  ;;  %v3047_v56 = vld [vmem:[#allocation6 + $0x38] sm:$0xff]  ;;  %v5237_v10 = vcombine.high %v3144_v7, %v3160_v8  ;;  %v5242_v13 = vcombine.low %v3147_v9, %v3163_v11  ;;  %v3242_v7 = vld [vmem:[#allocation35 + $0x318] sm:$0xff] }
 0xc12   : > { %2978 = vst.msk [vmem:[#allocation6 + $0x58] sm:$0xff] %vm1820_vm0, %v2974_v14  ;;  %v3075_v16 = vpack.c.bf16 %v3047_v56, %v3046_v15  ;;  %v5243_v14 = vcombine.high %v3147_v9, %v3163_v11  ;;  %v3258_v8 = vld [vmem:[#allocation35 + $0x398] sm:$0xff]  ;;  %v3245_v9 = vld [vmem:[#allocation35 + $0x330] sm:$0xff]  ;;  %v5310_v11 = vcombine.low %v3213_v0, %v3229_v1 }
 0xc13   : > { %v3032_v18 = vpop.permute.xlu1 %3031  ;;  %v3066_v22 = vld [vmem:[#allocation6 + $0xd0] sm:$0xff]  ;;  %3955 = vmatprep.subr.bf16.mxu0 %v5237_v10  ;;  %v5304_v10 = vcombine.low %v3210_v36, %v3226_v63 }
 0xc14   : > { %3037 = vst.msk [vmem:[#allocation6 + $0xf0] sm:$0xff] %vm1820_vm0, %v3032_v18  ;;  %5435 = vmatpush3.bf16.msra.mxu1 %v3075_v16 }
 0xc15   : > { %v3034_v61 = vpop.permute.xlu0 %3033  ;;  %5436 = vmatprep.subr.bf16.mxu1 %v3084_v19  ;;  %v3067_v53 = vld [vmem:[#allocation6 + $0xd8] sm:$0xff] }
 0xc16   : > { %3038 = vst.msk [vmem:[#allocation6 + $0xf8] sm:$0xff] %vm1820_vm0, %v3034_v61  ;;  %v3085_v25 = vpack.c.bf16 %v3067_v53, %v3066_v22  ;;  %v3176_v61 = vld [vmem:[#allocation35 + $0x108] sm:$0xff]  ;;  %v3179_v22 = vld [vmem:[#allocation35 + $0x120] sm:$0xff] }
 0xc17   : > { %v2984_v26 = vpop.permute.xlu1 %2983  ;;  %v3050_v29 = vld [vmem:[#allocation6 + $0x50] sm:$0xff]  ;;  %v5268_v32 = vcombine.low %v3176_v61, %v3192_v21 }
 0xc18   : > { %2989 = vst.msk [vmem:[#allocation6 + $0x70] sm:$0xff] %vm1820_vm0, %v2984_v26  ;;  %5437 = vmatpush3.bf16.msra.mxu1 %v3076_v24  ;;  %v3195_v53 = vld [vmem:[#allocation35 + $0x1a0] sm:$0xff]  ;;  %v5269_v26 = vcombine.high %v3176_v61, %v3192_v21  ;;  %v3180_v21 = vld [vmem:[#allocation35 + $0x128] sm:$0xff] }
 0xc19   : > { %v2986_v28 = vpop.permute.xlu0 %2985  ;;  %5438 = vmatprep.subr.bf16.mxu1 %v3085_v25  ;;  %v3051_v30 = vld [vmem:[#allocation6 + $0x58] sm:$0xff]  ;;  %v5275_v27 = vcombine.high %v3179_v22, %v3195_v53 }
 0xc1a   : > { %2990 = vst.msk [vmem:[#allocation6 + $0x78] sm:$0xff] %vm1820_vm0, %v2986_v28  ;;  %v3077_v31 = vpack.c.bf16 %v3051_v30, %v3050_v29  ;;  %v3208_v28 = vld [vmem:[#allocation35 + $0x208] sm:$0xff]  ;;  %v3211_v30 = vld [vmem:[#allocation35 + $0x220] sm:$0xff] }
 0xc1b   : > { %v3070_v37 = vld [vmem:[#allocation6 + $0xf0] sm:$0xff]  ;;  %v3224_v29 = vld [vmem:[#allocation35 + $0x288] sm:$0xff] }
 0xc1c   : > { %5439 = vmatpush3.bf16.msra.mxu1 %v3077_v31  ;;  %v3227_v31 = vld [vmem:[#allocation35 + $0x2a0] sm:$0xff]  ;;  %v5301_v34 = vcombine.high %v3208_v28, %v3224_v29  ;;  %v5300_v6 = vcombine.low %v3208_v28, %v3224_v29 }
 0xc1d   : > { %5440 = vmatprep.subr.bf16.mxu1 %v3086_v33  ;;  %v3071_v38 = vld [vmem:[#allocation6 + $0xf8] sm:$0xff]  ;;  %v5274_v33 = vcombine.low %v3179_v22, %v3195_v53  ;;  %v5307_v35 = vcombine.high %v3211_v30, %v3227_v31  ;;  %v5306_v57 = vcombine.low %v3211_v30, %v3227_v31  ;;  %v3183_v53 = vld [vmem:[#allocation35 + $0x140] sm:$0xff] }
 0xc1e   : > { %v3087_v40 = vpack.c.bf16 %v3071_v38, %v3070_v37  ;;  %v3240_v37 = vld [vmem:[#allocation35 + $0x308] sm:$0xff] }
 0xc1f   : > { %v3054_v41 = vld [vmem:[#allocation6 + $0x70] sm:$0xff]  ;;  %v3256_v38 = vld [vmem:[#allocation35 + $0x388] sm:$0xff] }
 0xc20   : > { %5441 = vmatpush3.bf16.msra.mxu1 %v3078_v39  ;;  %v3243_v39 = vld [vmem:[#allocation35 + $0x320] sm:$0xff]  ;;  %v3196_v22 = vld [vmem:[#allocation35 + $0x1a8] sm:$0xff] }
 0xc21   : > { %5442 = vmatprep.subr.bf16.mxu1 %v3087_v40  ;;  %v3055_v42 = vld [vmem:[#allocation6 + $0x78] sm:$0xff]  ;;  %v3259_v40 = vld [vmem:[#allocation35 + $0x3a0] sm:$0xff]  ;;  %v5277_v28 = vcombine.high %v3180_v21, %v3196_v22 }
 0xc22   : > { %v3079_v44 = vpack.c.bf16 %v3055_v42, %v3054_v41  ;;  %v5333_v41 = vcombine.high %v3240_v37, %v3256_v38  ;;  %v5339_v42 = vcombine.high %v3243_v39, %v3259_v40  ;;  %v3212_v30 = vld [vmem:[#allocation35 + $0x228] sm:$0xff] }
 0xc23   : > { %v3228_v31 = vld [vmem:[#allocation35 + $0x2a8] sm:$0xff] }
 0xc24   : > { %5443 = vmatpush3.bf16.msra.mxu1 %v3079_v44  ;;  %v3162_v44 = vld [vmem:[#allocation35 + $0x98] sm:$0xff] }
 0xc25   : > { %3996 = vmatprep.subr.bf16.mxu1 %v5239_v43  ;;  %v3146_v43 = vld [vmem:[#allocation35 + $0x18] sm:$0xff] }
 0xc26   : > { %v5240_v58 = vcombine.low %v3146_v43, %v3162_v44 }
 0xc27   : > { %3134 = vmatmul.mubr.bf16.vlgmr.msra.gmra.mrb[24].mxu1 %v5232_v47  ;;  %v5332_v47 = vcombine.low %v3240_v37, %v3256_v38  ;;  %v5309_v37 = vcombine.high %v3212_v30, %v3228_v31 }
 0xc28   : > { %3997 = vmatpush1.bf16.msra.mxu1 %v5238_v48  ;;  %4028 = vmatprep.mubr.bf16.mxu1 %v6452_v23  ;;  %v3092_v18 = vpop.permute.xlu1 %3091  ;;  %v5338_v48 = vcombine.low %v3243_v39, %v3259_v40  ;;  %v3244_v39 = vld [vmem:[#allocation35 + $0x328] sm:$0xff] }
 0xc29   : > { %3998 = vmatprep.subr.bf16.mxu1 %v5271_v49  ;;  %v5241_v49 = vcombine.high %v3146_v43, %v3162_v44  ;;  %v3260_v40 = vld [vmem:[#allocation35 + $0x3a8] sm:$0xff] }
 0xc2a   : > { %v5341_v43 = vcombine.high %v3244_v39, %v3260_v40 }
 0xc2c   : > { %3999 = vmatpush1.bf16.msra.mxu1 %v5270_v50  ;;  %v5247_v50 = vcombine.high %v3149_v45, %v3165_v46  ;;  %v3150_v45 = vld [vmem:[#allocation35 + $0x38] sm:$0xff] }
 0xc2d   : > { %4000 = vmatprep.subr.bf16.mxu1 %v5303_v62  ;;  %v5279_v62 = vcombine.high %v3181_v54, %v3197_v55  ;;  %v3166_v46 = vld [vmem:[#allocation35 + $0xb8] sm:$0xff] }
 0xc2e   : > { %v3182_v54 = vld [vmem:[#allocation35 + $0x138] sm:$0xff] }
 0xc2f   : > { %v3198_v55 = vld [vmem:[#allocation35 + $0x1b8] sm:$0xff] }
 0xc30   : > { %4001 = vmatpush1.bf16.msra.mxu1 %v5302_v60  ;;  %v5273_v60 = vcombine.high %v3178_v51, %v3194_v52  ;;  %v5249_v51 = vcombine.high %v3150_v45, %v3166_v46 }
 0xc31   : > { %4002 = vmatprep.subr.bf16.mxu1 %v5335_v5  ;;  %v5311_v5 = vcombine.high %v3213_v0, %v3229_v1  ;;  %v3214_v0 = vld [vmem:[#allocation35 + $0x238] sm:$0xff] }
 0xc32   : > { %v3230_v1 = vld [vmem:[#allocation35 + $0x2b8] sm:$0xff] }
 0xc34   : > { %4003 = vmatpush1.bf16.msra.mxu1 %v5334_v4  ;;  %v5305_v4 = vcombine.high %v3210_v36, %v3226_v63  ;;  %v5281_v36 = vcombine.high %v3182_v54, %v3198_v55 }
 0xc35   : > { %4078 = vmatprep.subr.bf16.mxu1 %v5243_v14 }
 0xcfa   : > { %v5444_v15 = vpop.f32.mrb[24].mxu1 }
 0xcfb   : > { %v5445_v56 = vpop.f32.mrb[25].mxu1 }
 0xcfc   : > { %v5446_v16 = vadd.f32 %v5445_v56, %v5444_v15  ;;  %v5447_v17 = vpop.f32.mrb[26].mxu1  ;;  %v3148_v15 = vld [vmem:[#allocation35 + $0x28] sm:$0xff] }
 0xcfd   : > { %v5448_v19 = vpop.f32.mrb[27].mxu1  ;;  %v3164_v56 = vld [vmem:[#allocation35 + $0xa8] sm:$0xff]  ;;  %v3167_v17 = vld [vmem:[#allocation35 + $0xc0] sm:$0xff] }
 0xcfe   : > { %v3136_v20 = vadd.f32 %v5446_v16, %v3092_v18  ;;  %v3151_v16 = vld [vmem:[#allocation35 + $0x40] sm:$0xff]  ;;  %v5336_v18 = vcombine.low %v3242_v7, %v3258_v8 }
 0xcff   : > { %v5251_v61 = vcombine.high %v3151_v16, %v3167_v17 }
 0xd00   : > { %v3141_v24 = vmax.f32 %v3136_v20, 0.0  ;;  %v5245_v20 = vcombine.high %v3148_v15, %v3164_v56 }
 0xd02   : > { %v7361_v25 = vpack.c.bf16 %v3141_v24, %v3141_v24  ;;  %v3199_v24 = vld [vmem:[#allocation35 + $0x1c0] sm:$0xff] }
 0xd03   : > { %v5283_v29 = vcombine.high %v3183_v53, %v3199_v24 }
 0xd04   : > { %5362 = vmatmul.mubr.msk.bf16.vlgmr.msra.gmra.mrb[28].mxu0 %vm1820_vm0, %v7361_v25  ;;  %5364 = vmatmul.mubr.msk.bf16.vlgmr.msra.gmra.mrb[28].mxu1 %vm1820_vm0, %v7361_v25 }
 0xd05   : > { %3956 = vmatpush1.bf16.msra.mxu0 %v5236_v12  ;;  %4079 = vmatpush1.bf16.msra.mxu1 %v5242_v13  ;;  %v3261_v12 = vld [vmem:[#allocation35 + $0x3b0] sm:$0xff]  ;;  %v5337_v13 = vcombine.high %v3242_v7, %v3258_v8  ;;  %v5313_v7 = vcombine.high %v3214_v0, %v3230_v1 }
 0xd06   : > { %3957 = vmatprep.subr.bf16.mxu0 %v5269_v26  ;;  %4080 = vmatprep.subr.bf16.mxu1 %v5275_v27  ;;  %v5343_v14 = vcombine.high %v3245_v9, %v3261_v12  ;;  %v5342_v19 = vcombine.low %v3245_v9, %v3261_v12  ;;  %v5244_v26 = vcombine.low %v3148_v15, %v3164_v56  ;;  %v3246_v9 = vld [vmem:[#allocation35 + $0x338] sm:$0xff] }
 0xd07   : > { %3987 = vmatprep.mubr.bf16.mxu0 %v6452_v23  ;;  %4110 = vmatprep.mubr.bf16.mxu1 %v6452_v23  ;;  %v5250_v27 = vcombine.low %v3151_v16, %v3167_v17  ;;  %v3262_v12 = vld [vmem:[#allocation35 + $0x3b8] sm:$0xff]  ;;  %v3152_v16 = vld [vmem:[#allocation35 + $0x48] sm:$0xff] }
 0xd08   : > { %v5345_v15 = vcombine.high %v3246_v9, %v3262_v12  ;;  %v3168_v17 = vld [vmem:[#allocation35 + $0xc8] sm:$0xff] }
 0xd09   : > { %3958 = vmatpush1.bf16.msra.mxu0 %v5268_v32  ;;  %4081 = vmatpush1.bf16.msra.mxu1 %v5274_v33  ;;  %v3215_v32 = vld [vmem:[#allocation35 + $0x240] sm:$0xff] }
 0xd0a   : > { %3959 = vmatprep.subr.bf16.mxu0 %v5301_v34  ;;  %4082 = vmatprep.subr.bf16.mxu1 %v5307_v35  ;;  %v3231_v33 = vld [vmem:[#allocation35 + $0x2c0] sm:$0xff]  ;;  %v5276_v34 = vcombine.low %v3180_v21, %v3196_v22  ;;  %v5282_v35 = vcombine.low %v3183_v53, %v3199_v24  ;;  %v5253_v21 = vcombine.high %v3152_v16, %v3168_v17  ;;  %v3184_v53 = vld [vmem:[#allocation35 + $0x148] sm:$0xff] }
 0xd0b   : > { %v5315_v38 = vcombine.high %v3215_v32, %v3231_v33  ;;  %v3200_v24 = vld [vmem:[#allocation35 + $0x1c8] sm:$0xff] }
 0xd0d   : > { %3960 = vmatpush1.bf16.msra.mxu0 %v5300_v6  ;;  %4083 = vmatpush1.bf16.msra.mxu1 %v5306_v57  ;;  %v3247_v6 = vld [vmem:[#allocation35 + $0x340] sm:$0xff] }
 0xd0e   : > { %3961 = vmatprep.subr.bf16.mxu0 %v5333_v41  ;;  %4084 = vmatprep.subr.bf16.mxu1 %v5339_v42  ;;  %v3263_v57 = vld [vmem:[#allocation35 + $0x3c0] sm:$0xff]  ;;  %v5308_v41 = vcombine.low %v3212_v30, %v3228_v31  ;;  %v5314_v42 = vcombine.low %v3215_v32, %v3231_v33  ;;  %v5285_v30 = vcombine.high %v3184_v53, %v3200_v24  ;;  %v3216_v32 = vld [vmem:[#allocation35 + $0x248] sm:$0xff] }
 0xd0f   : > { %v5347_v44 = vcombine.high %v3247_v6, %v3263_v57  ;;  %v3232_v33 = vld [vmem:[#allocation35 + $0x2c8] sm:$0xff] }
 0xd11   : > { %3962 = vmatpush1.bf16.msra.mxu0 %v5332_v47  ;;  %4085 = vmatpush1.bf16.msra.mxu1 %v5338_v48  ;;  %v3153_v47 = vld [vmem:[#allocation35 + $0x50] sm:$0xff] }
 0xd12   : > { %4037 = vmatprep.subr.bf16.mxu0 %v5241_v49  ;;  %4160 = vmatprep.subr.bf16.mxu1 %v5247_v50  ;;  %v3169_v48 = vld [vmem:[#allocation35 + $0xd0] sm:$0xff]  ;;  %v5340_v49 = vcombine.low %v3244_v39, %v3260_v40  ;;  %v5346_v50 = vcombine.low %v3247_v6, %v3263_v57  ;;  %v5317_v39 = vcombine.high %v3216_v32, %v3232_v33  ;;  %v3248_v6 = vld [vmem:[#allocation35 + $0x348] sm:$0xff] }
 0xd13   : > { %v5255_v52 = vcombine.high %v3153_v47, %v3169_v48  ;;  %v3264_v57 = vld [vmem:[#allocation35 + $0x3c8] sm:$0xff] }
 0xd14   : > { %5363 = vmatmul.mubr.msk.bf16.vlgmr.msra.gmra.mrb[32].mxu0 %vm1820_vm0, %v7361_v25  ;;  %5366 = vmatmul.mubr.msk.bf16.vlgmr.msra.gmra.mrb[32].mxu1 %vm1820_vm0, %v7361_v25 }
 0xd15   : > { %4038 = vmatpush1.bf16.msra.mxu0 %v5240_v58  ;;  %4161 = vmatpush1.bf16.msra.mxu1 %v5246_v59  ;;  %v3185_v58 = vld [vmem:[#allocation35 + $0x150] sm:$0xff] }
 0xd16   : > { %4039 = vmatprep.subr.bf16.mxu0 %v5273_v60  ;;  %4162 = vmatprep.subr.bf16.mxu1 %v5279_v62  ;;  %v3201_v59 = vld [vmem:[#allocation35 + $0x1d0] sm:$0xff]  ;;  %v5248_v60 = vcombine.low %v3150_v45, %v3166_v46  ;;  %v5254_v62 = vcombine.low %v3153_v47, %v3169_v48  ;;  %v5349_v45 = vcombine.high %v3248_v6, %v3264_v57  ;;  %v3154_v47 = vld [vmem:[#allocation35 + $0x58] sm:$0xff] }
 0xd17   : > { %4069 = vmatprep.mubr.bf16.mxu0 %v6452_v23  ;;  %4192 = vmatprep.mubr.bf16.mxu1 %v6452_v23  ;;  %v5287_v63 = vcombine.high %v3185_v58, %v3201_v59  ;;  %v3170_v48 = vld [vmem:[#allocation35 + $0xd8] sm:$0xff] }
 0xd19   : > { %4040 = vmatpush1.bf16.msra.mxu0 %v5272_v2  ;;  %4163 = vmatpush1.bf16.msra.mxu1 %v5278_v3  ;;  %v3217_v2 = vld [vmem:[#allocation35 + $0x250] sm:$0xff] }
 0xd1a   : > { %4041 = vmatprep.subr.bf16.mxu0 %v5305_v4  ;;  %4164 = vmatprep.subr.bf16.mxu1 %v5311_v5  ;;  %v3233_v3 = vld [vmem:[#allocation35 + $0x2d0] sm:$0xff]  ;;  %v5280_v4 = vcombine.low %v3182_v54, %v3198_v55  ;;  %v5286_v5 = vcombine.low %v3185_v58, %v3201_v59  ;;  %v5257_v54 = vcombine.high %v3154_v47, %v3170_v48  ;;  %v3186_v58 = vld [vmem:[#allocation35 + $0x158] sm:$0xff] }
 0xd1b   : > { %v5319_v8 = vcombine.high %v3217_v2, %v3233_v3  ;;  %v3202_v59 = vld [vmem:[#allocation35 + $0x1d8] sm:$0xff] }
 0xd1d   : > { %4042 = vmatpush1.bf16.msra.mxu0 %v5304_v10  ;;  %4165 = vmatpush1.bf16.msra.mxu1 %v5310_v11  ;;  %v3249_v10 = vld [vmem:[#allocation35 + $0x350] sm:$0xff] }
 0xd1e   : > { %4043 = vmatprep.subr.bf16.mxu0 %v5337_v13  ;;  %4166 = vmatprep.subr.bf16.mxu1 %v5343_v14  ;;  %v3265_v11 = vld [vmem:[#allocation35 + $0x3d0] sm:$0xff]  ;;  %v5312_v13 = vcombine.low %v3214_v0, %v3230_v1  ;;  %v5318_v14 = vcombine.low %v3217_v2, %v3233_v3  ;;  %v5289_v0 = vcombine.high %v3186_v58, %v3202_v59  ;;  %v3218_v2 = vld [vmem:[#allocation35 + $0x258] sm:$0xff] }
 0xd1f   : > { %v5351_v56 = vcombine.high %v3249_v10, %v3265_v11  ;;  %v3234_v3 = vld [vmem:[#allocation35 + $0x2d8] sm:$0xff] }
 0xd21   : > { %4044 = vmatpush1.bf16.msra.mxu0 %v5336_v18  ;;  %4167 = vmatpush1.bf16.msra.mxu1 %v5342_v19  ;;  %v3155_v18 = vld [vmem:[#allocation35 + $0x60] sm:$0xff] }
 0xd22   : > { %4119 = vmatprep.subr.bf16.mxu0 %v5245_v20  ;;  %4242 = vmatprep.subr.bf16.mxu1 %v5251_v61  ;;  %v3171_v19 = vld [vmem:[#allocation35 + $0xe0] sm:$0xff]  ;;  %v5344_v20 = vcombine.low %v3246_v9, %v3262_v12  ;;  %v5350_v61 = vcombine.low %v3249_v10, %v3265_v11  ;;  %v5321_v9 = vcombine.high %v3218_v2, %v3234_v3  ;;  %v3250_v10 = vld [vmem:[#allocation35 + $0x358] sm:$0xff] }
 0xd23   : > { %v5259_v22 = vcombine.high %v3155_v18, %v3171_v19  ;;  %v3266_v11 = vld [vmem:[#allocation35 + $0x3d8] sm:$0xff] }
 0xd24   : > { %5365 = vmatmul.mubr.msk.bf16.vlgmr.msra.gmra.mrb[36].mxu0 %vm1820_vm0, %v7361_v25  ;;  %5368 = vmatmul.mubr.msk.bf16.vlgmr.msra.gmra.mrb[36].mxu1 %vm1820_vm0, %v7361_v25 }
 0xd25   : > { %4120 = vmatpush1.bf16.msra.mxu0 %v5244_v26  ;;  %4243 = vmatpush1.bf16.msra.mxu1 %v5250_v27  ;;  %v3187_v26 = vld [vmem:[#allocation35 + $0x160] sm:$0xff] }
 0xd26   : > { %4121 = vmatprep.subr.bf16.mxu0 %v5277_v28  ;;  %4244 = vmatprep.subr.bf16.mxu1 %v5283_v29  ;;  %v3203_v27 = vld [vmem:[#allocation35 + $0x1e0] sm:$0xff]  ;;  %v5252_v28 = vcombine.low %v3152_v16, %v3168_v17  ;;  %v5258_v29 = vcombine.low %v3155_v18, %v3171_v19  ;;  %v5353_v16 = vcombine.high %v3250_v10, %v3266_v11  ;;  %v3156_v18 = vld [vmem:[#allocation35 + $0x68] sm:$0xff] }
 0xd27   : > { %4151 = vmatprep.mubr.bf16.mxu0 %v6452_v23  ;;  %4274 = vmatprep.mubr.bf16.mxu1 %v6452_v23  ;;  %v5291_v31 = vcombine.high %v3187_v26, %v3203_v27  ;;  %v3172_v19 = vld [vmem:[#allocation35 + $0xe8] sm:$0xff] }
 0xd29   : > { %4122 = vmatpush1.bf16.msra.mxu0 %v5276_v34  ;;  %4245 = vmatpush1.bf16.msra.mxu1 %v5282_v35  ;;  %v3219_v34 = vld [vmem:[#allocation35 + $0x260] sm:$0xff] }
 0xd2a   : > { %4123 = vmatprep.subr.bf16.mxu0 %v5309_v37  ;;  %4246 = vmatprep.subr.bf16.mxu1 %v5315_v38  ;;  %v3235_v35 = vld [vmem:[#allocation35 + $0x2e0] sm:$0xff]  ;;  %v5284_v37 = vcombine.low %v3184_v53, %v3200_v24  ;;  %v5290_v38 = vcombine.low %v3187_v26, %v3203_v27  ;;  %v3204_v53 = vld [vmem:[#allocation35 + $0x1e8] sm:$0xff]  ;;  %v5260_v24 = vcombine.low %v3156_v18, %v3172_v19 }
 0xd2b   : > { %v5323_v40 = vcombine.high %v3219_v34, %v3235_v35  ;;  %v3220_v27 = vld [vmem:[#allocation35 + $0x268] sm:$0xff] }
 0xd2d   : > { %4124 = vmatpush1.bf16.msra.mxu0 %v5308_v41  ;;  %4247 = vmatpush1.bf16.msra.mxu1 %v5314_v42  ;;  %v3251_v41 = vld [vmem:[#allocation35 + $0x360] sm:$0xff] }
 0xd2e   : > { %4125 = vmatprep.subr.bf16.mxu0 %v5341_v43  ;;  %4248 = vmatprep.subr.bf16.mxu1 %v5347_v44  ;;  %v3267_v42 = vld [vmem:[#allocation35 + $0x3e0] sm:$0xff]  ;;  %v5316_v43 = vcombine.low %v3216_v32, %v3232_v33  ;;  %v5322_v44 = vcombine.low %v3219_v34, %v3235_v35  ;;  %v3268_v32 = vld [vmem:[#allocation35 + $0x3e8] sm:$0xff]  ;;  %v3158_v35 = vld [vmem:[#allocation35 + $0x78] sm:$0xff] }
 0xd2f   : > { %v5355_v46 = vcombine.high %v3251_v41, %v3267_v42 }
 0xd31   : > { %4126 = vmatpush1.bf16.msra.mxu0 %v5340_v49  ;;  %4249 = vmatpush1.bf16.msra.mxu1 %v5346_v50  ;;  %v3157_v49 = vld [vmem:[#allocation35 + $0x70] sm:$0xff] }
 0xd32   : > { %4201 = vmatprep.subr.bf16.mxu0 %v5249_v51  ;;  %4324 = vmatprep.subr.bf16.mxu1 %v5255_v52  ;;  %v3173_v50 = vld [vmem:[#allocation35 + $0xf0] sm:$0xff]  ;;  %v5348_v51 = vcombine.low %v3248_v6, %v3264_v57  ;;  %v5354_v52 = vcombine.low %v3251_v41, %v3267_v42  ;;  %v3206_v6 = vld [vmem:[#allocation35 + $0x1f8] sm:$0xff] }
 0xd33   : > { %v5263_v55 = vcombine.high %v3157_v49, %v3173_v50  ;;  %v3222_v42 = vld [vmem:[#allocation35 + $0x278] sm:$0xff] }
 0xd34   : > { %5367 = vmatmul.mubr.msk.bf16.vlgmr.msra.gmra.mrb[40].mxu0 %vm1820_vm0, %v7361_v25  ;;  %5370 = vmatmul.mubr.msk.bf16.vlgmr.msra.gmra.mrb[40].mxu1 %vm1820_vm0, %v7361_v25 }
 0xd35   : > { %4202 = vmatpush1.bf16.msra.mxu0 %v5248_v60  ;;  %4325 = vmatpush1.bf16.msra.mxu1 %v5254_v62  ;;  %v3189_v60 = vld [vmem:[#allocation35 + $0x170] sm:$0xff] }
 0xd36   : > { %4203 = vmatprep.subr.bf16.mxu0 %v5281_v36  ;;  %4326 = vmatprep.subr.bf16.mxu1 %v5287_v63  ;;  %v3205_v62 = vld [vmem:[#allocation35 + $0x1f0] sm:$0xff]  ;;  %v5256_v36 = vcombine.low %v3154_v47, %v3170_v48  ;;  %v5262_v63 = vcombine.low %v3157_v49, %v3173_v50  ;;  %v3270_v47 = vld [vmem:[#allocation35 + $0x3f8] sm:$0xff] }
 0xd37   : > { %4233 = vmatprep.mubr.bf16.mxu0 %v6452_v23  ;;  %4356 = vmatprep.mubr.bf16.mxu1 %v6452_v23  ;;  %v5295_v1 = vcombine.high %v3189_v60, %v3205_v62 }
 0xd39   : > { %4204 = vmatpush1.bf16.msra.mxu0 %v5280_v4  ;;  %4327 = vmatpush1.bf16.msra.mxu1 %v5286_v5  ;;  %v3221_v4 = vld [vmem:[#allocation35 + $0x270] sm:$0xff] }
 0xd3a   : > { %4205 = vmatprep.subr.bf16.mxu0 %v5313_v7  ;;  %4328 = vmatprep.subr.bf16.mxu1 %v5319_v8  ;;  %v3237_v5 = vld [vmem:[#allocation35 + $0x2f0] sm:$0xff]  ;;  %v5288_v7 = vcombine.low %v3186_v58, %v3202_v59  ;;  %v5294_v8 = vcombine.low %v3189_v60, %v3205_v62 }
 0xd3b   : > { %v5327_v12 = vcombine.high %v3221_v4, %v3237_v5 }
 0xd3d   : > { %4206 = vmatpush1.bf16.msra.mxu0 %v5312_v13  ;;  %4329 = vmatpush1.bf16.msra.mxu1 %v5318_v14  ;;  %v3253_v13 = vld [vmem:[#allocation35 + $0x370] sm:$0xff] }
 0xd3e   : > { %4207 = vmatprep.subr.bf16.mxu0 %v5345_v15  ;;  %4330 = vmatprep.subr.bf16.mxu1 %v5351_v56  ;;  %v3269_v14 = vld [vmem:[#allocation35 + $0x3f0] sm:$0xff]  ;;  %v5320_v15 = vcombine.low %v3218_v2, %v3234_v3  ;;  %v5326_v56 = vcombine.low %v3221_v4, %v3237_v5 }
 0xd3f   : > { %v5359_v17 = vcombine.high %v3253_v13, %v3269_v14 }
 0xd41   : > { %4208 = vmatpush1.bf16.msra.mxu0 %v5344_v20  ;;  %4331 = vmatpush1.bf16.msra.mxu1 %v5350_v61  ;;  %v5352_v20 = vcombine.low %v3250_v10, %v3266_v11  ;;  %v5358_v61 = vcombine.low %v3253_v13, %v3269_v14 }
 0xd42   : > { %4283 = vmatprep.subr.bf16.mxu0 %v5253_v21  ;;  %4406 = vmatprep.subr.bf16.mxu1 %v5259_v22  ;;  %v5261_v21 = vcombine.high %v3156_v18, %v3172_v19  ;;  %v3188_v22 = vld [vmem:[#allocation35 + $0x168] sm:$0xff] }
 0xd43   : > { %v5293_v26 = vcombine.high %v3188_v22, %v3204_v53 }
 0xd44   : > { %5369 = vmatmul.mubr.msk.bf16.vlgmr.msra.gmra.mrb[44].mxu0 %vm1820_vm0, %v7361_v25  ;;  %5372 = vmatmul.mubr.msk.bf16.vlgmr.msra.gmra.mrb[44].mxu1 %vm1820_vm0, %v7361_v25 }
 0xd45   : > { %4284 = vmatpush1.bf16.msra.mxu0 %v5252_v28  ;;  %4407 = vmatpush1.bf16.msra.mxu1 %v5258_v29  ;;  %v3236_v28 = vld [vmem:[#allocation35 + $0x2e8] sm:$0xff]  ;;  %v5292_v29 = vcombine.low %v3188_v22, %v3204_v53 }
 0xd46   : > { %4285 = vmatprep.subr.bf16.mxu0 %v5285_v30  ;;  %4408 = vmatprep.subr.bf16.mxu1 %v5291_v31  ;;  %v5325_v30 = vcombine.high %v3220_v27, %v3236_v28  ;;  %v3252_v31 = vld [vmem:[#allocation35 + $0x368] sm:$0xff]  ;;  %v5324_v33 = vcombine.low %v3220_v27, %v3236_v28 }
 0xd47   : > { %4315 = vmatprep.mubr.bf16.mxu0 %v6452_v23  ;;  %4438 = vmatprep.mubr.bf16.mxu1 %v6452_v23  ;;  %v5357_v34 = vcombine.high %v3252_v31, %v3268_v32 }
 0xd49   : > { %4286 = vmatpush1.bf16.msra.mxu0 %v5284_v37  ;;  %4409 = vmatpush1.bf16.msra.mxu1 %v5290_v38  ;;  %v3174_v37 = vld [vmem:[#allocation35 + $0xf8] sm:$0xff]  ;;  %v5356_v38 = vcombine.low %v3252_v31, %v3268_v32 }
 0xd4a   : > { %4287 = vmatprep.subr.bf16.mxu0 %v5317_v39  ;;  %4410 = vmatprep.subr.bf16.mxu1 %v5323_v40  ;;  %v5265_v39 = vcombine.high %v3158_v35, %v3174_v37  ;;  %v3190_v40 = vld [vmem:[#allocation35 + $0x178] sm:$0xff]  ;;  %v5264_v57 = vcombine.low %v3158_v35, %v3174_v37 }
 0xd4b   : > { %v5297_v41 = vcombine.high %v3190_v40, %v3206_v6 }
 0xd4d   : > { %4288 = vmatpush1.bf16.msra.mxu0 %v5316_v43  ;;  %4411 = vmatpush1.bf16.msra.mxu1 %v5322_v44  ;;  %v3238_v43 = vld [vmem:[#allocation35 + $0x2f8] sm:$0xff]  ;;  %v5296_v44 = vcombine.low %v3190_v40, %v3206_v6 }
 0xd4e   : > { %4289 = vmatprep.subr.bf16.mxu0 %v5349_v45  ;;  %4412 = vmatprep.subr.bf16.mxu1 %v5355_v46  ;;  %v5329_v45 = vcombine.high %v3222_v42, %v3238_v43  ;;  %v3254_v46 = vld [vmem:[#allocation35 + $0x378] sm:$0xff]  ;;  %v5328_v48 = vcombine.low %v3222_v42, %v3238_v43 }
 0xd4f   : > { %v5361_v49 = vcombine.high %v3254_v46, %v3270_v47  ;;  %v5360_v50 = vcombine.low %v3254_v46, %v3270_v47 }
 0xd51   : > { %4290 = vmatpush1.bf16.msra.mxu0 %v5348_v51  ;;  %4413 = vmatpush1.bf16.msra.mxu1 %v5354_v52 }
 0xd52   : > { %4365 = vmatprep.subr.bf16.mxu0 %v5257_v54  ;;  %4488 = vmatprep.subr.bf16.mxu1 %v5263_v55 }
 0xd54   : > { %5371 = vmatmul.mubr.msk.bf16.vlgmr.msra.gmra.mrb[48].mxu0 %vm1820_vm0, %v7361_v25  ;;  %5374 = vmatmul.mubr.msk.bf16.vlgmr.msra.gmra.mrb[48].mxu1 %vm1820_vm0, %v7361_v25 }
 0xd55   : > { %4366 = vmatpush1.bf16.msra.mxu0 %v5256_v36  ;;  %4489 = vmatpush1.bf16.msra.mxu1 %v5262_v63 }
 0xd56   : > { %4367 = vmatprep.subr.bf16.mxu0 %v5289_v0  ;;  %4490 = vmatprep.subr.bf16.mxu1 %v5295_v1 }
 0xd57   : > { %4397 = vmatprep.mubr.bf16.mxu0 %v6452_v23  ;;  %4520 = vmatprep.mubr.bf16.mxu1 %v6452_v23 }
 0xd59   : > { %4368 = vmatpush1.bf16.msra.mxu0 %v5288_v7  ;;  %4491 = vmatpush1.bf16.msra.mxu1 %v5294_v8 }
 0xd5a   : > { %4369 = vmatprep.subr.bf16.mxu0 %v5321_v9  ;;  %4492 = vmatprep.subr.bf16.mxu1 %v5327_v12 }
 0xd5d   : > { %4370 = vmatpush1.bf16.msra.mxu0 %v5320_v15  ;;  %4493 = vmatpush1.bf16.msra.mxu1 %v5326_v56 }
 0xd5e   : > { %4371 = vmatprep.subr.bf16.mxu0 %v5353_v16  ;;  %4494 = vmatprep.subr.bf16.mxu1 %v5359_v17 }
 0xd61   : > { %4372 = vmatpush1.bf16.msra.mxu0 %v5352_v20  ;;  %4495 = vmatpush1.bf16.msra.mxu1 %v5358_v61 }
 0xd62   : > { %4447 = vmatprep.subr.bf16.mxu0 %v5261_v21 }
 0xd64   : > { %5373 = vmatmul.mubr.msk.bf16.vlgmr.msra.gmra.mrb[52].mxu0 %vm1820_vm0, %v7361_v25  ;;  %5376 = vmatmul.mubr.msk.bf16.vlgmr.msra.gmra.mrb[52].mxu1 %vm1820_vm0, %v7361_v25 }
 0xd65   : > { %4448 = vmatpush1.bf16.msra.mxu0 %v5260_v24  ;;  %4479 = vmatprep.mubr.bf16.mxu0 %v6452_v23 }
 0xd66   : > { %4449 = vmatprep.subr.bf16.mxu0 %v5293_v26  ;;  %4689 = vmatprep.mubr.bf16.mxu1 %v6452_v23 }
 0xd69   : > { %4450 = vmatpush1.bf16.msra.mxu0 %v5292_v29 }
 0xd6a   : > { %4451 = vmatprep.subr.bf16.mxu0 %v5325_v30 }
 0xd6d   : > { %4452 = vmatpush1.bf16.msra.mxu0 %v5324_v33 }
 0xd6e   : > { %4453 = vmatprep.subr.bf16.mxu0 %v5357_v34 }
 0xd71   : > { %4454 = vmatpush1.bf16.msra.mxu0 %v5356_v38 }
 0xd72   : > { %4529 = vmatprep.subr.bf16.mxu0 %v5265_v39 }
 0xd74   : > { %5375 = vmatmul.mubr.msk.bf16.vlgmr.msra.gmra.mrb[56].mxu0 %vm1820_vm0, %v7361_v25 }
 0xd75   : > { %4530 = vmatpush1.bf16.msra.mxu0 %v5264_v57  ;;  %4561 = vmatprep.mubr.bf16.mxu0 %v6452_v23 }
 0xd76   : > { %4531 = vmatprep.subr.bf16.mxu0 %v5297_v41 }
 0xd79   : > { %4532 = vmatpush1.bf16.msra.mxu0 %v5296_v44 }
 0xd7a   : > { %4533 = vmatprep.subr.bf16.mxu0 %v5329_v45 }
 0xd7d   : > { %4534 = vmatpush1.bf16.msra.mxu0 %v5328_v48 }
 0xd7e   : > { %4535 = vmatprep.subr.bf16.mxu0 %v5361_v49 }
 0xd81   : > { %4536 = vmatpush1.bf16.msra.mxu0 %v5360_v50 }
 0xd84   : > { %5377 = vmatmul.mubr.msk.bf16.vlgmr.msra.gmra.mrb[60].mxu0 %vm1820_vm0, %v7361_v25 }
 0xdd7   : > { %v3948_v51 = vpop.f32.mrb[28].mxu0  ;;  %v4030_v52 = vpop.f32.mrb[28].mxu1 }
 0xdd8   : > { %v3950_v54 = vpop.f32.mrb[29].mxu0  ;;  %v4032_v55 = vpop.f32.mrb[29].mxu1 }
 0xdd9   : > { %v3952_v23 = vpop.f32.mrb[30].mxu0  ;;  %v4034_v58 = vpop.f32.mrb[30].mxu1 }
 0xdda   : > { %v3953_v59 = vpop.f32.mrb[31].mxu0  ;;  %v4035_v60 = vpop.f32.mrb[31].mxu1 }
 0xde7   : > { %v3989_v62 = vpop.f32.mrb[32].mxu0  ;;  %v4112_v36 = vpop.f32.mrb[32].mxu1 }
 0xde8   : > { %v4635_v63 = vpack.c.bf16 %v3989_v62, %v3948_v51  ;;  %v3991_v0 = vpop.f32.mrb[33].mxu0  ;;  %v4114_v1 = vpop.f32.mrb[33].mxu1 }
 0xde9   : > { %v4636_v2 = vpack.c.bf16 %v3991_v0, %v3950_v54  ;;  %v3993_v3 = vpop.f32.mrb[34].mxu0  ;;  %v4116_v4 = vpop.f32.mrb[34].mxu1 }
 0xdea   : > { %v3994_v5 = vpop.f32.mrb[35].mxu0  ;;  %v4117_v7 = vpop.f32.mrb[35].mxu1 }
 0xdeb   : > { %4657 = vmatprep.subr.bf16.mxu1 %v4636_v2  ;;  %v4602_v5 = vld [vmem:[#allocation32] sm:$0x3] }
 0xdec   : > { %4658 = vmatpush1.bf16.msra.mxu1 %v4635_v63 }
 0xdf7   : > { %v4071_v25 = vpop.f32.mrb[36].mxu0  ;;  %v4194_v8 = vpop.f32.mrb[36].mxu1 }
 0xdf8   : > { %v4637_v9 = vpack.c.bf16 %v4071_v25, %v4030_v52  ;;  %v4073_v12 = vpop.f32.mrb[37].mxu0  ;;  %v4196_v10 = vpop.f32.mrb[37].mxu1 }
 0xdf9   : > { %v4638_v11 = vpack.c.bf16 %v4073_v12, %v4032_v55  ;;  %v4075_v13 = vpop.f32.mrb[38].mxu0  ;;  %v4198_v14 = vpop.f32.mrb[38].mxu1 }
 0xdfa   : > { %v4076_v15 = vpop.f32.mrb[39].mxu0  ;;  %v4199_v56 = vpop.f32.mrb[39].mxu1 }
 0xdfb   : > { %4659 = vmatprep.subr.bf16.mxu1 %v4638_v11 }
 0xdfc   : > { %4660 = vmatpush1.bf16.msra.mxu1 %v4637_v9 }
 0xe07   : > { %v4153_v16 = vpop.f32.mrb[40].mxu0  ;;  %v4276_v17 = vpop.f32.mrb[40].mxu1 }
 0xe08   : > { %v4639_v18 = vpack.c.bf16 %v4153_v16, %v4112_v36  ;;  %v4155_v19 = vpop.f32.mrb[41].mxu0  ;;  %v4278_v20 = vpop.f32.mrb[41].mxu1 }
 0xe09   : > { %v4640_v61 = vpack.c.bf16 %v4155_v19, %v4114_v1  ;;  %v4157_v21 = vpop.f32.mrb[42].mxu0  ;;  %v4280_v22 = vpop.f32.mrb[42].mxu1 }
 0xe0a   : > { %v4158_v53 = vpop.f32.mrb[43].mxu0  ;;  %v4281_v24 = vpop.f32.mrb[43].mxu1 }
 0xe0b   : > { %4661 = vmatprep.subr.bf16.mxu1 %v4640_v61 }
 0xe0c   : > { %4662 = vmatpush1.bf16.msra.mxu1 %v4639_v18 }
 0xe17   : > { %v4235_v26 = vpop.f32.mrb[44].mxu0  ;;  %v4358_v27 = vpop.f32.mrb[44].mxu1 }
 0xe18   : > { %v4641_v28 = vpack.c.bf16 %v4235_v26, %v4194_v8  ;;  %v4237_v29 = vpop.f32.mrb[45].mxu0  ;;  %v4360_v30 = vpop.f32.mrb[45].mxu1 }
 0xe19   : > { %v4642_v31 = vpack.c.bf16 %v4237_v29, %v4196_v10  ;;  %v4239_v32 = vpop.f32.mrb[46].mxu0  ;;  %v4362_v33 = vpop.f32.mrb[46].mxu1 }
 0xe1a   : > { %v4240_v34 = vpop.f32.mrb[47].mxu0  ;;  %v4363_v35 = vpop.f32.mrb[47].mxu1 }
 0xe1b   : > { %4663 = vmatprep.subr.bf16.mxu1 %v4642_v31 }
 0xe1c   : > { %4664 = vmatpush1.bf16.msra.mxu1 %v4641_v28 }
 0xe27   : > { %v4317_v37 = vpop.f32.mrb[48].mxu0  ;;  %v4440_v38 = vpop.f32.mrb[48].mxu1 }
 0xe28   : > { %v4643_v39 = vpack.c.bf16 %v4317_v37, %v4276_v17  ;;  %v4319_v40 = vpop.f32.mrb[49].mxu0  ;;  %v4442_v6 = vpop.f32.mrb[49].mxu1 }
 0xe29   : > { %v4644_v57 = vpack.c.bf16 %v4319_v40, %v4278_v20  ;;  %v4321_v41 = vpop.f32.mrb[50].mxu0  ;;  %v4444_v42 = vpop.f32.mrb[50].mxu1 }
 0xe2a   : > { %v4322_v43 = vpop.f32.mrb[51].mxu0  ;;  %v4445_v44 = vpop.f32.mrb[51].mxu1 }
 0xe2b   : > { %4665 = vmatprep.subr.bf16.mxu1 %v4644_v57 }
 0xe2c   : > { %4666 = vmatpush1.bf16.msra.mxu1 %v4643_v39 }
 0xe37   : > { %v4399_v45 = vpop.f32.mrb[52].mxu0  ;;  %v4522_v46 = vpop.f32.mrb[52].mxu1 }
 0xe38   : > { %v4645_v47 = vpack.c.bf16 %v4399_v45, %v4358_v27  ;;  %v4401_v48 = vpop.f32.mrb[53].mxu0  ;;  %v4524_v49 = vpop.f32.mrb[53].mxu1 }
 0xe39   : > { %v4646_v50 = vpack.c.bf16 %v4401_v48, %v4360_v30  ;;  %v4403_v51 = vpop.f32.mrb[54].mxu0  ;;  %v4526_v52 = vpop.f32.mrb[54].mxu1 }
 0xe3a   : > { %v4404_v54 = vpop.f32.mrb[55].mxu0  ;;  %v4527_v55 = vpop.f32.mrb[55].mxu1 }
 0xe3b   : > { %4667 = vmatprep.subr.bf16.mxu1 %v4646_v50 }
 0xe3c   : > { %4668 = vmatpush1.bf16.msra.mxu1 %v4645_v47 }
 0xe47   : > { %v4481_v23 = vpop.f32.mrb[56].mxu0 }
 0xe48   : > { %v4647_v58 = vpack.c.bf16 %v4481_v23, %v4440_v38  ;;  %v4483_v59 = vpop.f32.mrb[57].mxu0 }
 0xe49   : > { %v4648_v60 = vpack.c.bf16 %v4483_v59, %v4442_v6  ;;  %v4485_v62 = vpop.f32.mrb[58].mxu0 }
 0xe4a   : > { %v4486_v36 = vpop.f32.mrb[59].mxu0 }
 0xe4b   : > { %4669 = vmatprep.subr.bf16.mxu1 %v4648_v60 }
 0xe4c   : > { %4670 = vmatpush1.bf16.msra.mxu1 %v4647_v58 }
 0xe57   : > { %v4563_v63 = vpop.f32.mrb[60].mxu0 }
 0xe58   : > { %v4649_v0 = vpack.c.bf16 %v4563_v63, %v4522_v46  ;;  %v4565_v1 = vpop.f32.mrb[61].mxu0 }
 0xe59   : > { %v4650_v2 = vpack.c.bf16 %v4565_v1, %v4524_v49  ;;  %v4567_v3 = vpop.f32.mrb[62].mxu0 }
 0xe5a   : > { %v4568_v4 = vpop.f32.mrb[63].mxu0 }
 0xe5b   : > { %4671 = vmatprep.subr.bf16.mxu1 %v4650_v2 }
 0xe5c   : > { %4672 = vmatpush1.bf16.msra.mxu1 %v4649_v0 }
 0xe5f   : > { %4690 = vmatmul.mubr.bf16.vlgmr.msra.gmra.mrb[56].mxu1 %v4602_v5 }
 0xe60   : > { %6297 = shalt.err (!%p6294_p12)
}
 0xe61   : > { %s6298_s8 = scalar_lea.hbm %s7416_s2, 16  ;;  %s6302_s7 = scalar_lea.hbm %s7614_s4, 32 }
 0xe62   : > { %p6299_p9 = scmp.ne.s32.totalorder %s7416_s2, %s6298_s8  ;;  %p6303_p8 = scmp.lt.u32.totalorder %s7416_s2, %s7614_s4 }
 0xe63   : > { %p6304_p13 = scmp.lt.u32.totalorder %s6302_s7, %s6298_s8  ;;  %p6306_p7 = scmp.lt.u32.totalorder %s6298_s8, %s7416_s2 }
 0xe64   : > { %p6300_p11 = pnand %p6299_p9, %p7615_p4 }
 0xe65   : > { %p6305_p5 = por %p6304_p13, %p6303_p8 }
 0xe66   : > { %p6301_p2 = pneg %p6300_p11 }
 0xe67   : > { %p6307_p1 = por %p6306_p7, %p6305_p5 }
 0xe69   : > { %p6308_p3 = pnand %p6307_p1, %p6301_p2 }
 0xe6b   : > { %6311 = shalt.err (!%p6308_p3)
}
 0xe6c   : > { %5559 = dma.vmem_to_hbm [thread:$0]  (%p7615_p4), %s4748_s5, 16, %s7416_s2, %s4721_s1   ;;  %v4655_v7 = vpop.permute.xlu0 %4654 }
 0xe6d   : > { %s5387_s5 = sshll.u32 %s7587_s6, 7  ;;  %s872_s2 = scalar_lea.vmem [#allocation37], %s5041_s26 }
 0xe6e   : > { %s4734_s1 = sshll.u32 %s872_s2, 4  ;;  %s7616_s0 = sld [smem:[#allocation69_spill]]  ;;  %s7444_s1 = int_to_ptr.vmem [resolvable:$true] %s4734_s1 }
 0xe6f   : > { %s4716_s19 = scalar_lea.sflag [#allocation10], %s7036_s24  ;;  %s6312_s7 = scalar_lea.vmem %s7444_s1, 128 }
 0xe70   : > { %p6313_p6 = scmp.ne.s32.totalorder %s7444_s1, %s6312_s7  ;;  %s6461_s26 = smov [#allocation37]  }
 0xe71   : > { %s6316_s6 = sshll.u32 %s6461_s26, 4  ;;  %s6317_s6 = int_to_ptr.vmem [resolvable:$false] %s6316_s6 }
 0xe72   : > { %p6314_p0 = pnand %p6313_p6, %p7615_p4  ;;  %s6318_s27 = scalar_lea.vmem %s6317_s6, 256 }
 0xe73   : > { %p6319_p12 = scmp.lt.s32.totalorder %s7444_s1, %s6317_s6  ;;  %p6320_p9 = scmp.lt.s32.totalorder %s6318_s27, %s6312_s7 }
 0xe74   : > { %s7617_s8 = smov %s7616_s0  ;;  %s7442_s22 = scalar_lea.hbm %s7616_s0, %s5387_s5 }
 0xe75   : > { %p6315_p10 = pneg %p6314_p0  ;;  %p6321_p11 = por %p6320_p9, %p6319_p12 }
 0xe77   : > { %p6322_p2 = pnand %p6321_p11, %p6315_p10 }
 0xf32   : > { %v4691_v25 = vpop.f32.mrb[56].mxu1 }
 0xf33   : > { %v4692_v8 = vadd.f32 %v4691_v25, %v4655_v7  ;;  %v4693_v9 = vpop.f32.mrb[57].mxu1 }
 0xf34   : > { %v4694_v12 = vadd.f32 %v4693_v9, %v4655_v7  ;;  %v4695_v10 = vpop.f32.mrb[58].mxu1 }
 0xf35   : > { %v5378_v11 = vmul.f32 -1.442695, %v4692_v8  ;;  %v4696_v13 = vpop.f32.mrb[59].mxu1 }
 0xf36   : > { %v5379_v14 = vmul.f32 -1.442695, %v4694_v12 }
 0xf37   : > { %5768 = vpow2.f32 %v5378_v11 }
 0xf38   : > { %5770 = vpow2.f32 %v5379_v14 }
 0xf41   : > { %v5769_v15 = vpop.eup %5768 }
 0xf42   : > { %v5771_v56 = vpop.eup %5770  ;;  %v4704_v16 = vadd.f32 1.0, %v5769_v15 }
 0xf43   : > { %v4705_v17 = vadd.f32 1.0, %v5771_v56 }
 0xf44   : > { %5772 = vrcp.f32 %v4704_v16 }
 0xf45   : > { %5774 = vrcp.f32 %v4705_v17 }
 0xf4e   : > { %v5773_v18 = vpop.eup %5772 }
 0xf4f   : > { %v5775_v19 = vpop.eup %5774 }
 0xf50   : > { %v4712_v20 = vcombine.low %v5773_v18, %v5775_v19 }
 0xf52   : > { %4714 = vst [vmem:[%s872_s2] sm:$0xff] %v4712_v20 }
 0xf53   : > { %6325 = shalt.err (!%p6322_p2)
}
 0xf54   : > { %s6326_s24 = scalar_lea.hbm %s7442_s22, 128  ;;  %s6330_s2 = scalar_lea.hbm %s7617_s8, 256 }
 0xf55   : > { %p6327_p8 = scmp.ne.s32.totalorder %s7442_s22, %s6326_s24  ;;  %p6331_p7 = scmp.lt.u32.totalorder %s7442_s22, %s7617_s8 }
 0xf56   : > { %p6332_p1 = scmp.lt.u32.totalorder %s6330_s2, %s6326_s24  ;;  %p6334_p6 = scmp.lt.u32.totalorder %s6326_s24, %s7442_s22 }
 0xf57   : > { %p6328_p13 = pnand %p6327_p8, %p7615_p4 }
 0xf58   : > { %p6333_p3 = por %p6332_p1, %p6331_p7 }
 0xf59   : > { %p6329_p5 = pneg %p6328_p13 }
 0xf5a   : > { %p6335_p0 = por %p6334_p6, %p6333_p3 }
 0xf5c   : > { %p6336_p10 = pnand %p6335_p0, %p6329_p5 }
 0xf5e   : > { %6339 = shalt.err (!%p6336_p10)
}
 0xf5f   : > { %5558 = dma.vmem_to_hbm [thread:$0]  (%p7615_p4), %s7444_s1, 128, %s7442_s22, %s4716_s19  }
 0xf60 PF: > { %s7618_s0 = sld [smem:[#allocation53_spill]]  ;;  %s7619_s7 = sld [smem:[#allocation56_spill]] }
 0xf61   : > { %p7620_p12 = scmp.ne.s32.totalorder %s7578_s18, 0 }
 0xf66   : > { %s4759_s26 = sand.u32 1, %s7618_s0   ;;  %p7621_p9 = scmp.ge.s32.totalorder %s7619_s7, 2 }
 0xf67   : > { %s4760_s6 = scalar_lea.sflag [#allocation10], %s4759_s26 }
 0xf68   : > { %p5619_p11 = pnand %p7621_p9, %p7620_p12 }
 0xf6a   : > { %6401 = dma.done.wait (!%p5619_p11), %s4760_s6, 128  }
 0xf6b   : > { %6403 = vsyncadd (!%p5619_p11), %s4760_s6, 4294967168  ;;  %s4769_s27 = scalar_lea.sflag [#allocation39], %s4759_s26 }
 0xf6c   : > { %6405 = dma.done.wait (!%p5619_p11), %s4769_s27, 16  }
 0xf6d   : > { %6407 = vsyncadd (!%p5619_p11), %s4769_s27, 4294967280  ;;  %s7622_s0 = sld [smem:[#allocation54_spill]]  ;;  %s7623_s30 = sld [smem:[#allocation55_spill]] }
 0xf6e   : > { %p47_p4 = scmp.ge.s32.totalorder %s6933_s21, 4   ;;  %s7624_s20 = smov %s6945_s25 }
 0xf70   :  { %49 = sbr.rel (!%p47_p4) target bundleno = 30 (0x1e), region = 231 }
 0xf77   :  { %4773 = vsyncpa [#allocation9], 1 }
 0xf78   :  { %4775 = vsyncpa [#allocation9 + $0x1], 1 }
 0xf79   :  { %4776 = vsyncpa [#allocation12], 1 }
 0xf7a   :  { %4778 = vsyncpa [#allocation12 + $0x1], 1 }
 0xf7b   :  { %4779 = vsyncpa [#allocation15], 1 }
 0xf7c   :  { %4780 = vsyncpa [#allocation18], 1 }
 0xf7d   :  { %4781 = vsyncpa [#allocation21], 1 }
 0xf7e   :  { %4782 = vsyncpa [#allocation24], 1 }
 0xf7f   :  { %4783 = vsyncpa [#allocation27], 1 }
 0xf80   :  { %4784 = vsyncpa [#allocation30], 1 }
 0xf81   :  { %4785 = vsyncpa [#allocation33], 1 }
 0xf82   :  { %4786 = vsyncpa [#allocation36], 1 }
 0xf83   :  { %4787 = vsyncpa [#allocation10], 1 }
 0xf84   :  { %4789 = vsyncpa [#allocation10 + $0x1], 1 }
 0xf85   :  { %4790 = vsyncpa [#allocation39], 1 }
 0xf86   :  { %4792 = vsyncpa [#allocation39 + $0x1], 1 }

</bundles_post_ra>
